<compile_context>
chip_gen: v6e
topology: v6e:2x2x1
jax: 0.10.0
libtpu: 0.0.40
codegen_flags: <defaults>
</compile_context>

<pallas_src>
import functools

import jax
import jax.numpy as jnp
from jax import lax
from jax.experimental import pallas as pl
from jax.experimental.pallas import tpu as pltpu


# --------------------------------------------------------------------------
# In-kernel im2col on the (C, H*W) layout.  Tap (dy, dx) is a lane shift by
# s = (dy-1)*W + (dx-1); sources outside the image are zero (zero fill handles
# row under/overflow, a per-dx column mask handles the left/right edges).
# --------------------------------------------------------------------------
def _im2col_taps(x2d, W, col_idx):
    C, HW = x2d.shape
    keep_l = col_idx >= 1          # dx == 0 reads column j-1
    keep_r = col_idx <= W - 2      # dx == 2 reads column j+1
    taps = []
    for dy in range(3):
        for dx in range(3):
            s = (dy - 1) * W + (dx - 1)
            if s == 0:
                shifted = x2d
            elif s > 0:
                shifted = jnp.concatenate(
                    [x2d[:, s:], jnp.zeros((C, s), x2d.dtype)], axis=1)
            else:
                shifted = jnp.concatenate(
                    [jnp.zeros((C, -s), x2d.dtype), x2d[:, :s]], axis=1)
            if dx == 0:
                shifted = jnp.where(keep_l, shifted, jnp.zeros_like(shifted))
            elif dx == 2:
                shifted = jnp.where(keep_r, shifted, jnp.zeros_like(shifted))
            taps.append(shifted)
    return taps


def _leaky(y, slope):
    return jnp.where(y >= 0, y, slope * y)


# --------------------------------------------------------------------------
# Pallas kernels.
# --------------------------------------------------------------------------
def _conv3x3_kernel(x_ref, w_ref, b_ref, o_ref, *, H, W, leaky, slope,
                    in_affine):
    HW = H * W
    x = x_ref[0]                                          # (Cin, H*W) f32
    if in_affine:                                         # fused `x * 2 - 1`
        x = x * 2.0 - 1.0
    xb = x.astype(jnp.bfloat16)                           # bf16 MXU operand
    col_idx = lax.broadcasted_iota(jnp.int32, (1, HW), 1) % W
    col = jnp.concatenate(_im2col_taps(xb, W, col_idx), axis=0)   # (9*Cin, HW)
    acc = jnp.dot(w_ref[...], col,
                  preferred_element_type=jnp.float32)     # (Cout, HW) f32 acc
    acc = acc + b_ref[...]                                # (Cout, 1) broadcast
    if leaky:
        acc = _leaky(acc, slope)
    o_ref[...] = acc[None].astype(jnp.float32)


def _decoder_kernel(x_ref, s_ref, w1_ref, b1_ref, w2_ref, b2_ref, *rest,
                    H, W, slope, fuse_output):
    """Fused decoder stage on one image:
         y1 = leaky(conv3x3(cat([x, skip], channel), w1) + b1)
         y2 = leaky(conv3x3(y1, w2) + b2)
         out = y2                              (intermediate decoders)
         out = 0.5*(conv3x3(y2, wo)+bo) + 0.5  (last decoder, output fused)
       All intermediates stay in VMEM/vregs; only `out` is written to HBM.
    """
    if fuse_output:
        wo_ref, bo_ref, o_ref = rest
    else:
        (o_ref,) = rest
    HW = H * W
    col_idx = lax.broadcasted_iota(jnp.int32, (1, HW), 1) % W

    # conv1 on the (fused) channel-concat of x and skip
    xb = x_ref[0].astype(jnp.bfloat16)
    sb = s_ref[0].astype(jnp.bfloat16)
    taps = _im2col_taps(xb, W, col_idx) + _im2col_taps(sb, W, col_idx)
    col1 = jnp.concatenate(taps, axis=0)                  # (9*(C1+C2), HW)
    y1 = jnp.dot(w1_ref[...], col1, preferred_element_type=jnp.float32)
    y1 = _leaky(y1 + b1_ref[...], slope)

    # conv2 on the in-VMEM conv1 result
    col2 = jnp.concatenate(
        _im2col_taps(y1.astype(jnp.bfloat16), W, col_idx), axis=0)
    y2 = jnp.dot(w2_ref[...], col2, preferred_element_type=jnp.float32)
    y2 = _leaky(y2 + b2_ref[...], slope)

    if fuse_output:
        # Dropout2d(0.1) is identity at inference; output conv + affine fused.
        col3 = jnp.concatenate(
            _im2col_taps(y2.astype(jnp.bfloat16), W, col_idx), axis=0)
        y3 = jnp.dot(wo_ref[...], col3, preferred_element_type=jnp.float32)
        y3 = (y3 + bo_ref[...]) * 0.5 + 0.5               # fused `y*0.5 + 0.5`
        o_ref[...] = y3[None].astype(jnp.float32)
    else:
        o_ref[...] = y2[None].astype(jnp.float32)


# --------------------------------------------------------------------------
# Wrappers (NCHW in / NCHW out; reshapes to (N, C, H*W) are free).
# --------------------------------------------------------------------------
def _reorder_w(w):
    # (3,3,Cin,Cout) -> (Cout, 9*Cin) with K index (dy*3+dx)*Cin + ci.
    kh, kw, cin, cout = w.shape
    return w.transpose(3, 0, 1, 2).reshape(cout, kh * kw * cin)


def _compiler_params():
    return pltpu.CompilerParams(
        dimension_semantics=("parallel",),
        vmem_limit_bytes=32 * 1024 * 1024)


def conv3x3(x_nchw, w, b, *, leaky=False, slope=0.1, in_affine=False):
    """3x3 'same' conv on NCHW.  w: (3,3,Cin,Cout) f32, b: (Cout,) f32."""
    N, Cin, H, W = x_nchw.shape
    Cout = w.shape[-1]
    w2 = _reorder_w(w).astype(jnp.bfloat16)
    b2 = b.reshape(Cout, 1).astype(jnp.float32)
    kernel = functools.partial(_conv3x3_kernel, H=H, W=W, leaky=leaky,
                               slope=slope, in_affine=in_affine)
    out = pl.pallas_call(
        kernel,
        out_shape=jax.ShapeDtypeStruct((N, Cout, H * W), jnp.float32),
        grid_spec=pltpu.PrefetchScalarGridSpec(
            num_scalar_prefetch=0,
            grid=(N,),
            in_specs=[
                pl.BlockSpec((1, Cin, H * W), lambda n: (n, 0, 0)),
                pl.BlockSpec((Cout, 9 * Cin), lambda n: (0, 0)),
                pl.BlockSpec((Cout, 1), lambda n: (0, 0)),
            ],
            out_specs=pl.BlockSpec((1, Cout, H * W), lambda n: (n, 0, 0)),
        ),
        compiler_params=_compiler_params(),
    )(x_nchw.reshape(N, Cin, H * W), w2, b2)
    return out.reshape(N, Cout, H, W)


def decoder_block(x_up, skip, w1, b1, w2, b2, *, slope=0.1, out_wb=None):
    """Fused decoder stage: cat + conv1 + leaky + conv2 + leaky
       (+ optional fused output conv with the *0.5+0.5 affine)."""
    N, C1, H, W = x_up.shape
    C2 = skip.shape[1]
    HW = H * W
    Cmid = w1.shape[-1]
    C2out = w2.shape[-1]

    w1p = jnp.concatenate(
        [_reorder_w(w1[:, :, :C1, :]), _reorder_w(w1[:, :, C1:, :])],
        axis=1).astype(jnp.bfloat16)                      # (Cmid, 9*(C1+C2))
    b1p = b1.reshape(Cmid, 1).astype(jnp.float32)
    w2p = _reorder_w(w2).astype(jnp.bfloat16)             # (C2out, 9*Cmid)
    b2p = b2.reshape(C2out, 1).astype(jnp.float32)

    inputs = [x_up.reshape(N, C1, HW), skip.reshape(N, C2, HW),
              w1p, b1p, w2p, b2p]
    in_specs = [
        pl.BlockSpec((1, C1, HW), lambda n: (n, 0, 0)),
        pl.BlockSpec((1, C2, HW), lambda n: (n, 0, 0)),
        pl.BlockSpec((Cmid, 9 * (C1 + C2)), lambda n: (0, 0)),
        pl.BlockSpec((Cmid, 1), lambda n: (0, 0)),
        pl.BlockSpec((C2out, 9 * Cmid), lambda n: (0, 0)),
        pl.BlockSpec((C2out, 1), lambda n: (0, 0)),
    ]

    fuse_output = out_wb is not None
    if fuse_output:
        wo, bo = out_wb
        Cout = wo.shape[-1]
        inputs += [_reorder_w(wo).astype(jnp.bfloat16),
                   bo.reshape(Cout, 1).astype(jnp.float32)]
        in_specs += [
            pl.BlockSpec((Cout, 9 * C2out), lambda n: (0, 0)),
            pl.BlockSpec((Cout, 1), lambda n: (0, 0)),
        ]
    else:
        Cout = C2out

    kernel = functools.partial(_decoder_kernel, H=H, W=W, slope=slope,
                               fuse_output=fuse_output)
    out = pl.pallas_call(
        kernel,
        out_shape=jax.ShapeDtypeStruct((N, Cout, HW), jnp.float32),
        grid_spec=pltpu.PrefetchScalarGridSpec(
            num_scalar_prefetch=0,
            grid=(N,),
            in_specs=in_specs,
            out_specs=pl.BlockSpec((1, Cout, HW), lambda n: (n, 0, 0)),
        ),
        compiler_params=_compiler_params(),
    )(*inputs)
    return out.reshape(N, Cout, H, W)


# --------------------------------------------------------------------------
# XLA glue (pooling / nearest resize).
# TODO(synk): fold these into the adjacent conv kernels (lane compaction /
# lane gather in the (C, H*W) layout) to cut another 2 HBM round trips/stage.
# --------------------------------------------------------------------------
def maxpool2(x):  # NCHW, 2x2 non-overlapping
    N, C, H, W = x.shape
    return x.reshape(N, C, H // 2, 2, W // 2, 2).max(axis=(3, 5))


def upsample_nearest(x, out_h, out_w):  # F.interpolate mode='nearest'
    N, C, H, W = x.shape
    rows = (jnp.arange(out_h) * H) // out_h
    cols = (jnp.arange(out_w) * W) // out_w
    return x[:, :, rows][:, :, :, cols]


# --------------------------------------------------------------------------
# Parameter init (deterministic, synthetic) and full forward pass.
# --------------------------------------------------------------------------
def _init_conv(key, cin, cout):
    kw, kb = jax.random.split(key)
    w = 0.05 * jax.random.normal(kw, (3, 3, cin, cout), jnp.float32)
    b = 0.01 * jax.random.normal(kb, (cout,), jnp.float32)
    return w, b


def init_params(key, input_channels, output_channels, stages, hidden):
    stages = max(2, stages)
    keys = iter(jax.random.split(key, 4 + 3 * stages))
    p = {
        "input": _init_conv(next(keys), input_channels, hidden),
        "enc": [_init_conv(next(keys), hidden, hidden) for _ in range(stages)],
        "latent": _init_conv(next(keys), hidden, hidden),
        "dec": [],
        "output": _init_conv(next(keys), 2 * hidden, output_channels),
    }
    for i in range(stages):
        f_in = 2 * hidden if i == 0 else 3 * hidden
        f_out = 2 * hidden
        k1, k2 = jax.random.split(next(keys))
        p["dec"].append((_init_conv(k1, f_in, f_out),
                         _init_conv(k2, f_out, f_out)))
    return p


def autoencoder_forward(x_nchw, params, *, stages):
    stages = max(2, stages)
    x = x_nchw.astype(jnp.float32)

    # input conv (no activation); the `x*2 - 1` prescale is fused in-kernel
    x = conv3x3(x, *params["input"], in_affine=True)

    # encoders: skip = pre-conv input; conv + leaky_relu(0.1); maxpool 2x2
    skips = []
    for i in range(stages):
        skips.append(x)
        x = conv3x3(x, *params["enc"][i], leaky=True)
        x = maxpool2(x)

    # latent conv (no activation)
    x = conv3x3(x, *params["latent"])

    # decoders: upsample to skip size; each stage is ONE fused kernel
    # (concat + conv1 + leaky + conv2 + leaky); the last stage also fuses the
    # output conv and the `y*0.5 + 0.5` affine.  Dropout2d(0.1) is identity.
    for i, skip in enumerate(reversed(skips)):
        (w1, b1), (w2_, b2_) = params["dec"][i]
        x = upsample_nearest(x, skip.shape[2], skip.shape[3])
        out_wb = params["output"] if i == stages - 1 else None
        x = decoder_block(x, skip, w1, b1, w2_, b2_, out_wb=out_wb)
    return x


# --------------------------------------------------------------------------
# Pure-JAX reference (XLA conv, same bf16-operand / f32-accumulate numerics)
# used only for the correctness sanity check.
# --------------------------------------------------------------------------
def _ref_conv(x, w, b, *, leaky=False, slope=0.1):
    y = lax.conv_general_dilated(
        x.astype(jnp.bfloat16), w.astype(jnp.bfloat16),
        window_strides=(1, 1), padding="SAME",
        dimension_numbers=("NCHW", "HWIO", "NCHW"),
        preferred_element_type=jnp.float32)
    y = y + b.reshape(1, -1, 1, 1)
    return jnp.where(y >= 0, y, slope * y) if leaky else y


def _ref_forward(x_nchw, params, *, stages):
    stages = max(2, stages)
    x = x_nchw.astype(jnp.float32)
    x = _ref_conv(x * 2.0 - 1.0, *params["input"])
    skips = []
    for i in range(stages):
        skips.append(x)
        x = maxpool2(_ref_conv(x, *params["enc"][i], leaky=True))
    x = _ref_conv(x, *params["latent"])
    for i, skip in enumerate(reversed(skips)):
        (w1, b1), (w2_, b2_) = params["dec"][i]
        x = upsample_nearest(x, skip.shape[2], skip.shape[3])
        x = jnp.concatenate([x, skip], axis=1)
        x = _ref_conv(x, w1, b1, leaky=True)
        x = _ref_conv(x, w2_, b2_, leaky=True)
    return _ref_conv(x, *params["output"]) * 0.5 + 0.5


if __name__ == "__main__":
    # small shapes: batch=2, input_channels=4, output_channels=3,
    # stages=2, hidden=16, spatial=16 (divisible by 2**stages)
    B, CIN, COUT, STAGES, HIDDEN, HW = 2, 4, 3, 2, 16, 16

    key = jax.random.PRNGKey(0)
    k_x, k_p = jax.random.split(key)
    x = jax.random.uniform(k_x, (B, CIN, HW, HW), jnp.float32)
    params = init_params(k_p, CIN, COUT, STAGES, HIDDEN)

    fwd = jax.jit(functools.partial(autoencoder_forward, stages=STAGES))
    out = jax.block_until_ready(fwd(x, params))
    assert out.shape == (B, COUT, HW, HW), out.shape

    ref_fn = jax.jit(functools.partial(_ref_forward, stages=STAGES))
    ref = jax.block_until_ready(ref_fn(x, params))
    err = float(jnp.max(jnp.abs(out - ref)))
    assert err < 5e-3, err

    print("KERNEL_OK")
</pallas_src>

<mosaic_0001>
module attributes {stable_mosaic.version = 11 : i64} {
  func.func @_conv3x3_kernel(%arg0: i32, %arg1: memref<1x4x256xf32, #tpu.memory_space<vmem>>, %arg2: memref<16x36xbf16, #tpu.memory_space<vmem>>, %arg3: memref<16x1xf32, #tpu.memory_space<vmem>>, %arg4: memref<1x16x256xf32, #tpu.memory_space<vmem>>) attributes {dimension_semantics = [#tpu.dimension_semantics<parallel>], iteration_bounds = array<i64: 2>, scalar_prefetch = 0 : i64, scratch_operands = 0 : i64, tpu.core_type = #tpu.core_type<tc>, window_params = [{transform_indices = @transform_0, window_bounds = array<i64: 1, 4, 256>}, {pipeline_mode = #tpu.pipeline_mode<synchronous>, transform_indices = @transform_1, window_bounds = array<i64: 16, 36>}, {pipeline_mode = #tpu.pipeline_mode<synchronous>, transform_indices = @transform_2, window_bounds = array<i64: 16, 1>}, {transform_indices = @transform_3, window_bounds = array<i64: 1, 16, 256>}]} {
    %c0 = arith.constant 0 : index
    %c0_0 = arith.constant 0 : index
    %c0_1 = arith.constant 0 : index
    %0 = vector.load %arg1[%c0, %c0_0, %c0_1] : memref<1x4x256xf32, #tpu.memory_space<vmem>>, vector<1x4x256xf32>
    %1 = vector.shape_cast %0 : vector<1x4x256xf32> to vector<4x256xf32>
    %cst = arith.constant 2.000000e+00 : f32
    %2 = vector.broadcast %cst : f32 to vector<4x256xf32>
    %3 = arith.mulf %1, %2 : vector<4x256xf32>
    %cst_2 = arith.constant 1.000000e+00 : f32
    %4 = vector.broadcast %cst_2 : f32 to vector<4x256xf32>
    %5 = arith.subf %3, %4 : vector<4x256xf32>
    %6 = arith.truncf %5 : vector<4x256xf32> to vector<4x256xbf16>
    %7 = tpu.iota {dimensions = array<i32: 1>} : vector<1x256xi32>
    %c16_i32 = arith.constant 16 : i32
    %c0_i32 = arith.constant 0 : i32
    %8 = arith.cmpi eq, %c16_i32, %c0_i32 : i32
    %c1_i32 = arith.constant 1 : i32
    %9 = arith.select %8, %c1_i32, %c16_i32 : i32
    %10 = vector.broadcast %9 : i32 to vector<1x256xi32>
    %11 = arith.remsi %7, %10 : vector<1x256xi32>
    %c0_i32_3 = arith.constant 0 : i32
    %12 = vector.broadcast %c0_i32_3 : i32 to vector<1x256xi32>
    %13 = arith.cmpi ne, %11, %12 : vector<1x256xi32>
    %c0_i32_4 = arith.constant 0 : i32
    %14 = vector.broadcast %c0_i32_4 : i32 to vector<1x256xi32>
    %15 = arith.cmpi slt, %11, %14 : vector<1x256xi32>
    %c0_i32_5 = arith.constant 0 : i32
    %16 = arith.cmpi slt, %9, %c0_i32_5 : i32
    %17 = vector.broadcast %16 : i1 to vector<1x256xi1>
    %18 = vector.broadcast %17 : vector<1x256xi1> to vector<1x256xi1>
    %19 = arith.xori %15, %18 : vector<1x256xi1>
    %20 = arith.andi %19, %13 : vector<1x256xi1>
    %21 = vector.broadcast %9 : i32 to vector<1x256xi32>
    %22 = arith.addi %11, %21 : vector<1x256xi32>
    %23 = arith.select %20, %22, %11 : vector<1x256xi1>, vector<1x256xi32>
    %c1_i32_6 = arith.constant 1 : i32
    %24 = vector.broadcast %c1_i32_6 : i32 to vector<1x256xi32>
    %25 = arith.cmpi sge, %23, %24 : vector<1x256xi32>
    %c14_i32 = arith.constant 14 : i32
    %26 = vector.broadcast %c14_i32 : i32 to vector<1x256xi32>
    %27 = arith.cmpi sle, %23, %26 : vector<1x256xi32>
    %cst_7 = arith.constant 0.000000e+00 : bf16
    %28 = vector.broadcast %cst_7 : bf16 to vector<4x17xbf16>
    %29 = vector.extract_strided_slice %6 {offsets = [0, 0], sizes = [4, 239], strides = [1, 1]} : vector<4x256xbf16> to vector<4x239xbf16>
    %30 = tpu.concatenate %28, %29 in 1 : vector<4x17xbf16>, vector<4x239xbf16> -> vector<4x256xbf16>
    %cst_8 = arith.constant 0.000000e+00 : bf16
    %31 = vector.broadcast %cst_8 : bf16 to vector<4x256xbf16>
    %32 = vector.shape_cast %25 : vector<1x256xi1> to vector<1x256xi1>
    %33 = vector.broadcast %32 : vector<1x256xi1> to vector<4x256xi1>
    %34 = arith.select %33, %30, %31 : vector<4x256xi1>, vector<4x256xbf16>
    %cst_9 = arith.constant 0.000000e+00 : bf16
    %35 = vector.broadcast %cst_9 : bf16 to vector<4x16xbf16>
    %36 = vector.extract_strided_slice %6 {offsets = [0, 0], sizes = [4, 240], strides = [1, 1]} : vector<4x256xbf16> to vector<4x240xbf16>
    %37 = tpu.concatenate %35, %36 in 1 : vector<4x16xbf16>, vector<4x240xbf16> -> vector<4x256xbf16>
    %cst_10 = arith.constant 0.000000e+00 : bf16
    %38 = vector.broadcast %cst_10 : bf16 to vector<4x15xbf16>
    %39 = vector.extract_strided_slice %6 {offsets = [0, 0], sizes = [4, 241], strides = [1, 1]} : vector<4x256xbf16> to vector<4x241xbf16>
    %40 = tpu.concatenate %38, %39 in 1 : vector<4x15xbf16>, vector<4x241xbf16> -> vector<4x256xbf16>
    %cst_11 = arith.constant 0.000000e+00 : bf16
    %41 = vector.broadcast %cst_11 : bf16 to vector<4x256xbf16>
    %42 = vector.shape_cast %27 : vector<1x256xi1> to vector<1x256xi1>
    %43 = vector.broadcast %42 : vector<1x256xi1> to vector<4x256xi1>
    %44 = arith.select %43, %40, %41 : vector<4x256xi1>, vector<4x256xbf16>
    %cst_12 = arith.constant 0.000000e+00 : bf16
    %45 = vector.broadcast %cst_12 : bf16 to vector<4x1xbf16>
    %46 = vector.extract_strided_slice %6 {offsets = [0, 0], sizes = [4, 255], strides = [1, 1]} : vector<4x256xbf16> to vector<4x255xbf16>
    %47 = tpu.concatenate %45, %46 in 1 : vector<4x1xbf16>, vector<4x255xbf16> -> vector<4x256xbf16>
    %cst_13 = arith.constant 0.000000e+00 : bf16
    %48 = vector.broadcast %cst_13 : bf16 to vector<4x256xbf16>
    %49 = vector.shape_cast %25 : vector<1x256xi1> to vector<1x256xi1>
    %50 = vector.broadcast %49 : vector<1x256xi1> to vector<4x256xi1>
    %51 = arith.select %50, %47, %48 : vector<4x256xi1>, vector<4x256xbf16>
    %52 = vector.extract_strided_slice %6 {offsets = [0, 1], sizes = [4, 255], strides = [1, 1]} : vector<4x256xbf16> to vector<4x255xbf16>
    %cst_14 = arith.constant 0.000000e+00 : bf16
    %53 = vector.broadcast %cst_14 : bf16 to vector<4x1xbf16>
    %54 = tpu.concatenate %52, %53 in 1 : vector<4x255xbf16>, vector<4x1xbf16> -> vector<4x256xbf16>
    %cst_15 = arith.constant 0.000000e+00 : bf16
    %55 = vector.broadcast %cst_15 : bf16 to vector<4x256xbf16>
    %56 = vector.shape_cast %27 : vector<1x256xi1> to vector<1x256xi1>
    %57 = vector.broadcast %56 : vector<1x256xi1> to vector<4x256xi1>
    %58 = arith.select %57, %54, %55 : vector<4x256xi1>, vector<4x256xbf16>
    %59 = vector.extract_strided_slice %6 {offsets = [0, 15], sizes = [4, 241], strides = [1, 1]} : vector<4x256xbf16> to vector<4x241xbf16>
    %cst_16 = arith.constant 0.000000e+00 : bf16
    %60 = vector.broadcast %cst_16 : bf16 to vector<4x15xbf16>
    %61 = tpu.concatenate %59, %60 in 1 : vector<4x241xbf16>, vector<4x15xbf16> -> vector<4x256xbf16>
    %cst_17 = arith.constant 0.000000e+00 : bf16
    %62 = vector.broadcast %cst_17 : bf16 to vector<4x256xbf16>
    %63 = vector.shape_cast %25 : vector<1x256xi1> to vector<1x256xi1>
    %64 = vector.broadcast %63 : vector<1x256xi1> to vector<4x256xi1>
    %65 = arith.select %64, %61, %62 : vector<4x256xi1>, vector<4x256xbf16>
    %66 = vector.extract_strided_slice %6 {offsets = [0, 16], sizes = [4, 240], strides = [1, 1]} : vector<4x256xbf16> to vector<4x240xbf16>
    %cst_18 = arith.constant 0.000000e+00 : bf16
    %67 = vector.broadcast %cst_18 : bf16 to vector<4x16xbf16>
    %68 = tpu.concatenate %66, %67 in 1 : vector<4x240xbf16>, vector<4x16xbf16> -> vector<4x256xbf16>
    %69 = vector.extract_strided_slice %6 {offsets = [0, 17], sizes = [4, 239], strides = [1, 1]} : vector<4x256xbf16> to vector<4x239xbf16>
    %cst_19 = arith.constant 0.000000e+00 : bf16
    %70 = vector.broadcast %cst_19 : bf16 to vector<4x17xbf16>
    %71 = tpu.concatenate %69, %70 in 1 : vector<4x239xbf16>, vector<4x17xbf16> -> vector<4x256xbf16>
    %cst_20 = arith.constant 0.000000e+00 : bf16
    %72 = vector.broadcast %cst_20 : bf16 to vector<4x256xbf16>
    %73 = vector.shape_cast %27 : vector<1x256xi1> to vector<1x256xi1>
    %74 = vector.broadcast %73 : vector<1x256xi1> to vector<4x256xi1>
    %75 = arith.select %74, %71, %72 : vector<4x256xi1>, vector<4x256xbf16>
    %76 = tpu.concatenate %34, %37, %44, %51, %6, %58, %65, %68, %75 in 0 : vector<4x256xbf16>, vector<4x256xbf16>, vector<4x256xbf16>, vector<4x256xbf16>, vector<4x256xbf16>, vector<4x256xbf16>, vector<4x256xbf16>, vector<4x256xbf16>, vector<4x256xbf16> -> vector<36x256xbf16>
    %c0_21 = arith.constant 0 : index
    %c0_22 = arith.constant 0 : index
    %77 = vector.load %arg2[%c0_21, %c0_22] : memref<16x36xbf16, #tpu.memory_space<vmem>>, vector<16x36xbf16>
    %cst_23 = arith.constant dense<0.000000e+00> : vector<16x256xf32>
    %78 = tpu.matmul %77, %76, %cst_23 {dimension_numbers = #tpu.dot_dimension_numbers<[1], [0], [0], [1], [0, 0, 1, 1], [], []>} : vector<16x36xbf16>, vector<36x256xbf16>, vector<16x256xf32> -> vector<16x256xf32>
    %c0_24 = arith.constant 0 : index
    %c0_25 = arith.constant 0 : index
    %79 = vector.load %arg3[%c0_24, %c0_25] : memref<16x1xf32, #tpu.memory_space<vmem>>, vector<16x1xf32>
    %80 = vector.broadcast %79 : vector<16x1xf32> to vector<16x256xf32>
    %81 = arith.addf %78, %80 : vector<16x256xf32>
    %82 = vector.shape_cast %81 : vector<16x256xf32> to vector<1x16x256xf32>
    %c0_26 = arith.constant 0 : index
    %c0_27 = arith.constant 0 : index
    %c0_28 = arith.constant 0 : index
    %83 = vector.load %arg4[%c0_26, %c0_27, %c0_28] : memref<1x16x256xf32, #tpu.memory_space<vmem>>, vector<1x16x256xf32>
    tpu.vector_store %arg4[%c0_26, %c0_27, %c0_28], %82 {strides = array<i32>} : memref<1x16x256xf32, #tpu.memory_space<vmem>>, vector<1x16x256xf32>,
    return
  }
  func.func @transform_0(%arg0: i32) -> (i32, i32, i32) {
    %c0_i32 = arith.constant 0 : i32
    %c0_i32_0 = arith.constant 0 : i32
    %c0_i32_1 = arith.constant 0 : i32
    return %arg0, %c0_i32, %c0_i32_0 : i32, i32, i32
  }
  func.func @transform_1(%arg0: i32) -> (i32, i32) {
    %c0_i32 = arith.constant 0 : i32
    %c0_i32_0 = arith.constant 0 : i32
    %c0_i32_1 = arith.constant 0 : i32
    return %c0_i32, %c0_i32_0 : i32, i32
  }
  func.func @transform_2(%arg0: i32) -> (i32, i32) {
    %c0_i32 = arith.constant 0 : i32
    %c0_i32_0 = arith.constant 0 : i32
    %c0_i32_1 = arith.constant 0 : i32
    return %c0_i32, %c0_i32_0 : i32, i32
  }
  func.func @transform_3(%arg0: i32) -> (i32, i32, i32) {
    %c0_i32 = arith.constant 0 : i32
    %c0_i32_0 = arith.constant 0 : i32
    %c0_i32_1 = arith.constant 0 : i32
    return %arg0, %c0_i32, %c0_i32_0 : i32, i32, i32
  }
}

module attributes {stable_mosaic.version = 11 : i64} {
  func.func @_conv3x3_kernel(%arg0: i32, %arg1: memref<1x16x256xf32, #tpu.memory_space<vmem>>, %arg2: memref<16x144xbf16, #tpu.memory_space<vmem>>, %arg3: memref<16x1xf32, #tpu.memory_space<vmem>>, %arg4: memref<1x16x256xf32, #tpu.memory_space<vmem>>) attributes {dimension_semantics = [#tpu.dimension_semantics<parallel>], iteration_bounds = array<i64: 2>, scalar_prefetch = 0 : i64, scratch_operands = 0 : i64, tpu.core_type = #tpu.core_type<tc>, window_params = [{transform_indices = @transform_0, window_bounds = array<i64: 1, 16, 256>}, {pipeline_mode = #tpu.pipeline_mode<synchronous>, transform_indices = @transform_1, window_bounds = array<i64: 16, 144>}, {pipeline_mode = #tpu.pipeline_mode<synchronous>, transform_indices = @transform_2, window_bounds = array<i64: 16, 1>}, {transform_indices = @transform_3, window_bounds = array<i64: 1, 16, 256>}]} {
    %c0 = arith.constant 0 : index
    %c0_0 = arith.constant 0 : index
    %c0_1 = arith.constant 0 : index
    %0 = vector.load %arg1[%c0, %c0_0, %c0_1] : memref<1x16x256xf32, #tpu.memory_space<vmem>>, vector<1x16x256xf32>
    %1 = vector.shape_cast %0 : vector<1x16x256xf32> to vector<16x256xf32>
    %2 = arith.truncf %1 : vector<16x256xf32> to vector<16x256xbf16>
    %3 = tpu.iota {dimensions = array<i32: 1>} : vector<1x256xi32>
    %c16_i32 = arith.constant 16 : i32
    %c0_i32 = arith.constant 0 : i32
    %4 = arith.cmpi eq, %c16_i32, %c0_i32 : i32
    %c1_i32 = arith.constant 1 : i32
    %5 = arith.select %4, %c1_i32, %c16_i32 : i32
    %6 = vector.broadcast %5 : i32 to vector<1x256xi32>
    %7 = arith.remsi %3, %6 : vector<1x256xi32>
    %c0_i32_2 = arith.constant 0 : i32
    %8 = vector.broadcast %c0_i32_2 : i32 to vector<1x256xi32>
    %9 = arith.cmpi ne, %7, %8 : vector<1x256xi32>
    %c0_i32_3 = arith.constant 0 : i32
    %10 = vector.broadcast %c0_i32_3 : i32 to vector<1x256xi32>
    %11 = arith.cmpi slt, %7, %10 : vector<1x256xi32>
    %c0_i32_4 = arith.constant 0 : i32
    %12 = arith.cmpi slt, %5, %c0_i32_4 : i32
    %13 = vector.broadcast %12 : i1 to vector<1x256xi1>
    %14 = vector.broadcast %13 : vector<1x256xi1> to vector<1x256xi1>
    %15 = arith.xori %11, %14 : vector<1x256xi1>
    %16 = arith.andi %15, %9 : vector<1x256xi1>
    %17 = vector.broadcast %5 : i32 to vector<1x256xi32>
    %18 = arith.addi %7, %17 : vector<1x256xi32>
    %19 = arith.select %16, %18, %7 : vector<1x256xi1>, vector<1x256xi32>
    %c1_i32_5 = arith.constant 1 : i32
    %20 = vector.broadcast %c1_i32_5 : i32 to vector<1x256xi32>
    %21 = arith.cmpi sge, %19, %20 : vector<1x256xi32>
    %c14_i32 = arith.constant 14 : i32
    %22 = vector.broadcast %c14_i32 : i32 to vector<1x256xi32>
    %23 = arith.cmpi sle, %19, %22 : vector<1x256xi32>
    %cst = arith.constant 0.000000e+00 : bf16
    %24 = vector.broadcast %cst : bf16 to vector<16x17xbf16>
    %25 = vector.extract_strided_slice %2 {offsets = [0, 0], sizes = [16, 239], strides = [1, 1]} : vector<16x256xbf16> to vector<16x239xbf16>
    %26 = tpu.concatenate %24, %25 in 1 : vector<16x17xbf16>, vector<16x239xbf16> -> vector<16x256xbf16>
    %cst_6 = arith.constant 0.000000e+00 : bf16
    %27 = vector.broadcast %cst_6 : bf16 to vector<16x256xbf16>
    %28 = vector.shape_cast %21 : vector<1x256xi1> to vector<1x256xi1>
    %29 = vector.broadcast %28 : vector<1x256xi1> to vector<16x256xi1>
    %30 = arith.select %29, %26, %27 : vector<16x256xi1>, vector<16x256xbf16>
    %cst_7 = arith.constant 0.000000e+00 : bf16
    %31 = vector.broadcast %cst_7 : bf16 to vector<16x16xbf16>
    %32 = vector.extract_strided_slice %2 {offsets = [0, 0], sizes = [16, 240], strides = [1, 1]} : vector<16x256xbf16> to vector<16x240xbf16>
    %33 = tpu.concatenate %31, %32 in 1 : vector<16x16xbf16>, vector<16x240xbf16> -> vector<16x256xbf16>
    %cst_8 = arith.constant 0.000000e+00 : bf16
    %34 = vector.broadcast %cst_8 : bf16 to vector<16x15xbf16>
    %35 = vector.extract_strided_slice %2 {offsets = [0, 0], sizes = [16, 241], strides = [1, 1]} : vector<16x256xbf16> to vector<16x241xbf16>
    %36 = tpu.concatenate %34, %35 in 1 : vector<16x15xbf16>, vector<16x241xbf16> -> vector<16x256xbf16>
    %cst_9 = arith.constant 0.000000e+00 : bf16
    %37 = vector.broadcast %cst_9 : bf16 to vector<16x256xbf16>
    %38 = vector.shape_cast %23 : vector<1x256xi1> to vector<1x256xi1>
    %39 = vector.broadcast %38 : vector<1x256xi1> to vector<16x256xi1>
    %40 = arith.select %39, %36, %37 : vector<16x256xi1>, vector<16x256xbf16>
    %cst_10 = arith.constant 0.000000e+00 : bf16
    %41 = vector.broadcast %cst_10 : bf16 to vector<16x1xbf16>
    %42 = vector.extract_strided_slice %2 {offsets = [0, 0], sizes = [16, 255], strides = [1, 1]} : vector<16x256xbf16> to vector<16x255xbf16>
    %43 = tpu.concatenate %41, %42 in 1 : vector<16x1xbf16>, vector<16x255xbf16> -> vector<16x256xbf16>
    %cst_11 = arith.constant 0.000000e+00 : bf16
    %44 = vector.broadcast %cst_11 : bf16 to vector<16x256xbf16>
    %45 = vector.shape_cast %21 : vector<1x256xi1> to vector<1x256xi1>
    %46 = vector.broadcast %45 : vector<1x256xi1> to vector<16x256xi1>
    %47 = arith.select %46, %43, %44 : vector<16x256xi1>, vector<16x256xbf16>
    %48 = vector.extract_strided_slice %2 {offsets = [0, 1], sizes = [16, 255], strides = [1, 1]} : vector<16x256xbf16> to vector<16x255xbf16>
    %cst_12 = arith.constant 0.000000e+00 : bf16
    %49 = vector.broadcast %cst_12 : bf16 to vector<16x1xbf16>
    %50 = tpu.concatenate %48, %49 in 1 : vector<16x255xbf16>, vector<16x1xbf16> -> vector<16x256xbf16>
    %cst_13 = arith.constant 0.000000e+00 : bf16
    %51 = vector.broadcast %cst_13 : bf16 to vector<16x256xbf16>
    %52 = vector.shape_cast %23 : vector<1x256xi1> to vector<1x256xi1>
    %53 = vector.broadcast %52 : vector<1x256xi1> to vector<16x256xi1>
    %54 = arith.select %53, %50, %51 : vector<16x256xi1>, vector<16x256xbf16>
    %55 = vector.extract_strided_slice %2 {offsets = [0, 15], sizes = [16, 241], strides = [1, 1]} : vector<16x256xbf16> to vector<16x241xbf16>
    %cst_14 = arith.constant 0.000000e+00 : bf16
    %56 = vector.broadcast %cst_14 : bf16 to vector<16x15xbf16>
    %57 = tpu.concatenate %55, %56 in 1 : vector<16x241xbf16>, vector<16x15xbf16> -> vector<16x256xbf16>
    %cst_15 = arith.constant 0.000000e+00 : bf16
    %58 = vector.broadcast %cst_15 : bf16 to vector<16x256xbf16>
    %59 = vector.shape_cast %21 : vector<1x256xi1> to vector<1x256xi1>
    %60 = vector.broadcast %59 : vector<1x256xi1> to vector<16x256xi1>
    %61 = arith.select %60, %57, %58 : vector<16x256xi1>, vector<16x256xbf16>
    %62 = vector.extract_strided_slice %2 {offsets = [0, 16], sizes = [16, 240], strides = [1, 1]} : vector<16x256xbf16> to vector<16x240xbf16>
    %cst_16 = arith.constant 0.000000e+00 : bf16
    %63 = vector.broadcast %cst_16 : bf16 to vector<16x16xbf16>
    %64 = tpu.concatenate %62, %63 in 1 : vector<16x240xbf16>, vector<16x16xbf16> -> vector<16x256xbf16>
    %65 = vector.extract_strided_slice %2 {offsets = [0, 17], sizes = [16, 239], strides = [1, 1]} : vector<16x256xbf16> to vector<16x239xbf16>
    %cst_17 = arith.constant 0.000000e+00 : bf16
    %66 = vector.broadcast %cst_17 : bf16 to vector<16x17xbf16>
    %67 = tpu.concatenate %65, %66 in 1 : vector<16x239xbf16>, vector<16x17xbf16> -> vector<16x256xbf16>
    %cst_18 = arith.constant 0.000000e+00 : bf16
    %68 = vector.broadcast %cst_18 : bf16 to vector<16x256xbf16>
    %69 = vector.shape_cast %23 : vector<1x256xi1> to vector<1x256xi1>
    %70 = vector.broadcast %69 : vector<1x256xi1> to vector<16x256xi1>
    %71 = arith.select %70, %67, %68 : vector<16x256xi1>, vector<16x256xbf16>
    %72 = tpu.concatenate %30, %33, %40, %47, %2, %54, %61, %64, %71 in 0 : vector<16x256xbf16>, vector<16x256xbf16>, vector<16x256xbf16>, vector<16x256xbf16>, vector<16x256xbf16>, vector<16x256xbf16>, vector<16x256xbf16>, vector<16x256xbf16>, vector<16x256xbf16> -> vector<144x256xbf16>
    %c0_19 = arith.constant 0 : index
    %c0_20 = arith.constant 0 : index
    %73 = vector.load %arg2[%c0_19, %c0_20] : memref<16x144xbf16, #tpu.memory_space<vmem>>, vector<16x144xbf16>
    %cst_21 = arith.constant dense<0.000000e+00> : vector<16x256xf32>
    %74 = tpu.matmul %73, %72, %cst_21 {dimension_numbers = #tpu.dot_dimension_numbers<[1], [0], [0], [1], [0, 0, 1, 1], [], []>} : vector<16x144xbf16>, vector<144x256xbf16>, vector<16x256xf32> -> vector<16x256xf32>
    %c0_22 = arith.constant 0 : index
    %c0_23 = arith.constant 0 : index
    %75 = vector.load %arg3[%c0_22, %c0_23] : memref<16x1xf32, #tpu.memory_space<vmem>>, vector<16x1xf32>
    %76 = vector.broadcast %75 : vector<16x1xf32> to vector<16x256xf32>
    %77 = arith.addf %74, %76 : vector<16x256xf32>
    %cst_24 = arith.constant 0.000000e+00 : f32
    %78 = vector.broadcast %cst_24 : f32 to vector<16x256xf32>
    %79 = arith.cmpf oge, %77, %78 : vector<16x256xf32>
    %cst_25 = arith.constant 1.000000e-01 : f32
    %80 = vector.broadcast %cst_25 : f32 to vector<16x256xf32>
    %81 = arith.mulf %80, %77 : vector<16x256xf32>
    %82 = arith.select %79, %77, %81 : vector<16x256xi1>, vector<16x256xf32>
    %83 = vector.shape_cast %82 : vector<16x256xf32> to vector<1x16x256xf32>
    %c0_26 = arith.constant 0 : index
    %c0_27 = arith.constant 0 : index
    %c0_28 = arith.constant 0 : index
    %84 = vector.load %arg4[%c0_26, %c0_27, %c0_28] : memref<1x16x256xf32, #tpu.memory_space<vmem>>, vector<1x16x256xf32>
    tpu.vector_store %arg4[%c0_26, %c0_27, %c0_28], %83 {strides = array<i32>} : memref<1x16x256xf32, #tpu.memory_space<vmem>>, vector<1x16x256xf32>,
    return
  }
  func.func @transform_0(%arg0: i32) -> (i32, i32, i32) {
    %c0_i32 = arith.constant 0 : i32
    %c0_i32_0 = arith.constant 0 : i32
    %c0_i32_1 = arith.constant 0 : i32
    return %arg0, %c0_i32, %c0_i32_0 : i32, i32, i32
  }
  func.func @transform_1(%arg0: i32) -> (i32, i32) {
    %c0_i32 = arith.constant 0 : i32
    %c0_i32_0 = arith.constant 0 : i32
    %c0_i32_1 = arith.constant 0 : i32
    return %c0_i32, %c0_i32_0 : i32, i32
  }
  func.func @transform_2(%arg0: i32) -> (i32, i32) {
    %c0_i32 = arith.constant 0 : i32
    %c0_i32_0 = arith.constant 0 : i32
    %c0_i32_1 = arith.constant 0 : i32
    return %c0_i32, %c0_i32_0 : i32, i32
  }
  func.func @transform_3(%arg0: i32) -> (i32, i32, i32) {
    %c0_i32 = arith.constant 0 : i32
    %c0_i32_0 = arith.constant 0 : i32
    %c0_i32_1 = arith.constant 0 : i32
    return %arg0, %c0_i32, %c0_i32_0 : i32, i32, i32
  }
}

module attributes {stable_mosaic.version = 11 : i64} {
  func.func @_conv3x3_kernel(%arg0: i32, %arg1: memref<1x16x64xf32, #tpu.memory_space<vmem>>, %arg2: memref<16x144xbf16, #tpu.memory_space<vmem>>, %arg3: memref<16x1xf32, #tpu.memory_space<vmem>>, %arg4: memref<1x16x64xf32, #tpu.memory_space<vmem>>) attributes {dimension_semantics = [#tpu.dimension_semantics<parallel>], iteration_bounds = array<i64: 2>, scalar_prefetch = 0 : i64, scratch_operands = 0 : i64, tpu.core_type = #tpu.core_type<tc>, window_params = [{transform_indices = @transform_0, window_bounds = array<i64: 1, 16, 64>}, {pipeline_mode = #tpu.pipeline_mode<synchronous>, transform_indices = @transform_1, window_bounds = array<i64: 16, 144>}, {pipeline_mode = #tpu.pipeline_mode<synchronous>, transform_indices = @transform_2, window_bounds = array<i64: 16, 1>}, {transform_indices = @transform_3, window_bounds = array<i64: 1, 16, 64>}]} {
    %c0 = arith.constant 0 : index
    %c0_0 = arith.constant 0 : index
    %c0_1 = arith.constant 0 : index
    %0 = vector.load %arg1[%c0, %c0_0, %c0_1] : memref<1x16x64xf32, #tpu.memory_space<vmem>>, vector<1x16x64xf32>
    %1 = vector.shape_cast %0 : vector<1x16x64xf32> to vector<16x64xf32>
    %2 = arith.truncf %1 : vector<16x64xf32> to vector<16x64xbf16>
    %3 = tpu.iota {dimensions = array<i32: 1>} : vector<1x64xi32>
    %c8_i32 = arith.constant 8 : i32
    %c0_i32 = arith.constant 0 : i32
    %4 = arith.cmpi eq, %c8_i32, %c0_i32 : i32
    %c1_i32 = arith.constant 1 : i32
    %5 = arith.select %4, %c1_i32, %c8_i32 : i32
    %6 = vector.broadcast %5 : i32 to vector<1x64xi32>
    %7 = arith.remsi %3, %6 : vector<1x64xi32>
    %c0_i32_2 = arith.constant 0 : i32
    %8 = vector.broadcast %c0_i32_2 : i32 to vector<1x64xi32>
    %9 = arith.cmpi ne, %7, %8 : vector<1x64xi32>
    %c0_i32_3 = arith.constant 0 : i32
    %10 = vector.broadcast %c0_i32_3 : i32 to vector<1x64xi32>
    %11 = arith.cmpi slt, %7, %10 : vector<1x64xi32>
    %c0_i32_4 = arith.constant 0 : i32
    %12 = arith.cmpi slt, %5, %c0_i32_4 : i32
    %13 = vector.broadcast %12 : i1 to vector<1x64xi1>
    %14 = vector.broadcast %13 : vector<1x64xi1> to vector<1x64xi1>
    %15 = arith.xori %11, %14 : vector<1x64xi1>
    %16 = arith.andi %15, %9 : vector<1x64xi1>
    %17 = vector.broadcast %5 : i32 to vector<1x64xi32>
    %18 = arith.addi %7, %17 : vector<1x64xi32>
    %19 = arith.select %16, %18, %7 : vector<1x64xi1>, vector<1x64xi32>
    %c1_i32_5 = arith.constant 1 : i32
    %20 = vector.broadcast %c1_i32_5 : i32 to vector<1x64xi32>
    %21 = arith.cmpi sge, %19, %20 : vector<1x64xi32>
    %c6_i32 = arith.constant 6 : i32
    %22 = vector.broadcast %c6_i32 : i32 to vector<1x64xi32>
    %23 = arith.cmpi sle, %19, %22 : vector<1x64xi32>
    %cst = arith.constant 0.000000e+00 : bf16
    %24 = vector.broadcast %cst : bf16 to vector<16x9xbf16>
    %25 = vector.extract_strided_slice %2 {offsets = [0, 0], sizes = [16, 55], strides = [1, 1]} : vector<16x64xbf16> to vector<16x55xbf16>
    %26 = tpu.concatenate %24, %25 in 1 : vector<16x9xbf16>, vector<16x55xbf16> -> vector<16x64xbf16>
    %cst_6 = arith.constant 0.000000e+00 : bf16
    %27 = vector.broadcast %cst_6 : bf16 to vector<16x64xbf16>
    %28 = vector.shape_cast %21 : vector<1x64xi1> to vector<1x64xi1>
    %29 = vector.broadcast %28 : vector<1x64xi1> to vector<16x64xi1>
    %30 = arith.select %29, %26, %27 : vector<16x64xi1>, vector<16x64xbf16>
    %cst_7 = arith.constant 0.000000e+00 : bf16
    %31 = vector.broadcast %cst_7 : bf16 to vector<16x8xbf16>
    %32 = vector.extract_strided_slice %2 {offsets = [0, 0], sizes = [16, 56], strides = [1, 1]} : vector<16x64xbf16> to vector<16x56xbf16>
    %33 = tpu.concatenate %31, %32 in 1 : vector<16x8xbf16>, vector<16x56xbf16> -> vector<16x64xbf16>
    %cst_8 = arith.constant 0.000000e+00 : bf16
    %34 = vector.broadcast %cst_8 : bf16 to vector<16x7xbf16>
    %35 = vector.extract_strided_slice %2 {offsets = [0, 0], sizes = [16, 57], strides = [1, 1]} : vector<16x64xbf16> to vector<16x57xbf16>
    %36 = tpu.concatenate %34, %35 in 1 : vector<16x7xbf16>, vector<16x57xbf16> -> vector<16x64xbf16>
    %cst_9 = arith.constant 0.000000e+00 : bf16
    %37 = vector.broadcast %cst_9 : bf16 to vector<16x64xbf16>
    %38 = vector.shape_cast %23 : vector<1x64xi1> to vector<1x64xi1>
    %39 = vector.broadcast %38 : vector<1x64xi1> to vector<16x64xi1>
    %40 = arith.select %39, %36, %37 : vector<16x64xi1>, vector<16x64xbf16>
    %cst_10 = arith.constant 0.000000e+00 : bf16
    %41 = vector.broadcast %cst_10 : bf16 to vector<16x1xbf16>
    %42 = vector.extract_strided_slice %2 {offsets = [0, 0], sizes = [16, 63], strides = [1, 1]} : vector<16x64xbf16> to vector<16x63xbf16>
    %43 = tpu.concatenate %41, %42 in 1 : vector<16x1xbf16>, vector<16x63xbf16> -> vector<16x64xbf16>
    %cst_11 = arith.constant 0.000000e+00 : bf16
    %44 = vector.broadcast %cst_11 : bf16 to vector<16x64xbf16>
    %45 = vector.shape_cast %21 : vector<1x64xi1> to vector<1x64xi1>
    %46 = vector.broadcast %45 : vector<1x64xi1> to vector<16x64xi1>
    %47 = arith.select %46, %43, %44 : vector<16x64xi1>, vector<16x64xbf16>
    %48 = vector.extract_strided_slice %2 {offsets = [0, 1], sizes = [16, 63], strides = [1, 1]} : vector<16x64xbf16> to vector<16x63xbf16>
    %cst_12 = arith.constant 0.000000e+00 : bf16
    %49 = vector.broadcast %cst_12 : bf16 to vector<16x1xbf16>
    %50 = tpu.concatenate %48, %49 in 1 : vector<16x63xbf16>, vector<16x1xbf16> -> vector<16x64xbf16>
    %cst_13 = arith.constant 0.000000e+00 : bf16
    %51 = vector.broadcast %cst_13 : bf16 to vector<16x64xbf16>
    %52 = vector.shape_cast %23 : vector<1x64xi1> to vector<1x64xi1>
    %53 = vector.broadcast %52 : vector<1x64xi1> to vector<16x64xi1>
    %54 = arith.select %53, %50, %51 : vector<16x64xi1>, vector<16x64xbf16>
    %55 = vector.extract_strided_slice %2 {offsets = [0, 7], sizes = [16, 57], strides = [1, 1]} : vector<16x64xbf16> to vector<16x57xbf16>
    %cst_14 = arith.constant 0.000000e+00 : bf16
    %56 = vector.broadcast %cst_14 : bf16 to vector<16x7xbf16>
    %57 = tpu.concatenate %55, %56 in 1 : vector<16x57xbf16>, vector<16x7xbf16> -> vector<16x64xbf16>
    %cst_15 = arith.constant 0.000000e+00 : bf16
    %58 = vector.broadcast %cst_15 : bf16 to vector<16x64xbf16>
    %59 = vector.shape_cast %21 : vector<1x64xi1> to vector<1x64xi1>
    %60 = vector.broadcast %59 : vector<1x64xi1> to vector<16x64xi1>
    %61 = arith.select %60, %57, %58 : vector<16x64xi1>, vector<16x64xbf16>
    %62 = vector.extract_strided_slice %2 {offsets = [0, 8], sizes = [16, 56], strides = [1, 1]} : vector<16x64xbf16> to vector<16x56xbf16>
    %cst_16 = arith.constant 0.000000e+00 : bf16
    %63 = vector.broadcast %cst_16 : bf16 to vector<16x8xbf16>
    %64 = tpu.concatenate %62, %63 in 1 : vector<16x56xbf16>, vector<16x8xbf16> -> vector<16x64xbf16>
    %65 = vector.extract_strided_slice %2 {offsets = [0, 9], sizes = [16, 55], strides = [1, 1]} : vector<16x64xbf16> to vector<16x55xbf16>
    %cst_17 = arith.constant 0.000000e+00 : bf16
    %66 = vector.broadcast %cst_17 : bf16 to vector<16x9xbf16>
    %67 = tpu.concatenate %65, %66 in 1 : vector<16x55xbf16>, vector<16x9xbf16> -> vector<16x64xbf16>
    %cst_18 = arith.constant 0.000000e+00 : bf16
    %68 = vector.broadcast %cst_18 : bf16 to vector<16x64xbf16>
    %69 = vector.shape_cast %23 : vector<1x64xi1> to vector<1x64xi1>
    %70 = vector.broadcast %69 : vector<1x64xi1> to vector<16x64xi1>
    %71 = arith.select %70, %67, %68 : vector<16x64xi1>, vector<16x64xbf16>
    %72 = tpu.concatenate %30, %33, %40, %47, %2, %54, %61, %64, %71 in 0 : vector<16x64xbf16>, vector<16x64xbf16>, vector<16x64xbf16>, vector<16x64xbf16>, vector<16x64xbf16>, vector<16x64xbf16>, vector<16x64xbf16>, vector<16x64xbf16>, vector<16x64xbf16> -> vector<144x64xbf16>
    %c0_19 = arith.constant 0 : index
    %c0_20 = arith.constant 0 : index
    %73 = vector.load %arg2[%c0_19, %c0_20] : memref<16x144xbf16, #tpu.memory_space<vmem>>, vector<16x144xbf16>
    %cst_21 = arith.constant dense<0.000000e+00> : vector<16x64xf32>
    %74 = tpu.matmul %73, %72, %cst_21 {dimension_numbers = #tpu.dot_dimension_numbers<[1], [0], [0], [1], [0, 0, 1, 1], [], []>} : vector<16x144xbf16>, vector<144x64xbf16>, vector<16x64xf32> -> vector<16x64xf32>
    %c0_22 = arith.constant 0 : index
    %c0_23 = arith.constant 0 : index
    %75 = vector.load %arg3[%c0_22, %c0_23] : memref<16x1xf32, #tpu.memory_space<vmem>>, vector<16x1xf32>
    %76 = vector.broadcast %75 : vector<16x1xf32> to vector<16x64xf32>
    %77 = arith.addf %74, %76 : vector<16x64xf32>
    %cst_24 = arith.constant 0.000000e+00 : f32
    %78 = vector.broadcast %cst_24 : f32 to vector<16x64xf32>
    %79 = arith.cmpf oge, %77, %78 : vector<16x64xf32>
    %cst_25 = arith.constant 1.000000e-01 : f32
    %80 = vector.broadcast %cst_25 : f32 to vector<16x64xf32>
    %81 = arith.mulf %80, %77 : vector<16x64xf32>
    %82 = arith.select %79, %77, %81 : vector<16x64xi1>, vector<16x64xf32>
    %83 = vector.shape_cast %82 : vector<16x64xf32> to vector<1x16x64xf32>
    %c0_26 = arith.constant 0 : index
    %c0_27 = arith.constant 0 : index
    %c0_28 = arith.constant 0 : index
    %84 = vector.load %arg4[%c0_26, %c0_27, %c0_28] : memref<1x16x64xf32, #tpu.memory_space<vmem>>, vector<1x16x64xf32>
    tpu.vector_store %arg4[%c0_26, %c0_27, %c0_28], %83 {strides = array<i32>} : memref<1x16x64xf32, #tpu.memory_space<vmem>>, vector<1x16x64xf32>,
    return
  }
  func.func @transform_0(%arg0: i32) -> (i32, i32, i32) {
    %c0_i32 = arith.constant 0 : i32
    %c0_i32_0 = arith.constant 0 : i32
    %c0_i32_1 = arith.constant 0 : i32
    return %arg0, %c0_i32, %c0_i32_0 : i32, i32, i32
  }
  func.func @transform_1(%arg0: i32) -> (i32, i32) {
    %c0_i32 = arith.constant 0 : i32
    %c0_i32_0 = arith.constant 0 : i32
    %c0_i32_1 = arith.constant 0 : i32
    return %c0_i32, %c0_i32_0 : i32, i32
  }
  func.func @transform_2(%arg0: i32) -> (i32, i32) {
    %c0_i32 = arith.constant 0 : i32
    %c0_i32_0 = arith.constant 0 : i32
    %c0_i32_1 = arith.constant 0 : i32
    return %c0_i32, %c0_i32_0 : i32, i32
  }
  func.func @transform_3(%arg0: i32) -> (i32, i32, i32) {
    %c0_i32 = arith.constant 0 : i32
    %c0_i32_0 = arith.constant 0 : i32
    %c0_i32_1 = arith.constant 0 : i32
    return %arg0, %c0_i32, %c0_i32_0 : i32, i32, i32
  }
}

module attributes {stable_mosaic.version = 11 : i64} {
  func.func @_conv3x3_kernel(%arg0: i32, %arg1: memref<1x16x16xf32, #tpu.memory_space<vmem>>, %arg2: memref<16x144xbf16, #tpu.memory_space<vmem>>, %arg3: memref<16x1xf32, #tpu.memory_space<vmem>>, %arg4: memref<1x16x16xf32, #tpu.memory_space<vmem>>) attributes {dimension_semantics = [#tpu.dimension_semantics<parallel>], iteration_bounds = array<i64: 2>, scalar_prefetch = 0 : i64, scratch_operands = 0 : i64, tpu.core_type = #tpu.core_type<tc>, window_params = [{transform_indices = @transform_0, window_bounds = array<i64: 1, 16, 16>}, {pipeline_mode = #tpu.pipeline_mode<synchronous>, transform_indices = @transform_1, window_bounds = array<i64: 16, 144>}, {pipeline_mode = #tpu.pipeline_mode<synchronous>, transform_indices = @transform_2, window_bounds = array<i64: 16, 1>}, {transform_indices = @transform_3, window_bounds = array<i64: 1, 16, 16>}]} {
    %c0 = arith.constant 0 : index
    %c0_0 = arith.constant 0 : index
    %c0_1 = arith.constant 0 : index
    %0 = vector.load %arg1[%c0, %c0_0, %c0_1] : memref<1x16x16xf32, #tpu.memory_space<vmem>>, vector<1x16x16xf32>
    %1 = vector.shape_cast %0 : vector<1x16x16xf32> to vector<16x16xf32>
    %2 = arith.truncf %1 : vector<16x16xf32> to vector<16x16xbf16>
    %3 = tpu.iota {dimensions = array<i32: 1>} : vector<1x16xi32>
    %c4_i32 = arith.constant 4 : i32
    %c0_i32 = arith.constant 0 : i32
    %4 = arith.cmpi eq, %c4_i32, %c0_i32 : i32
    %c1_i32 = arith.constant 1 : i32
    %5 = arith.select %4, %c1_i32, %c4_i32 : i32
    %6 = vector.broadcast %5 : i32 to vector<1x16xi32>
    %7 = arith.remsi %3, %6 : vector<1x16xi32>
    %c0_i32_2 = arith.constant 0 : i32
    %8 = vector.broadcast %c0_i32_2 : i32 to vector<1x16xi32>
    %9 = arith.cmpi ne, %7, %8 : vector<1x16xi32>
    %c0_i32_3 = arith.constant 0 : i32
    %10 = vector.broadcast %c0_i32_3 : i32 to vector<1x16xi32>
    %11 = arith.cmpi slt, %7, %10 : vector<1x16xi32>
    %c0_i32_4 = arith.constant 0 : i32
    %12 = arith.cmpi slt, %5, %c0_i32_4 : i32
    %13 = vector.broadcast %12 : i1 to vector<1x16xi1>
    %14 = vector.broadcast %13 : vector<1x16xi1> to vector<1x16xi1>
    %15 = arith.xori %11, %14 : vector<1x16xi1>
    %16 = arith.andi %15, %9 : vector<1x16xi1>
    %17 = vector.broadcast %5 : i32 to vector<1x16xi32>
    %18 = arith.addi %7, %17 : vector<1x16xi32>
    %19 = arith.select %16, %18, %7 : vector<1x16xi1>, vector<1x16xi32>
    %c1_i32_5 = arith.constant 1 : i32
    %20 = vector.broadcast %c1_i32_5 : i32 to vector<1x16xi32>
    %21 = arith.cmpi sge, %19, %20 : vector<1x16xi32>
    %c2_i32 = arith.constant 2 : i32
    %22 = vector.broadcast %c2_i32 : i32 to vector<1x16xi32>
    %23 = arith.cmpi sle, %19, %22 : vector<1x16xi32>
    %cst = arith.constant 0.000000e+00 : bf16
    %24 = vector.broadcast %cst : bf16 to vector<16x5xbf16>
    %25 = vector.extract_strided_slice %2 {offsets = [0, 0], sizes = [16, 11], strides = [1, 1]} : vector<16x16xbf16> to vector<16x11xbf16>
    %26 = tpu.concatenate %24, %25 in 1 : vector<16x5xbf16>, vector<16x11xbf16> -> vector<16x16xbf16>
    %cst_6 = arith.constant 0.000000e+00 : bf16
    %27 = vector.broadcast %cst_6 : bf16 to vector<16x16xbf16>
    %28 = vector.shape_cast %21 : vector<1x16xi1> to vector<1x16xi1>
    %29 = vector.broadcast %28 : vector<1x16xi1> to vector<16x16xi1>
    %30 = arith.select %29, %26, %27 : vector<16x16xi1>, vector<16x16xbf16>
    %cst_7 = arith.constant 0.000000e+00 : bf16
    %31 = vector.broadcast %cst_7 : bf16 to vector<16x4xbf16>
    %32 = vector.extract_strided_slice %2 {offsets = [0, 0], sizes = [16, 12], strides = [1, 1]} : vector<16x16xbf16> to vector<16x12xbf16>
    %33 = tpu.concatenate %31, %32 in 1 : vector<16x4xbf16>, vector<16x12xbf16> -> vector<16x16xbf16>
    %cst_8 = arith.constant 0.000000e+00 : bf16
    %34 = vector.broadcast %cst_8 : bf16 to vector<16x3xbf16>
    %35 = vector.extract_strided_slice %2 {offsets = [0, 0], sizes = [16, 13], strides = [1, 1]} : vector<16x16xbf16> to vector<16x13xbf16>
    %36 = tpu.concatenate %34, %35 in 1 : vector<16x3xbf16>, vector<16x13xbf16> -> vector<16x16xbf16>
    %cst_9 = arith.constant 0.000000e+00 : bf16
    %37 = vector.broadcast %cst_9 : bf16 to vector<16x16xbf16>
    %38 = vector.shape_cast %23 : vector<1x16xi1> to vector<1x16xi1>
    %39 = vector.broadcast %38 : vector<1x16xi1> to vector<16x16xi1>
    %40 = arith.select %39, %36, %37 : vector<16x16xi1>, vector<16x16xbf16>
    %cst_10 = arith.constant 0.000000e+00 : bf16
    %41 = vector.broadcast %cst_10 : bf16 to vector<16x1xbf16>
    %42 = vector.extract_strided_slice %2 {offsets = [0, 0], sizes = [16, 15], strides = [1, 1]} : vector<16x16xbf16> to vector<16x15xbf16>
    %43 = tpu.concatenate %41, %42 in 1 : vector<16x1xbf16>, vector<16x15xbf16> -> vector<16x16xbf16>
    %cst_11 = arith.constant 0.000000e+00 : bf16
    %44 = vector.broadcast %cst_11 : bf16 to vector<16x16xbf16>
    %45 = vector.shape_cast %21 : vector<1x16xi1> to vector<1x16xi1>
    %46 = vector.broadcast %45 : vector<1x16xi1> to vector<16x16xi1>
    %47 = arith.select %46, %43, %44 : vector<16x16xi1>, vector<16x16xbf16>
    %48 = vector.extract_strided_slice %2 {offsets = [0, 1], sizes = [16, 15], strides = [1, 1]} : vector<16x16xbf16> to vector<16x15xbf16>
    %cst_12 = arith.constant 0.000000e+00 : bf16
    %49 = vector.broadcast %cst_12 : bf16 to vector<16x1xbf16>
    %50 = tpu.concatenate %48, %49 in 1 : vector<16x15xbf16>, vector<16x1xbf16> -> vector<16x16xbf16>
    %cst_13 = arith.constant 0.000000e+00 : bf16
    %51 = vector.broadcast %cst_13 : bf16 to vector<16x16xbf16>
    %52 = vector.shape_cast %23 : vector<1x16xi1> to vector<1x16xi1>
    %53 = vector.broadcast %52 : vector<1x16xi1> to vector<16x16xi1>
    %54 = arith.select %53, %50, %51 : vector<16x16xi1>, vector<16x16xbf16>
    %55 = vector.extract_strided_slice %2 {offsets = [0, 3], sizes = [16, 13], strides = [1, 1]} : vector<16x16xbf16> to vector<16x13xbf16>
    %cst_14 = arith.constant 0.000000e+00 : bf16
    %56 = vector.broadcast %cst_14 : bf16 to vector<16x3xbf16>
    %57 = tpu.concatenate %55, %56 in 1 : vector<16x13xbf16>, vector<16x3xbf16> -> vector<16x16xbf16>
    %cst_15 = arith.constant 0.000000e+00 : bf16
    %58 = vector.broadcast %cst_15 : bf16 to vector<16x16xbf16>
    %59 = vector.shape_cast %21 : vector<1x16xi1> to vector<1x16xi1>
    %60 = vector.broadcast %59 : vector<1x16xi1> to vector<16x16xi1>
    %61 = arith.select %60, %57, %58 : vector<16x16xi1>, vector<16x16xbf16>
    %62 = vector.extract_strided_slice %2 {offsets = [0, 4], sizes = [16, 12], strides = [1, 1]} : vector<16x16xbf16> to vector<16x12xbf16>
    %cst_16 = arith.constant 0.000000e+00 : bf16
    %63 = vector.broadcast %cst_16 : bf16 to vector<16x4xbf16>
    %64 = tpu.concatenate %62, %63 in 1 : vector<16x12xbf16>, vector<16x4xbf16> -> vector<16x16xbf16>
    %65 = vector.extract_strided_slice %2 {offsets = [0, 5], sizes = [16, 11], strides = [1, 1]} : vector<16x16xbf16> to vector<16x11xbf16>
    %cst_17 = arith.constant 0.000000e+00 : bf16
    %66 = vector.broadcast %cst_17 : bf16 to vector<16x5xbf16>
    %67 = tpu.concatenate %65, %66 in 1 : vector<16x11xbf16>, vector<16x5xbf16> -> vector<16x16xbf16>
    %cst_18 = arith.constant 0.000000e+00 : bf16
    %68 = vector.broadcast %cst_18 : bf16 to vector<16x16xbf16>
    %69 = vector.shape_cast %23 : vector<1x16xi1> to vector<1x16xi1>
    %70 = vector.broadcast %69 : vector<1x16xi1> to vector<16x16xi1>
    %71 = arith.select %70, %67, %68 : vector<16x16xi1>, vector<16x16xbf16>
    %72 = tpu.concatenate %30, %33, %40, %47, %2, %54, %61, %64, %71 in 0 : vector<16x16xbf16>, vector<16x16xbf16>, vector<16x16xbf16>, vector<16x16xbf16>, vector<16x16xbf16>, vector<16x16xbf16>, vector<16x16xbf16>, vector<16x16xbf16>, vector<16x16xbf16> -> vector<144x16xbf16>
    %c0_19 = arith.constant 0 : index
    %c0_20 = arith.constant 0 : index
    %73 = vector.load %arg2[%c0_19, %c0_20] : memref<16x144xbf16, #tpu.memory_space<vmem>>, vector<16x144xbf16>
    %cst_21 = arith.constant dense<0.000000e+00> : vector<16x16xf32>
    %74 = tpu.matmul %73, %72, %cst_21 {dimension_numbers = #tpu.dot_dimension_numbers<[1], [0], [0], [1], [0, 0, 1, 1], [], []>} : vector<16x144xbf16>, vector<144x16xbf16>, vector<16x16xf32> -> vector<16x16xf32>
    %c0_22 = arith.constant 0 : index
    %c0_23 = arith.constant 0 : index
    %75 = vector.load %arg3[%c0_22, %c0_23] : memref<16x1xf32, #tpu.memory_space<vmem>>, vector<16x1xf32>
    %76 = vector.broadcast %75 : vector<16x1xf32> to vector<16x16xf32>
    %77 = arith.addf %74, %76 : vector<16x16xf32>
    %78 = vector.shape_cast %77 : vector<16x16xf32> to vector<1x16x16xf32>
    %c0_24 = arith.constant 0 : index
    %c0_25 = arith.constant 0 : index
    %c0_26 = arith.constant 0 : index
    %79 = vector.load %arg4[%c0_24, %c0_25, %c0_26] : memref<1x16x16xf32, #tpu.memory_space<vmem>>, vector<1x16x16xf32>
    tpu.vector_store %arg4[%c0_24, %c0_25, %c0_26], %78 {strides = array<i32>} : memref<1x16x16xf32, #tpu.memory_space<vmem>>, vector<1x16x16xf32>,
    return
  }
  func.func @transform_0(%arg0: i32) -> (i32, i32, i32) {
    %c0_i32 = arith.constant 0 : i32
    %c0_i32_0 = arith.constant 0 : i32
    %c0_i32_1 = arith.constant 0 : i32
    return %arg0, %c0_i32, %c0_i32_0 : i32, i32, i32
  }
  func.func @transform_1(%arg0: i32) -> (i32, i32) {
    %c0_i32 = arith.constant 0 : i32
    %c0_i32_0 = arith.constant 0 : i32
    %c0_i32_1 = arith.constant 0 : i32
    return %c0_i32, %c0_i32_0 : i32, i32
  }
  func.func @transform_2(%arg0: i32) -> (i32, i32) {
    %c0_i32 = arith.constant 0 : i32
    %c0_i32_0 = arith.constant 0 : i32
    %c0_i32_1 = arith.constant 0 : i32
    return %c0_i32, %c0_i32_0 : i32, i32
  }
  func.func @transform_3(%arg0: i32) -> (i32, i32, i32) {
    %c0_i32 = arith.constant 0 : i32
    %c0_i32_0 = arith.constant 0 : i32
    %c0_i32_1 = arith.constant 0 : i32
    return %arg0, %c0_i32, %c0_i32_0 : i32, i32, i32
  }
}

module attributes {stable_mosaic.version = 11 : i64} {
  func.func @_decoder_kernel(%arg0: i32, %arg1: memref<1x16x64xf32, #tpu.memory_space<vmem>>, %arg2: memref<1x16x64xf32, #tpu.memory_space<vmem>>, %arg3: memref<32x288xbf16, #tpu.memory_space<vmem>>, %arg4: memref<32x1xf32, #tpu.memory_space<vmem>>, %arg5: memref<32x288xbf16, #tpu.memory_space<vmem>>, %arg6: memref<32x1xf32, #tpu.memory_space<vmem>>, %arg7: memref<1x32x64xf32, #tpu.memory_space<vmem>>) attributes {dimension_semantics = [#tpu.dimension_semantics<parallel>], iteration_bounds = array<i64: 2>, scalar_prefetch = 0 : i64, scratch_operands = 0 : i64, tpu.core_type = #tpu.core_type<tc>, window_params = [{transform_indices = @transform_0, window_bounds = array<i64: 1, 16, 64>}, {transform_indices = @transform_1, window_bounds = array<i64: 1, 16, 64>}, {pipeline_mode = #tpu.pipeline_mode<synchronous>, transform_indices = @transform_2, window_bounds = array<i64: 32, 288>}, {pipeline_mode = #tpu.pipeline_mode<synchronous>, transform_indices = @transform_3, window_bounds = array<i64: 32, 1>}, {pipeline_mode = #tpu.pipeline_mode<synchronous>, transform_indices = @transform_4, window_bounds = array<i64: 32, 288>}, {pipeline_mode = #tpu.pipeline_mode<synchronous>, transform_indices = @transform_5, window_bounds = array<i64: 32, 1>}, {transform_indices = @transform_6, window_bounds = array<i64: 1, 32, 64>}]} {
    %0 = tpu.iota {dimensions = array<i32: 1>} : vector<1x64xi32>
    %c8_i32 = arith.constant 8 : i32
    %c0_i32 = arith.constant 0 : i32
    %1 = arith.cmpi eq, %c8_i32, %c0_i32 : i32
    %c1_i32 = arith.constant 1 : i32
    %2 = arith.select %1, %c1_i32, %c8_i32 : i32
    %3 = vector.broadcast %2 : i32 to vector<1x64xi32>
    %4 = arith.remsi %0, %3 : vector<1x64xi32>
    %c0_i32_0 = arith.constant 0 : i32
    %5 = vector.broadcast %c0_i32_0 : i32 to vector<1x64xi32>
    %6 = arith.cmpi ne, %4, %5 : vector<1x64xi32>
    %c0_i32_1 = arith.constant 0 : i32
    %7 = vector.broadcast %c0_i32_1 : i32 to vector<1x64xi32>
    %8 = arith.cmpi slt, %4, %7 : vector<1x64xi32>
    %c0_i32_2 = arith.constant 0 : i32
    %9 = arith.cmpi slt, %2, %c0_i32_2 : i32
    %10 = vector.broadcast %9 : i1 to vector<1x64xi1>
    %11 = vector.broadcast %10 : vector<1x64xi1> to vector<1x64xi1>
    %12 = arith.xori %8, %11 : vector<1x64xi1>
    %13 = arith.andi %12, %6 : vector<1x64xi1>
    %14 = vector.broadcast %2 : i32 to vector<1x64xi32>
    %15 = arith.addi %4, %14 : vector<1x64xi32>
    %16 = arith.select %13, %15, %4 : vector<1x64xi1>, vector<1x64xi32>
    %c0 = arith.constant 0 : index
    %c0_3 = arith.constant 0 : index
    %c0_4 = arith.constant 0 : index
    %17 = vector.load %arg1[%c0, %c0_3, %c0_4] : memref<1x16x64xf32, #tpu.memory_space<vmem>>, vector<1x16x64xf32>
    %18 = vector.shape_cast %17 : vector<1x16x64xf32> to vector<16x64xf32>
    %19 = arith.truncf %18 : vector<16x64xf32> to vector<16x64xbf16>
    %c0_5 = arith.constant 0 : index
    %c0_6 = arith.constant 0 : index
    %c0_7 = arith.constant 0 : index
    %20 = vector.load %arg2[%c0_5, %c0_6, %c0_7] : memref<1x16x64xf32, #tpu.memory_space<vmem>>, vector<1x16x64xf32>
    %21 = vector.shape_cast %20 : vector<1x16x64xf32> to vector<16x64xf32>
    %22 = arith.truncf %21 : vector<16x64xf32> to vector<16x64xbf16>
    %c1_i32_8 = arith.constant 1 : i32
    %23 = vector.broadcast %c1_i32_8 : i32 to vector<1x64xi32>
    %24 = arith.cmpi sge, %16, %23 : vector<1x64xi32>
    %c6_i32 = arith.constant 6 : i32
    %25 = vector.broadcast %c6_i32 : i32 to vector<1x64xi32>
    %26 = arith.cmpi sle, %16, %25 : vector<1x64xi32>
    %cst = arith.constant 0.000000e+00 : bf16
    %27 = vector.broadcast %cst : bf16 to vector<16x9xbf16>
    %28 = vector.extract_strided_slice %19 {offsets = [0, 0], sizes = [16, 55], strides = [1, 1]} : vector<16x64xbf16> to vector<16x55xbf16>
    %29 = tpu.concatenate %27, %28 in 1 : vector<16x9xbf16>, vector<16x55xbf16> -> vector<16x64xbf16>
    %cst_9 = arith.constant 0.000000e+00 : bf16
    %30 = vector.broadcast %cst_9 : bf16 to vector<16x64xbf16>
    %31 = vector.shape_cast %24 : vector<1x64xi1> to vector<1x64xi1>
    %32 = vector.broadcast %31 : vector<1x64xi1> to vector<16x64xi1>
    %33 = arith.select %32, %29, %30 : vector<16x64xi1>, vector<16x64xbf16>
    %cst_10 = arith.constant 0.000000e+00 : bf16
    %34 = vector.broadcast %cst_10 : bf16 to vector<16x8xbf16>
    %35 = vector.extract_strided_slice %19 {offsets = [0, 0], sizes = [16, 56], strides = [1, 1]} : vector<16x64xbf16> to vector<16x56xbf16>
    %36 = tpu.concatenate %34, %35 in 1 : vector<16x8xbf16>, vector<16x56xbf16> -> vector<16x64xbf16>
    %cst_11 = arith.constant 0.000000e+00 : bf16
    %37 = vector.broadcast %cst_11 : bf16 to vector<16x7xbf16>
    %38 = vector.extract_strided_slice %19 {offsets = [0, 0], sizes = [16, 57], strides = [1, 1]} : vector<16x64xbf16> to vector<16x57xbf16>
    %39 = tpu.concatenate %37, %38 in 1 : vector<16x7xbf16>, vector<16x57xbf16> -> vector<16x64xbf16>
    %cst_12 = arith.constant 0.000000e+00 : bf16
    %40 = vector.broadcast %cst_12 : bf16 to vector<16x64xbf16>
    %41 = vector.shape_cast %26 : vector<1x64xi1> to vector<1x64xi1>
    %42 = vector.broadcast %41 : vector<1x64xi1> to vector<16x64xi1>
    %43 = arith.select %42, %39, %40 : vector<16x64xi1>, vector<16x64xbf16>
    %cst_13 = arith.constant 0.000000e+00 : bf16
    %44 = vector.broadcast %cst_13 : bf16 to vector<16x1xbf16>
    %45 = vector.extract_strided_slice %19 {offsets = [0, 0], sizes = [16, 63], strides = [1, 1]} : vector<16x64xbf16> to vector<16x63xbf16>
    %46 = tpu.concatenate %44, %45 in 1 : vector<16x1xbf16>, vector<16x63xbf16> -> vector<16x64xbf16>
    %cst_14 = arith.constant 0.000000e+00 : bf16
    %47 = vector.broadcast %cst_14 : bf16 to vector<16x64xbf16>
    %48 = vector.shape_cast %24 : vector<1x64xi1> to vector<1x64xi1>
    %49 = vector.broadcast %48 : vector<1x64xi1> to vector<16x64xi1>
    %50 = arith.select %49, %46, %47 : vector<16x64xi1>, vector<16x64xbf16>
    %51 = vector.extract_strided_slice %19 {offsets = [0, 1], sizes = [16, 63], strides = [1, 1]} : vector<16x64xbf16> to vector<16x63xbf16>
    %cst_15 = arith.constant 0.000000e+00 : bf16
    %52 = vector.broadcast %cst_15 : bf16 to vector<16x1xbf16>
    %53 = tpu.concatenate %51, %52 in 1 : vector<16x63xbf16>, vector<16x1xbf16> -> vector<16x64xbf16>
    %cst_16 = arith.constant 0.000000e+00 : bf16
    %54 = vector.broadcast %cst_16 : bf16 to vector<16x64xbf16>
    %55 = vector.shape_cast %26 : vector<1x64xi1> to vector<1x64xi1>
    %56 = vector.broadcast %55 : vector<1x64xi1> to vector<16x64xi1>
    %57 = arith.select %56, %53, %54 : vector<16x64xi1>, vector<16x64xbf16>
    %58 = vector.extract_strided_slice %19 {offsets = [0, 7], sizes = [16, 57], strides = [1, 1]} : vector<16x64xbf16> to vector<16x57xbf16>
    %cst_17 = arith.constant 0.000000e+00 : bf16
    %59 = vector.broadcast %cst_17 : bf16 to vector<16x7xbf16>
    %60 = tpu.concatenate %58, %59 in 1 : vector<16x57xbf16>, vector<16x7xbf16> -> vector<16x64xbf16>
    %cst_18 = arith.constant 0.000000e+00 : bf16
    %61 = vector.broadcast %cst_18 : bf16 to vector<16x64xbf16>
    %62 = vector.shape_cast %24 : vector<1x64xi1> to vector<1x64xi1>
    %63 = vector.broadcast %62 : vector<1x64xi1> to vector<16x64xi1>
    %64 = arith.select %63, %60, %61 : vector<16x64xi1>, vector<16x64xbf16>
    %65 = vector.extract_strided_slice %19 {offsets = [0, 8], sizes = [16, 56], strides = [1, 1]} : vector<16x64xbf16> to vector<16x56xbf16>
    %cst_19 = arith.constant 0.000000e+00 : bf16
    %66 = vector.broadcast %cst_19 : bf16 to vector<16x8xbf16>
    %67 = tpu.concatenate %65, %66 in 1 : vector<16x56xbf16>, vector<16x8xbf16> -> vector<16x64xbf16>
    %68 = vector.extract_strided_slice %19 {offsets = [0, 9], sizes = [16, 55], strides = [1, 1]} : vector<16x64xbf16> to vector<16x55xbf16>
    %cst_20 = arith.constant 0.000000e+00 : bf16
    %69 = vector.broadcast %cst_20 : bf16 to vector<16x9xbf16>
    %70 = tpu.concatenate %68, %69 in 1 : vector<16x55xbf16>, vector<16x9xbf16> -> vector<16x64xbf16>
    %cst_21 = arith.constant 0.000000e+00 : bf16
    %71 = vector.broadcast %cst_21 : bf16 to vector<16x64xbf16>
    %72 = vector.shape_cast %26 : vector<1x64xi1> to vector<1x64xi1>
    %73 = vector.broadcast %72 : vector<1x64xi1> to vector<16x64xi1>
    %74 = arith.select %73, %70, %71 : vector<16x64xi1>, vector<16x64xbf16>
    %c1_i32_22 = arith.constant 1 : i32
    %75 = vector.broadcast %c1_i32_22 : i32 to vector<1x64xi32>
    %76 = arith.cmpi sge, %16, %75 : vector<1x64xi32>
    %c6_i32_23 = arith.constant 6 : i32
    %77 = vector.broadcast %c6_i32_23 : i32 to vector<1x64xi32>
    %78 = arith.cmpi sle, %16, %77 : vector<1x64xi32>
    %cst_24 = arith.constant 0.000000e+00 : bf16
    %79 = vector.broadcast %cst_24 : bf16 to vector<16x9xbf16>
    %80 = vector.extract_strided_slice %22 {offsets = [0, 0], sizes = [16, 55], strides = [1, 1]} : vector<16x64xbf16> to vector<16x55xbf16>
    %81 = tpu.concatenate %79, %80 in 1 : vector<16x9xbf16>, vector<16x55xbf16> -> vector<16x64xbf16>
    %cst_25 = arith.constant 0.000000e+00 : bf16
    %82 = vector.broadcast %cst_25 : bf16 to vector<16x64xbf16>
    %83 = vector.shape_cast %76 : vector<1x64xi1> to vector<1x64xi1>
    %84 = vector.broadcast %83 : vector<1x64xi1> to vector<16x64xi1>
    %85 = arith.select %84, %81, %82 : vector<16x64xi1>, vector<16x64xbf16>
    %cst_26 = arith.constant 0.000000e+00 : bf16
    %86 = vector.broadcast %cst_26 : bf16 to vector<16x8xbf16>
    %87 = vector.extract_strided_slice %22 {offsets = [0, 0], sizes = [16, 56], strides = [1, 1]} : vector<16x64xbf16> to vector<16x56xbf16>
    %88 = tpu.concatenate %86, %87 in 1 : vector<16x8xbf16>, vector<16x56xbf16> -> vector<16x64xbf16>
    %cst_27 = arith.constant 0.000000e+00 : bf16
    %89 = vector.broadcast %cst_27 : bf16 to vector<16x7xbf16>
    %90 = vector.extract_strided_slice %22 {offsets = [0, 0], sizes = [16, 57], strides = [1, 1]} : vector<16x64xbf16> to vector<16x57xbf16>
    %91 = tpu.concatenate %89, %90 in 1 : vector<16x7xbf16>, vector<16x57xbf16> -> vector<16x64xbf16>
    %cst_28 = arith.constant 0.000000e+00 : bf16
    %92 = vector.broadcast %cst_28 : bf16 to vector<16x64xbf16>
    %93 = vector.shape_cast %78 : vector<1x64xi1> to vector<1x64xi1>
    %94 = vector.broadcast %93 : vector<1x64xi1> to vector<16x64xi1>
    %95 = arith.select %94, %91, %92 : vector<16x64xi1>, vector<16x64xbf16>
    %cst_29 = arith.constant 0.000000e+00 : bf16
    %96 = vector.broadcast %cst_29 : bf16 to vector<16x1xbf16>
    %97 = vector.extract_strided_slice %22 {offsets = [0, 0], sizes = [16, 63], strides = [1, 1]} : vector<16x64xbf16> to vector<16x63xbf16>
    %98 = tpu.concatenate %96, %97 in 1 : vector<16x1xbf16>, vector<16x63xbf16> -> vector<16x64xbf16>
    %cst_30 = arith.constant 0.000000e+00 : bf16
    %99 = vector.broadcast %cst_30 : bf16 to vector<16x64xbf16>
    %100 = vector.shape_cast %76 : vector<1x64xi1> to vector<1x64xi1>
    %101 = vector.broadcast %100 : vector<1x64xi1> to vector<16x64xi1>
    %102 = arith.select %101, %98, %99 : vector<16x64xi1>, vector<16x64xbf16>
    %103 = vector.extract_strided_slice %22 {offsets = [0, 1], sizes = [16, 63], strides = [1, 1]} : vector<16x64xbf16> to vector<16x63xbf16>
    %cst_31 = arith.constant 0.000000e+00 : bf16
    %104 = vector.broadcast %cst_31 : bf16 to vector<16x1xbf16>
    %105 = tpu.concatenate %103, %104 in 1 : vector<16x63xbf16>, vector<16x1xbf16> -> vector<16x64xbf16>
    %cst_32 = arith.constant 0.000000e+00 : bf16
    %106 = vector.broadcast %cst_32 : bf16 to vector<16x64xbf16>
    %107 = vector.shape_cast %78 : vector<1x64xi1> to vector<1x64xi1>
    %108 = vector.broadcast %107 : vector<1x64xi1> to vector<16x64xi1>
    %109 = arith.select %108, %105, %106 : vector<16x64xi1>, vector<16x64xbf16>
    %110 = vector.extract_strided_slice %22 {offsets = [0, 7], sizes = [16, 57], strides = [1, 1]} : vector<16x64xbf16> to vector<16x57xbf16>
    %cst_33 = arith.constant 0.000000e+00 : bf16
    %111 = vector.broadcast %cst_33 : bf16 to vector<16x7xbf16>
    %112 = tpu.concatenate %110, %111 in 1 : vector<16x57xbf16>, vector<16x7xbf16> -> vector<16x64xbf16>
    %cst_34 = arith.constant 0.000000e+00 : bf16
    %113 = vector.broadcast %cst_34 : bf16 to vector<16x64xbf16>
    %114 = vector.shape_cast %76 : vector<1x64xi1> to vector<1x64xi1>
    %115 = vector.broadcast %114 : vector<1x64xi1> to vector<16x64xi1>
    %116 = arith.select %115, %112, %113 : vector<16x64xi1>, vector<16x64xbf16>
    %117 = vector.extract_strided_slice %22 {offsets = [0, 8], sizes = [16, 56], strides = [1, 1]} : vector<16x64xbf16> to vector<16x56xbf16>
    %cst_35 = arith.constant 0.000000e+00 : bf16
    %118 = vector.broadcast %cst_35 : bf16 to vector<16x8xbf16>
    %119 = tpu.concatenate %117, %118 in 1 : vector<16x56xbf16>, vector<16x8xbf16> -> vector<16x64xbf16>
    %120 = vector.extract_strided_slice %22 {offsets = [0, 9], sizes = [16, 55], strides = [1, 1]} : vector<16x64xbf16> to vector<16x55xbf16>
    %cst_36 = arith.constant 0.000000e+00 : bf16
    %121 = vector.broadcast %cst_36 : bf16 to vector<16x9xbf16>
    %122 = tpu.concatenate %120, %121 in 1 : vector<16x55xbf16>, vector<16x9xbf16> -> vector<16x64xbf16>
    %cst_37 = arith.constant 0.000000e+00 : bf16
    %123 = vector.broadcast %cst_37 : bf16 to vector<16x64xbf16>
    %124 = vector.shape_cast %78 : vector<1x64xi1> to vector<1x64xi1>
    %125 = vector.broadcast %124 : vector<1x64xi1> to vector<16x64xi1>
    %126 = arith.select %125, %122, %123 : vector<16x64xi1>, vector<16x64xbf16>
    %127 = tpu.concatenate %33, %36, %43, %50, %19, %57, %64, %67, %74, %85, %88, %95, %102, %22, %109, %116 in 0 : vector<16x64xbf16>, vector<16x64xbf16>, vector<16x64xbf16>, vector<16x64xbf16>, vector<16x64xbf16>, vector<16x64xbf16>, vector<16x64xbf16>, vector<16x64xbf16>, vector<16x64xbf16>, vector<16x64xbf16>, vector<16x64xbf16>, vector<16x64xbf16>, vector<16x64xbf16>, vector<16x64xbf16>, vector<16x64xbf16>, vector<16x64xbf16> -> vector<256x64xbf16>
    %128 = tpu.concatenate %119, %126 in 0 : vector<16x64xbf16>, vector<16x64xbf16> -> vector<32x64xbf16>
    %129 = tpu.concatenate %127, %128 in 0 : vector<256x64xbf16>, vector<32x64xbf16> -> vector<288x64xbf16>
    %c0_38 = arith.constant 0 : index
    %c0_39 = arith.constant 0 : index
    %130 = vector.load %arg3[%c0_38, %c0_39] : memref<32x288xbf16, #tpu.memory_space<vmem>>, vector<32x288xbf16>
    %cst_40 = arith.constant dense<0.000000e+00> : vector<32x64xf32>
    %131 = tpu.matmul %130, %129, %cst_40 {dimension_numbers = #tpu.dot_dimension_numbers<[1], [0], [0], [1], [0, 0, 1, 1], [], []>} : vector<32x288xbf16>, vector<288x64xbf16>, vector<32x64xf32> -> vector<32x64xf32>
    %c0_41 = arith.constant 0 : index
    %c0_42 = arith.constant 0 : index
    %132 = vector.load %arg4[%c0_41, %c0_42] : memref<32x1xf32, #tpu.memory_space<vmem>>, vector<32x1xf32>
    %133 = vector.broadcast %132 : vector<32x1xf32> to vector<32x64xf32>
    %134 = arith.addf %131, %133 : vector<32x64xf32>
    %cst_43 = arith.constant 0.000000e+00 : f32
    %135 = vector.broadcast %cst_43 : f32 to vector<32x64xf32>
    %136 = arith.cmpf oge, %134, %135 : vector<32x64xf32>
    %cst_44 = arith.constant 1.000000e-01 : f32
    %137 = vector.broadcast %cst_44 : f32 to vector<32x64xf32>
    %138 = arith.mulf %137, %134 : vector<32x64xf32>
    %139 = arith.select %136, %134, %138 : vector<32x64xi1>, vector<32x64xf32>
    %140 = arith.truncf %139 : vector<32x64xf32> to vector<32x64xbf16>
    %c1_i32_45 = arith.constant 1 : i32
    %141 = vector.broadcast %c1_i32_45 : i32 to vector<1x64xi32>
    %142 = arith.cmpi sge, %16, %141 : vector<1x64xi32>
    %c6_i32_46 = arith.constant 6 : i32
    %143 = vector.broadcast %c6_i32_46 : i32 to vector<1x64xi32>
    %144 = arith.cmpi sle, %16, %143 : vector<1x64xi32>
    %cst_47 = arith.constant 0.000000e+00 : bf16
    %145 = vector.broadcast %cst_47 : bf16 to vector<32x9xbf16>
    %146 = vector.extract_strided_slice %140 {offsets = [0, 0], sizes = [32, 55], strides = [1, 1]} : vector<32x64xbf16> to vector<32x55xbf16>
    %147 = tpu.concatenate %145, %146 in 1 : vector<32x9xbf16>, vector<32x55xbf16> -> vector<32x64xbf16>
    %cst_48 = arith.constant 0.000000e+00 : bf16
    %148 = vector.broadcast %cst_48 : bf16 to vector<32x64xbf16>
    %149 = vector.shape_cast %142 : vector<1x64xi1> to vector<1x64xi1>
    %150 = vector.broadcast %149 : vector<1x64xi1> to vector<32x64xi1>
    %151 = arith.select %150, %147, %148 : vector<32x64xi1>, vector<32x64xbf16>
    %cst_49 = arith.constant 0.000000e+00 : bf16
    %152 = vector.broadcast %cst_49 : bf16 to vector<32x8xbf16>
    %153 = vector.extract_strided_slice %140 {offsets = [0, 0], sizes = [32, 56], strides = [1, 1]} : vector<32x64xbf16> to vector<32x56xbf16>
    %154 = tpu.concatenate %152, %153 in 1 : vector<32x8xbf16>, vector<32x56xbf16> -> vector<32x64xbf16>
    %cst_50 = arith.constant 0.000000e+00 : bf16
    %155 = vector.broadcast %cst_50 : bf16 to vector<32x7xbf16>
    %156 = vector.extract_strided_slice %140 {offsets = [0, 0], sizes = [32, 57], strides = [1, 1]} : vector<32x64xbf16> to vector<32x57xbf16>
    %157 = tpu.concatenate %155, %156 in 1 : vector<32x7xbf16>, vector<32x57xbf16> -> vector<32x64xbf16>
    %cst_51 = arith.constant 0.000000e+00 : bf16
    %158 = vector.broadcast %cst_51 : bf16 to vector<32x64xbf16>
    %159 = vector.shape_cast %144 : vector<1x64xi1> to vector<1x64xi1>
    %160 = vector.broadcast %159 : vector<1x64xi1> to vector<32x64xi1>
    %161 = arith.select %160, %157, %158 : vector<32x64xi1>, vector<32x64xbf16>
    %cst_52 = arith.constant 0.000000e+00 : bf16
    %162 = vector.broadcast %cst_52 : bf16 to vector<32x1xbf16>
    %163 = vector.extract_strided_slice %140 {offsets = [0, 0], sizes = [32, 63], strides = [1, 1]} : vector<32x64xbf16> to vector<32x63xbf16>
    %164 = tpu.concatenate %162, %163 in 1 : vector<32x1xbf16>, vector<32x63xbf16> -> vector<32x64xbf16>
    %cst_53 = arith.constant 0.000000e+00 : bf16
    %165 = vector.broadcast %cst_53 : bf16 to vector<32x64xbf16>
    %166 = vector.shape_cast %142 : vector<1x64xi1> to vector<1x64xi1>
    %167 = vector.broadcast %166 : vector<1x64xi1> to vector<32x64xi1>
    %168 = arith.select %167, %164, %165 : vector<32x64xi1>, vector<32x64xbf16>
    %169 = vector.extract_strided_slice %140 {offsets = [0, 1], sizes = [32, 63], strides = [1, 1]} : vector<32x64xbf16> to vector<32x63xbf16>
    %cst_54 = arith.constant 0.000000e+00 : bf16
    %170 = vector.broadcast %cst_54 : bf16 to vector<32x1xbf16>
    %171 = tpu.concatenate %169, %170 in 1 : vector<32x63xbf16>, vector<32x1xbf16> -> vector<32x64xbf16>
    %cst_55 = arith.constant 0.000000e+00 : bf16
    %172 = vector.broadcast %cst_55 : bf16 to vector<32x64xbf16>
    %173 = vector.shape_cast %144 : vector<1x64xi1> to vector<1x64xi1>
    %174 = vector.broadcast %173 : vector<1x64xi1> to vector<32x64xi1>
    %175 = arith.select %174, %171, %172 : vector<32x64xi1>, vector<32x64xbf16>
    %176 = vector.extract_strided_slice %140 {offsets = [0, 7], sizes = [32, 57], strides = [1, 1]} : vector<32x64xbf16> to vector<32x57xbf16>
    %cst_56 = arith.constant 0.000000e+00 : bf16
    %177 = vector.broadcast %cst_56 : bf16 to vector<32x7xbf16>
    %178 = tpu.concatenate %176, %177 in 1 : vector<32x57xbf16>, vector<32x7xbf16> -> vector<32x64xbf16>
    %cst_57 = arith.constant 0.000000e+00 : bf16
    %179 = vector.broadcast %cst_57 : bf16 to vector<32x64xbf16>
    %180 = vector.shape_cast %142 : vector<1x64xi1> to vector<1x64xi1>
    %181 = vector.broadcast %180 : vector<1x64xi1> to vector<32x64xi1>
    %182 = arith.select %181, %178, %179 : vector<32x64xi1>, vector<32x64xbf16>
    %183 = vector.extract_strided_slice %140 {offsets = [0, 8], sizes = [32, 56], strides = [1, 1]} : vector<32x64xbf16> to vector<32x56xbf16>
    %cst_58 = arith.constant 0.000000e+00 : bf16
    %184 = vector.broadcast %cst_58 : bf16 to vector<32x8xbf16>
    %185 = tpu.concatenate %183, %184 in 1 : vector<32x56xbf16>, vector<32x8xbf16> -> vector<32x64xbf16>
    %186 = vector.extract_strided_slice %140 {offsets = [0, 9], sizes = [32, 55], strides = [1, 1]} : vector<32x64xbf16> to vector<32x55xbf16>
    %cst_59 = arith.constant 0.000000e+00 : bf16
    %187 = vector.broadcast %cst_59 : bf16 to vector<32x9xbf16>
    %188 = tpu.concatenate %186, %187 in 1 : vector<32x55xbf16>, vector<32x9xbf16> -> vector<32x64xbf16>
    %cst_60 = arith.constant 0.000000e+00 : bf16
    %189 = vector.broadcast %cst_60 : bf16 to vector<32x64xbf16>
    %190 = vector.shape_cast %144 : vector<1x64xi1> to vector<1x64xi1>
    %191 = vector.broadcast %190 : vector<1x64xi1> to vector<32x64xi1>
    %192 = arith.select %191, %188, %189 : vector<32x64xi1>, vector<32x64xbf16>
    %193 = tpu.concatenate %151, %154, %161, %168, %140, %175, %182, %185, %192 in 0 : vector<32x64xbf16>, vector<32x64xbf16>, vector<32x64xbf16>, vector<32x64xbf16>, vector<32x64xbf16>, vector<32x64xbf16>, vector<32x64xbf16>, vector<32x64xbf16>, vector<32x64xbf16> -> vector<288x64xbf16>
    %c0_61 = arith.constant 0 : index
    %c0_62 = arith.constant 0 : index
    %194 = vector.load %arg5[%c0_61, %c0_62] : memref<32x288xbf16, #tpu.memory_space<vmem>>, vector<32x288xbf16>
    %cst_63 = arith.constant dense<0.000000e+00> : vector<32x64xf32>
    %195 = tpu.matmul %194, %193, %cst_63 {dimension_numbers = #tpu.dot_dimension_numbers<[1], [0], [0], [1], [0, 0, 1, 1], [], []>} : vector<32x288xbf16>, vector<288x64xbf16>, vector<32x64xf32> -> vector<32x64xf32>
    %c0_64 = arith.constant 0 : index
    %c0_65 = arith.constant 0 : index
    %196 = vector.load %arg6[%c0_64, %c0_65] : memref<32x1xf32, #tpu.memory_space<vmem>>, vector<32x1xf32>
    %197 = vector.broadcast %196 : vector<32x1xf32> to vector<32x64xf32>
    %198 = arith.addf %195, %197 : vector<32x64xf32>
    %cst_66 = arith.constant 0.000000e+00 : f32
    %199 = vector.broadcast %cst_66 : f32 to vector<32x64xf32>
    %200 = arith.cmpf oge, %198, %199 : vector<32x64xf32>
    %cst_67 = arith.constant 1.000000e-01 : f32
    %201 = vector.broadcast %cst_67 : f32 to vector<32x64xf32>
    %202 = arith.mulf %201, %198 : vector<32x64xf32>
    %203 = arith.select %200, %198, %202 : vector<32x64xi1>, vector<32x64xf32>
    %204 = vector.shape_cast %203 : vector<32x64xf32> to vector<1x32x64xf32>
    %c0_68 = arith.constant 0 : index
    %c0_69 = arith.constant 0 : index
    %c0_70 = arith.constant 0 : index
    %205 = vector.load %arg7[%c0_68, %c0_69, %c0_70] : memref<1x32x64xf32, #tpu.memory_space<vmem>>, vector<1x32x64xf32>
    tpu.vector_store %arg7[%c0_68, %c0_69, %c0_70], %204 {strides = array<i32>} : memref<1x32x64xf32, #tpu.memory_space<vmem>>, vector<1x32x64xf32>,
    return
  }
  func.func @transform_0(%arg0: i32) -> (i32, i32, i32) {
    %c0_i32 = arith.constant 0 : i32
    %c0_i32_0 = arith.constant 0 : i32
    %c0_i32_1 = arith.constant 0 : i32
    return %arg0, %c0_i32, %c0_i32_0 : i32, i32, i32
  }
  func.func @transform_1(%arg0: i32) -> (i32, i32, i32) {
    %c0_i32 = arith.constant 0 : i32
    %c0_i32_0 = arith.constant 0 : i32
    %c0_i32_1 = arith.constant 0 : i32
    return %arg0, %c0_i32, %c0_i32_0 : i32, i32, i32
  }
  func.func @transform_2(%arg0: i32) -> (i32, i32) {
    %c0_i32 = arith.constant 0 : i32
    %c0_i32_0 = arith.constant 0 : i32
    %c0_i32_1 = arith.constant 0 : i32
    return %c0_i32, %c0_i32_0 : i32, i32
  }
  func.func @transform_3(%arg0: i32) -> (i32, i32) {
    %c0_i32 = arith.constant 0 : i32
    %c0_i32_0 = arith.constant 0 : i32
    %c0_i32_1 = arith.constant 0 : i32
    return %c0_i32, %c0_i32_0 : i32, i32
  }
  func.func @transform_4(%arg0: i32) -> (i32, i32) {
    %c0_i32 = arith.constant 0 : i32
    %c0_i32_0 = arith.constant 0 : i32
    %c0_i32_1 = arith.constant 0 : i32
    return %c0_i32, %c0_i32_0 : i32, i32
  }
  func.func @transform_5(%arg0: i32) -> (i32, i32) {
    %c0_i32 = arith.constant 0 : i32
    %c0_i32_0 = arith.constant 0 : i32
    %c0_i32_1 = arith.constant 0 : i32
    return %c0_i32, %c0_i32_0 : i32, i32
  }
  func.func @transform_6(%arg0: i32) -> (i32, i32, i32) {
    %c0_i32 = arith.constant 0 : i32
    %c0_i32_0 = arith.constant 0 : i32
    %c0_i32_1 = arith.constant 0 : i32
    return %arg0, %c0_i32, %c0_i32_0 : i32, i32, i32
  }
}

module attributes {stable_mosaic.version = 11 : i64} {
  func.func @_decoder_kernel(%arg0: i32, %arg1: memref<1x32x256xf32, #tpu.memory_space<vmem>>, %arg2: memref<1x16x256xf32, #tpu.memory_space<vmem>>, %arg3: memref<32x432xbf16, #tpu.memory_space<vmem>>, %arg4: memref<32x1xf32, #tpu.memory_space<vmem>>, %arg5: memref<32x288xbf16, #tpu.memory_space<vmem>>, %arg6: memref<32x1xf32, #tpu.memory_space<vmem>>, %arg7: memref<3x288xbf16, #tpu.memory_space<vmem>>, %arg8: memref<3x1xf32, #tpu.memory_space<vmem>>, %arg9: memref<1x3x256xf32, #tpu.memory_space<vmem>>) attributes {dimension_semantics = [#tpu.dimension_semantics<parallel>], iteration_bounds = array<i64: 2>, scalar_prefetch = 0 : i64, scratch_operands = 0 : i64, tpu.core_type = #tpu.core_type<tc>, window_params = [{transform_indices = @transform_0, window_bounds = array<i64: 1, 32, 256>}, {transform_indices = @transform_1, window_bounds = array<i64: 1, 16, 256>}, {pipeline_mode = #tpu.pipeline_mode<synchronous>, transform_indices = @transform_2, window_bounds = array<i64: 32, 432>}, {pipeline_mode = #tpu.pipeline_mode<synchronous>, transform_indices = @transform_3, window_bounds = array<i64: 32, 1>}, {pipeline_mode = #tpu.pipeline_mode<synchronous>, transform_indices = @transform_4, window_bounds = array<i64: 32, 288>}, {pipeline_mode = #tpu.pipeline_mode<synchronous>, transform_indices = @transform_5, window_bounds = array<i64: 32, 1>}, {pipeline_mode = #tpu.pipeline_mode<synchronous>, transform_indices = @transform_6, window_bounds = array<i64: 3, 288>}, {pipeline_mode = #tpu.pipeline_mode<synchronous>, transform_indices = @transform_7, window_bounds = array<i64: 3, 1>}, {transform_indices = @transform_8, window_bounds = array<i64: 1, 3, 256>}]} {
    %0 = tpu.iota {dimensions = array<i32: 1>} : vector<1x256xi32>
    %c16_i32 = arith.constant 16 : i32
    %c0_i32 = arith.constant 0 : i32
    %1 = arith.cmpi eq, %c16_i32, %c0_i32 : i32
    %c1_i32 = arith.constant 1 : i32
    %2 = arith.select %1, %c1_i32, %c16_i32 : i32
    %3 = vector.broadcast %2 : i32 to vector<1x256xi32>
    %4 = arith.remsi %0, %3 : vector<1x256xi32>
    %c0_i32_0 = arith.constant 0 : i32
    %5 = vector.broadcast %c0_i32_0 : i32 to vector<1x256xi32>
    %6 = arith.cmpi ne, %4, %5 : vector<1x256xi32>
    %c0_i32_1 = arith.constant 0 : i32
    %7 = vector.broadcast %c0_i32_1 : i32 to vector<1x256xi32>
    %8 = arith.cmpi slt, %4, %7 : vector<1x256xi32>
    %c0_i32_2 = arith.constant 0 : i32
    %9 = arith.cmpi slt, %2, %c0_i32_2 : i32
    %10 = vector.broadcast %9 : i1 to vector<1x256xi1>
    %11 = vector.broadcast %10 : vector<1x256xi1> to vector<1x256xi1>
    %12 = arith.xori %8, %11 : vector<1x256xi1>
    %13 = arith.andi %12, %6 : vector<1x256xi1>
    %14 = vector.broadcast %2 : i32 to vector<1x256xi32>
    %15 = arith.addi %4, %14 : vector<1x256xi32>
    %16 = arith.select %13, %15, %4 : vector<1x256xi1>, vector<1x256xi32>
    %c0 = arith.constant 0 : index
    %c0_3 = arith.constant 0 : index
    %c0_4 = arith.constant 0 : index
    %17 = vector.load %arg1[%c0, %c0_3, %c0_4] : memref<1x32x256xf32, #tpu.memory_space<vmem>>, vector<1x32x256xf32>
    %18 = vector.shape_cast %17 : vector<1x32x256xf32> to vector<32x256xf32>
    %19 = arith.truncf %18 : vector<32x256xf32> to vector<32x256xbf16>
    %c0_5 = arith.constant 0 : index
    %c0_6 = arith.constant 0 : index
    %c0_7 = arith.constant 0 : index
    %20 = vector.load %arg2[%c0_5, %c0_6, %c0_7] : memref<1x16x256xf32, #tpu.memory_space<vmem>>, vector<1x16x256xf32>
    %21 = vector.shape_cast %20 : vector<1x16x256xf32> to vector<16x256xf32>
    %22 = arith.truncf %21 : vector<16x256xf32> to vector<16x256xbf16>
    %c1_i32_8 = arith.constant 1 : i32
    %23 = vector.broadcast %c1_i32_8 : i32 to vector<1x256xi32>
    %24 = arith.cmpi sge, %16, %23 : vector<1x256xi32>
    %c14_i32 = arith.constant 14 : i32
    %25 = vector.broadcast %c14_i32 : i32 to vector<1x256xi32>
    %26 = arith.cmpi sle, %16, %25 : vector<1x256xi32>
    %cst = arith.constant 0.000000e+00 : bf16
    %27 = vector.broadcast %cst : bf16 to vector<32x17xbf16>
    %28 = vector.extract_strided_slice %19 {offsets = [0, 0], sizes = [32, 239], strides = [1, 1]} : vector<32x256xbf16> to vector<32x239xbf16>
    %29 = tpu.concatenate %27, %28 in 1 : vector<32x17xbf16>, vector<32x239xbf16> -> vector<32x256xbf16>
    %cst_9 = arith.constant 0.000000e+00 : bf16
    %30 = vector.broadcast %cst_9 : bf16 to vector<32x256xbf16>
    %31 = vector.shape_cast %24 : vector<1x256xi1> to vector<1x256xi1>
    %32 = vector.broadcast %31 : vector<1x256xi1> to vector<32x256xi1>
    %33 = arith.select %32, %29, %30 : vector<32x256xi1>, vector<32x256xbf16>
    %cst_10 = arith.constant 0.000000e+00 : bf16
    %34 = vector.broadcast %cst_10 : bf16 to vector<32x16xbf16>
    %35 = vector.extract_strided_slice %19 {offsets = [0, 0], sizes = [32, 240], strides = [1, 1]} : vector<32x256xbf16> to vector<32x240xbf16>
    %36 = tpu.concatenate %34, %35 in 1 : vector<32x16xbf16>, vector<32x240xbf16> -> vector<32x256xbf16>
    %cst_11 = arith.constant 0.000000e+00 : bf16
    %37 = vector.broadcast %cst_11 : bf16 to vector<32x15xbf16>
    %38 = vector.extract_strided_slice %19 {offsets = [0, 0], sizes = [32, 241], strides = [1, 1]} : vector<32x256xbf16> to vector<32x241xbf16>
    %39 = tpu.concatenate %37, %38 in 1 : vector<32x15xbf16>, vector<32x241xbf16> -> vector<32x256xbf16>
    %cst_12 = arith.constant 0.000000e+00 : bf16
    %40 = vector.broadcast %cst_12 : bf16 to vector<32x256xbf16>
    %41 = vector.shape_cast %26 : vector<1x256xi1> to vector<1x256xi1>
    %42 = vector.broadcast %41 : vector<1x256xi1> to vector<32x256xi1>
    %43 = arith.select %42, %39, %40 : vector<32x256xi1>, vector<32x256xbf16>
    %cst_13 = arith.constant 0.000000e+00 : bf16
    %44 = vector.broadcast %cst_13 : bf16 to vector<32x1xbf16>
    %45 = vector.extract_strided_slice %19 {offsets = [0, 0], sizes = [32, 255], strides = [1, 1]} : vector<32x256xbf16> to vector<32x255xbf16>
    %46 = tpu.concatenate %44, %45 in 1 : vector<32x1xbf16>, vector<32x255xbf16> -> vector<32x256xbf16>
    %cst_14 = arith.constant 0.000000e+00 : bf16
    %47 = vector.broadcast %cst_14 : bf16 to vector<32x256xbf16>
    %48 = vector.shape_cast %24 : vector<1x256xi1> to vector<1x256xi1>
    %49 = vector.broadcast %48 : vector<1x256xi1> to vector<32x256xi1>
    %50 = arith.select %49, %46, %47 : vector<32x256xi1>, vector<32x256xbf16>
    %51 = vector.extract_strided_slice %19 {offsets = [0, 1], sizes = [32, 255], strides = [1, 1]} : vector<32x256xbf16> to vector<32x255xbf16>
    %cst_15 = arith.constant 0.000000e+00 : bf16
    %52 = vector.broadcast %cst_15 : bf16 to vector<32x1xbf16>
    %53 = tpu.concatenate %51, %52 in 1 : vector<32x255xbf16>, vector<32x1xbf16> -> vector<32x256xbf16>
    %cst_16 = arith.constant 0.000000e+00 : bf16
    %54 = vector.broadcast %cst_16 : bf16 to vector<32x256xbf16>
    %55 = vector.shape_cast %26 : vector<1x256xi1> to vector<1x256xi1>
    %56 = vector.broadcast %55 : vector<1x256xi1> to vector<32x256xi1>
    %57 = arith.select %56, %53, %54 : vector<32x256xi1>, vector<32x256xbf16>
    %58 = vector.extract_strided_slice %19 {offsets = [0, 15], sizes = [32, 241], strides = [1, 1]} : vector<32x256xbf16> to vector<32x241xbf16>
    %cst_17 = arith.constant 0.000000e+00 : bf16
    %59 = vector.broadcast %cst_17 : bf16 to vector<32x15xbf16>
    %60 = tpu.concatenate %58, %59 in 1 : vector<32x241xbf16>, vector<32x15xbf16> -> vector<32x256xbf16>
    %cst_18 = arith.constant 0.000000e+00 : bf16
    %61 = vector.broadcast %cst_18 : bf16 to vector<32x256xbf16>
    %62 = vector.shape_cast %24 : vector<1x256xi1> to vector<1x256xi1>
    %63 = vector.broadcast %62 : vector<1x256xi1> to vector<32x256xi1>
    %64 = arith.select %63, %60, %61 : vector<32x256xi1>, vector<32x256xbf16>
    %65 = vector.extract_strided_slice %19 {offsets = [0, 16], sizes = [32, 240], strides = [1, 1]} : vector<32x256xbf16> to vector<32x240xbf16>
    %cst_19 = arith.constant 0.000000e+00 : bf16
    %66 = vector.broadcast %cst_19 : bf16 to vector<32x16xbf16>
    %67 = tpu.concatenate %65, %66 in 1 : vector<32x240xbf16>, vector<32x16xbf16> -> vector<32x256xbf16>
    %68 = vector.extract_strided_slice %19 {offsets = [0, 17], sizes = [32, 239], strides = [1, 1]} : vector<32x256xbf16> to vector<32x239xbf16>
    %cst_20 = arith.constant 0.000000e+00 : bf16
    %69 = vector.broadcast %cst_20 : bf16 to vector<32x17xbf16>
    %70 = tpu.concatenate %68, %69 in 1 : vector<32x239xbf16>, vector<32x17xbf16> -> vector<32x256xbf16>
    %cst_21 = arith.constant 0.000000e+00 : bf16
    %71 = vector.broadcast %cst_21 : bf16 to vector<32x256xbf16>
    %72 = vector.shape_cast %26 : vector<1x256xi1> to vector<1x256xi1>
    %73 = vector.broadcast %72 : vector<1x256xi1> to vector<32x256xi1>
    %74 = arith.select %73, %70, %71 : vector<32x256xi1>, vector<32x256xbf16>
    %c1_i32_22 = arith.constant 1 : i32
    %75 = vector.broadcast %c1_i32_22 : i32 to vector<1x256xi32>
    %76 = arith.cmpi sge, %16, %75 : vector<1x256xi32>
    %c14_i32_23 = arith.constant 14 : i32
    %77 = vector.broadcast %c14_i32_23 : i32 to vector<1x256xi32>
    %78 = arith.cmpi sle, %16, %77 : vector<1x256xi32>
    %cst_24 = arith.constant 0.000000e+00 : bf16
    %79 = vector.broadcast %cst_24 : bf16 to vector<16x17xbf16>
    %80 = vector.extract_strided_slice %22 {offsets = [0, 0], sizes = [16, 239], strides = [1, 1]} : vector<16x256xbf16> to vector<16x239xbf16>
    %81 = tpu.concatenate %79, %80 in 1 : vector<16x17xbf16>, vector<16x239xbf16> -> vector<16x256xbf16>
    %cst_25 = arith.constant 0.000000e+00 : bf16
    %82 = vector.broadcast %cst_25 : bf16 to vector<16x256xbf16>
    %83 = vector.shape_cast %76 : vector<1x256xi1> to vector<1x256xi1>
    %84 = vector.broadcast %83 : vector<1x256xi1> to vector<16x256xi1>
    %85 = arith.select %84, %81, %82 : vector<16x256xi1>, vector<16x256xbf16>
    %cst_26 = arith.constant 0.000000e+00 : bf16
    %86 = vector.broadcast %cst_26 : bf16 to vector<16x16xbf16>
    %87 = vector.extract_strided_slice %22 {offsets = [0, 0], sizes = [16, 240], strides = [1, 1]} : vector<16x256xbf16> to vector<16x240xbf16>
    %88 = tpu.concatenate %86, %87 in 1 : vector<16x16xbf16>, vector<16x240xbf16> -> vector<16x256xbf16>
    %cst_27 = arith.constant 0.000000e+00 : bf16
    %89 = vector.broadcast %cst_27 : bf16 to vector<16x15xbf16>
    %90 = vector.extract_strided_slice %22 {offsets = [0, 0], sizes = [16, 241], strides = [1, 1]} : vector<16x256xbf16> to vector<16x241xbf16>
    %91 = tpu.concatenate %89, %90 in 1 : vector<16x15xbf16>, vector<16x241xbf16> -> vector<16x256xbf16>
    %cst_28 = arith.constant 0.000000e+00 : bf16
    %92 = vector.broadcast %cst_28 : bf16 to vector<16x256xbf16>
    %93 = vector.shape_cast %78 : vector<1x256xi1> to vector<1x256xi1>
    %94 = vector.broadcast %93 : vector<1x256xi1> to vector<16x256xi1>
    %95 = arith.select %94, %91, %92 : vector<16x256xi1>, vector<16x256xbf16>
    %cst_29 = arith.constant 0.000000e+00 : bf16
    %96 = vector.broadcast %cst_29 : bf16 to vector<16x1xbf16>
    %97 = vector.extract_strided_slice %22 {offsets = [0, 0], sizes = [16, 255], strides = [1, 1]} : vector<16x256xbf16> to vector<16x255xbf16>
    %98 = tpu.concatenate %96, %97 in 1 : vector<16x1xbf16>, vector<16x255xbf16> -> vector<16x256xbf16>
    %cst_30 = arith.constant 0.000000e+00 : bf16
    %99 = vector.broadcast %cst_30 : bf16 to vector<16x256xbf16>
    %100 = vector.shape_cast %76 : vector<1x256xi1> to vector<1x256xi1>
    %101 = vector.broadcast %100 : vector<1x256xi1> to vector<16x256xi1>
    %102 = arith.select %101, %98, %99 : vector<16x256xi1>, vector<16x256xbf16>
    %103 = vector.extract_strided_slice %22 {offsets = [0, 1], sizes = [16, 255], strides = [1, 1]} : vector<16x256xbf16> to vector<16x255xbf16>
    %cst_31 = arith.constant 0.000000e+00 : bf16
    %104 = vector.broadcast %cst_31 : bf16 to vector<16x1xbf16>
    %105 = tpu.concatenate %103, %104 in 1 : vector<16x255xbf16>, vector<16x1xbf16> -> vector<16x256xbf16>
    %cst_32 = arith.constant 0.000000e+00 : bf16
    %106 = vector.broadcast %cst_32 : bf16 to vector<16x256xbf16>
    %107 = vector.shape_cast %78 : vector<1x256xi1> to vector<1x256xi1>
    %108 = vector.broadcast %107 : vector<1x256xi1> to vector<16x256xi1>
    %109 = arith.select %108, %105, %106 : vector<16x256xi1>, vector<16x256xbf16>
    %110 = vector.extract_strided_slice %22 {offsets = [0, 15], sizes = [16, 241], strides = [1, 1]} : vector<16x256xbf16> to vector<16x241xbf16>
    %cst_33 = arith.constant 0.000000e+00 : bf16
    %111 = vector.broadcast %cst_33 : bf16 to vector<16x15xbf16>
    %112 = tpu.concatenate %110, %111 in 1 : vector<16x241xbf16>, vector<16x15xbf16> -> vector<16x256xbf16>
    %cst_34 = arith.constant 0.000000e+00 : bf16
    %113 = vector.broadcast %cst_34 : bf16 to vector<16x256xbf16>
    %114 = vector.shape_cast %76 : vector<1x256xi1> to vector<1x256xi1>
    %115 = vector.broadcast %114 : vector<1x256xi1> to vector<16x256xi1>
    %116 = arith.select %115, %112, %113 : vector<16x256xi1>, vector<16x256xbf16>
    %117 = vector.extract_strided_slice %22 {offsets = [0, 16], sizes = [16, 240], strides = [1, 1]} : vector<16x256xbf16> to vector<16x240xbf16>
    %cst_35 = arith.constant 0.000000e+00 : bf16
    %118 = vector.broadcast %cst_35 : bf16 to vector<16x16xbf16>
    %119 = tpu.concatenate %117, %118 in 1 : vector<16x240xbf16>, vector<16x16xbf16> -> vector<16x256xbf16>
    %120 = vector.extract_strided_slice %22 {offsets = [0, 17], sizes = [16, 239], strides = [1, 1]} : vector<16x256xbf16> to vector<16x239xbf16>
    %cst_36 = arith.constant 0.000000e+00 : bf16
    %121 = vector.broadcast %cst_36 : bf16 to vector<16x17xbf16>
    %122 = tpu.concatenate %120, %121 in 1 : vector<16x239xbf16>, vector<16x17xbf16> -> vector<16x256xbf16>
    %cst_37 = arith.constant 0.000000e+00 : bf16
    %123 = vector.broadcast %cst_37 : bf16 to vector<16x256xbf16>
    %124 = vector.shape_cast %78 : vector<1x256xi1> to vector<1x256xi1>
    %125 = vector.broadcast %124 : vector<1x256xi1> to vector<16x256xi1>
    %126 = arith.select %125, %122, %123 : vector<16x256xi1>, vector<16x256xbf16>
    %127 = tpu.concatenate %33, %36, %43, %50, %19, %57, %64, %67, %74, %85, %88, %95, %102, %22, %109, %116 in 0 : vector<32x256xbf16>, vector<32x256xbf16>, vector<32x256xbf16>, vector<32x256xbf16>, vector<32x256xbf16>, vector<32x256xbf16>, vector<32x256xbf16>, vector<32x256xbf16>, vector<32x256xbf16>, vector<16x256xbf16>, vector<16x256xbf16>, vector<16x256xbf16>, vector<16x256xbf16>, vector<16x256xbf16>, vector<16x256xbf16>, vector<16x256xbf16> -> vector<400x256xbf16>
    %128 = tpu.concatenate %119, %126 in 0 : vector<16x256xbf16>, vector<16x256xbf16> -> vector<32x256xbf16>
    %129 = tpu.concatenate %127, %128 in 0 : vector<400x256xbf16>, vector<32x256xbf16> -> vector<432x256xbf16>
    %c0_38 = arith.constant 0 : index
    %c0_39 = arith.constant 0 : index
    %130 = vector.load %arg3[%c0_38, %c0_39] : memref<32x432xbf16, #tpu.memory_space<vmem>>, vector<32x432xbf16>
    %cst_40 = arith.constant dense<0.000000e+00> : vector<32x256xf32>
    %131 = tpu.matmul %130, %129, %cst_40 {dimension_numbers = #tpu.dot_dimension_numbers<[1], [0], [0], [1], [0, 0, 1, 1], [], []>} : vector<32x432xbf16>, vector<432x256xbf16>, vector<32x256xf32> -> vector<32x256xf32>
    %c0_41 = arith.constant 0 : index
    %c0_42 = arith.constant 0 : index
    %132 = vector.load %arg4[%c0_41, %c0_42] : memref<32x1xf32, #tpu.memory_space<vmem>>, vector<32x1xf32>
    %133 = vector.broadcast %132 : vector<32x1xf32> to vector<32x256xf32>
    %134 = arith.addf %131, %133 : vector<32x256xf32>
    %cst_43 = arith.constant 0.000000e+00 : f32
    %135 = vector.broadcast %cst_43 : f32 to vector<32x256xf32>
    %136 = arith.cmpf oge, %134, %135 : vector<32x256xf32>
    %cst_44 = arith.constant 1.000000e-01 : f32
    %137 = vector.broadcast %cst_44 : f32 to vector<32x256xf32>
    %138 = arith.mulf %137, %134 : vector<32x256xf32>
    %139 = arith.select %136, %134, %138 : vector<32x256xi1>, vector<32x256xf32>
    %140 = arith.truncf %139 : vector<32x256xf32> to vector<32x256xbf16>
    %c1_i32_45 = arith.constant 1 : i32
    %141 = vector.broadcast %c1_i32_45 : i32 to vector<1x256xi32>
    %142 = arith.cmpi sge, %16, %141 : vector<1x256xi32>
    %c14_i32_46 = arith.constant 14 : i32
    %143 = vector.broadcast %c14_i32_46 : i32 to vector<1x256xi32>
    %144 = arith.cmpi sle, %16, %143 : vector<1x256xi32>
    %cst_47 = arith.constant 0.000000e+00 : bf16
    %145 = vector.broadcast %cst_47 : bf16 to vector<32x17xbf16>
    %146 = vector.extract_strided_slice %140 {offsets = [0, 0], sizes = [32, 239], strides = [1, 1]} : vector<32x256xbf16> to vector<32x239xbf16>
    %147 = tpu.concatenate %145, %146 in 1 : vector<32x17xbf16>, vector<32x239xbf16> -> vector<32x256xbf16>
    %cst_48 = arith.constant 0.000000e+00 : bf16
    %148 = vector.broadcast %cst_48 : bf16 to vector<32x256xbf16>
    %149 = vector.shape_cast %142 : vector<1x256xi1> to vector<1x256xi1>
    %150 = vector.broadcast %149 : vector<1x256xi1> to vector<32x256xi1>
    %151 = arith.select %150, %147, %148 : vector<32x256xi1>, vector<32x256xbf16>
    %cst_49 = arith.constant 0.000000e+00 : bf16
    %152 = vector.broadcast %cst_49 : bf16 to vector<32x16xbf16>
    %153 = vector.extract_strided_slice %140 {offsets = [0, 0], sizes = [32, 240], strides = [1, 1]} : vector<32x256xbf16> to vector<32x240xbf16>
    %154 = tpu.concatenate %152, %153 in 1 : vector<32x16xbf16>, vector<32x240xbf16> -> vector<32x256xbf16>
    %cst_50 = arith.constant 0.000000e+00 : bf16
    %155 = vector.broadcast %cst_50 : bf16 to vector<32x15xbf16>
    %156 = vector.extract_strided_slice %140 {offsets = [0, 0], sizes = [32, 241], strides = [1, 1]} : vector<32x256xbf16> to vector<32x241xbf16>
    %157 = tpu.concatenate %155, %156 in 1 : vector<32x15xbf16>, vector<32x241xbf16> -> vector<32x256xbf16>
    %cst_51 = arith.constant 0.000000e+00 : bf16
    %158 = vector.broadcast %cst_51 : bf16 to vector<32x256xbf16>
    %159 = vector.shape_cast %144 : vector<1x256xi1> to vector<1x256xi1>
    %160 = vector.broadcast %159 : vector<1x256xi1> to vector<32x256xi1>
    %161 = arith.select %160, %157, %158 : vector<32x256xi1>, vector<32x256xbf16>
    %cst_52 = arith.constant 0.000000e+00 : bf16
    %162 = vector.broadcast %cst_52 : bf16 to vector<32x1xbf16>
    %163 = vector.extract_strided_slice %140 {offsets = [0, 0], sizes = [32, 255], strides = [1, 1]} : vector<32x256xbf16> to vector<32x255xbf16>
    %164 = tpu.concatenate %162, %163 in 1 : vector<32x1xbf16>, vector<32x255xbf16> -> vector<32x256xbf16>
    %cst_53 = arith.constant 0.000000e+00 : bf16
    %165 = vector.broadcast %cst_53 : bf16 to vector<32x256xbf16>
    %166 = vector.shape_cast %142 : vector<1x256xi1> to vector<1x256xi1>
    %167 = vector.broadcast %166 : vector<1x256xi1> to vector<32x256xi1>
    %168 = arith.select %167, %164, %165 : vector<32x256xi1>, vector<32x256xbf16>
    %169 = vector.extract_strided_slice %140 {offsets = [0, 1], sizes = [32, 255], strides = [1, 1]} : vector<32x256xbf16> to vector<32x255xbf16>
    %cst_54 = arith.constant 0.000000e+00 : bf16
    %170 = vector.broadcast %cst_54 : bf16 to vector<32x1xbf16>
    %171 = tpu.concatenate %169, %170 in 1 : vector<32x255xbf16>, vector<32x1xbf16> -> vector<32x256xbf16>
    %cst_55 = arith.constant 0.000000e+00 : bf16
    %172 = vector.broadcast %cst_55 : bf16 to vector<32x256xbf16>
    %173 = vector.shape_cast %144 : vector<1x256xi1> to vector<1x256xi1>
    %174 = vector.broadcast %173 : vector<1x256xi1> to vector<32x256xi1>
    %175 = arith.select %174, %171, %172 : vector<32x256xi1>, vector<32x256xbf16>
    %176 = vector.extract_strided_slice %140 {offsets = [0, 15], sizes = [32, 241], strides = [1, 1]} : vector<32x256xbf16> to vector<32x241xbf16>
    %cst_56 = arith.constant 0.000000e+00 : bf16
    %177 = vector.broadcast %cst_56 : bf16 to vector<32x15xbf16>
    %178 = tpu.concatenate %176, %177 in 1 : vector<32x241xbf16>, vector<32x15xbf16> -> vector<32x256xbf16>
    %cst_57 = arith.constant 0.000000e+00 : bf16
    %179 = vector.broadcast %cst_57 : bf16 to vector<32x256xbf16>
    %180 = vector.shape_cast %142 : vector<1x256xi1> to vector<1x256xi1>
    %181 = vector.broadcast %180 : vector<1x256xi1> to vector<32x256xi1>
    %182 = arith.select %181, %178, %179 : vector<32x256xi1>, vector<32x256xbf16>
    %183 = vector.extract_strided_slice %140 {offsets = [0, 16], sizes = [32, 240], strides = [1, 1]} : vector<32x256xbf16> to vector<32x240xbf16>
    %cst_58 = arith.constant 0.000000e+00 : bf16
    %184 = vector.broadcast %cst_58 : bf16 to vector<32x16xbf16>
    %185 = tpu.concatenate %183, %184 in 1 : vector<32x240xbf16>, vector<32x16xbf16> -> vector<32x256xbf16>
    %186 = vector.extract_strided_slice %140 {offsets = [0, 17], sizes = [32, 239], strides = [1, 1]} : vector<32x256xbf16> to vector<32x239xbf16>
    %cst_59 = arith.constant 0.000000e+00 : bf16
    %187 = vector.broadcast %cst_59 : bf16 to vector<32x17xbf16>
    %188 = tpu.concatenate %186, %187 in 1 : vector<32x239xbf16>, vector<32x17xbf16> -> vector<32x256xbf16>
    %cst_60 = arith.constant 0.000000e+00 : bf16
    %189 = vector.broadcast %cst_60 : bf16 to vector<32x256xbf16>
    %190 = vector.shape_cast %144 : vector<1x256xi1> to vector<1x256xi1>
    %191 = vector.broadcast %190 : vector<1x256xi1> to vector<32x256xi1>
    %192 = arith.select %191, %188, %189 : vector<32x256xi1>, vector<32x256xbf16>
    %193 = tpu.concatenate %151, %154, %161, %168, %140, %175, %182, %185, %192 in 0 : vector<32x256xbf16>, vector<32x256xbf16>, vector<32x256xbf16>, vector<32x256xbf16>, vector<32x256xbf16>, vector<32x256xbf16>, vector<32x256xbf16>, vector<32x256xbf16>, vector<32x256xbf16> -> vector<288x256xbf16>
    %c0_61 = arith.constant 0 : index
    %c0_62 = arith.constant 0 : index
    %194 = vector.load %arg5[%c0_61, %c0_62] : memref<32x288xbf16, #tpu.memory_space<vmem>>, vector<32x288xbf16>
    %cst_63 = arith.constant dense<0.000000e+00> : vector<32x256xf32>
    %195 = tpu.matmul %194, %193, %cst_63 {dimension_numbers = #tpu.dot_dimension_numbers<[1], [0], [0], [1], [0, 0, 1, 1], [], []>} : vector<32x288xbf16>, vector<288x256xbf16>, vector<32x256xf32> -> vector<32x256xf32>
    %c0_64 = arith.constant 0 : index
    %c0_65 = arith.constant 0 : index
    %196 = vector.load %arg6[%c0_64, %c0_65] : memref<32x1xf32, #tpu.memory_space<vmem>>, vector<32x1xf32>
    %197 = vector.broadcast %196 : vector<32x1xf32> to vector<32x256xf32>
    %198 = arith.addf %195, %197 : vector<32x256xf32>
    %cst_66 = arith.constant 0.000000e+00 : f32
    %199 = vector.broadcast %cst_66 : f32 to vector<32x256xf32>
    %200 = arith.cmpf oge, %198, %199 : vector<32x256xf32>
    %cst_67 = arith.constant 1.000000e-01 : f32
    %201 = vector.broadcast %cst_67 : f32 to vector<32x256xf32>
    %202 = arith.mulf %201, %198 : vector<32x256xf32>
    %203 = arith.select %200, %198, %202 : vector<32x256xi1>, vector<32x256xf32>
    %204 = arith.truncf %203 : vector<32x256xf32> to vector<32x256xbf16>
    %c1_i32_68 = arith.constant 1 : i32
    %205 = vector.broadcast %c1_i32_68 : i32 to vector<1x256xi32>
    %206 = arith.cmpi sge, %16, %205 : vector<1x256xi32>
    %c14_i32_69 = arith.constant 14 : i32
    %207 = vector.broadcast %c14_i32_69 : i32 to vector<1x256xi32>
    %208 = arith.cmpi sle, %16, %207 : vector<1x256xi32>
    %cst_70 = arith.constant 0.000000e+00 : bf16
    %209 = vector.broadcast %cst_70 : bf16 to vector<32x17xbf16>
    %210 = vector.extract_strided_slice %204 {offsets = [0, 0], sizes = [32, 239], strides = [1, 1]} : vector<32x256xbf16> to vector<32x239xbf16>
    %211 = tpu.concatenate %209, %210 in 1 : vector<32x17xbf16>, vector<32x239xbf16> -> vector<32x256xbf16>
    %cst_71 = arith.constant 0.000000e+00 : bf16
    %212 = vector.broadcast %cst_71 : bf16 to vector<32x256xbf16>
    %213 = vector.shape_cast %206 : vector<1x256xi1> to vector<1x256xi1>
    %214 = vector.broadcast %213 : vector<1x256xi1> to vector<32x256xi1>
    %215 = arith.select %214, %211, %212 : vector<32x256xi1>, vector<32x256xbf16>
    %cst_72 = arith.constant 0.000000e+00 : bf16
    %216 = vector.broadcast %cst_72 : bf16 to vector<32x16xbf16>
    %217 = vector.extract_strided_slice %204 {offsets = [0, 0], sizes = [32, 240], strides = [1, 1]} : vector<32x256xbf16> to vector<32x240xbf16>
    %218 = tpu.concatenate %216, %217 in 1 : vector<32x16xbf16>, vector<32x240xbf16> -> vector<32x256xbf16>
    %cst_73 = arith.constant 0.000000e+00 : bf16
    %219 = vector.broadcast %cst_73 : bf16 to vector<32x15xbf16>
    %220 = vector.extract_strided_slice %204 {offsets = [0, 0], sizes = [32, 241], strides = [1, 1]} : vector<32x256xbf16> to vector<32x241xbf16>
    %221 = tpu.concatenate %219, %220 in 1 : vector<32x15xbf16>, vector<32x241xbf16> -> vector<32x256xbf16>
    %cst_74 = arith.constant 0.000000e+00 : bf16
    %222 = vector.broadcast %cst_74 : bf16 to vector<32x256xbf16>
    %223 = vector.shape_cast %208 : vector<1x256xi1> to vector<1x256xi1>
    %224 = vector.broadcast %223 : vector<1x256xi1> to vector<32x256xi1>
    %225 = arith.select %224, %221, %222 : vector<32x256xi1>, vector<32x256xbf16>
    %cst_75 = arith.constant 0.000000e+00 : bf16
    %226 = vector.broadcast %cst_75 : bf16 to vector<32x1xbf16>
    %227 = vector.extract_strided_slice %204 {offsets = [0, 0], sizes = [32, 255], strides = [1, 1]} : vector<32x256xbf16> to vector<32x255xbf16>
    %228 = tpu.concatenate %226, %227 in 1 : vector<32x1xbf16>, vector<32x255xbf16> -> vector<32x256xbf16>
    %cst_76 = arith.constant 0.000000e+00 : bf16
    %229 = vector.broadcast %cst_76 : bf16 to vector<32x256xbf16>
    %230 = vector.shape_cast %206 : vector<1x256xi1> to vector<1x256xi1>
    %231 = vector.broadcast %230 : vector<1x256xi1> to vector<32x256xi1>
    %232 = arith.select %231, %228, %229 : vector<32x256xi1>, vector<32x256xbf16>
    %233 = vector.extract_strided_slice %204 {offsets = [0, 1], sizes = [32, 255], strides = [1, 1]} : vector<32x256xbf16> to vector<32x255xbf16>
    %cst_77 = arith.constant 0.000000e+00 : bf16
    %234 = vector.broadcast %cst_77 : bf16 to vector<32x1xbf16>
    %235 = tpu.concatenate %233, %234 in 1 : vector<32x255xbf16>, vector<32x1xbf16> -> vector<32x256xbf16>
    %cst_78 = arith.constant 0.000000e+00 : bf16
    %236 = vector.broadcast %cst_78 : bf16 to vector<32x256xbf16>
    %237 = vector.shape_cast %208 : vector<1x256xi1> to vector<1x256xi1>
    %238 = vector.broadcast %237 : vector<1x256xi1> to vector<32x256xi1>
    %239 = arith.select %238, %235, %236 : vector<32x256xi1>, vector<32x256xbf16>
    %240 = vector.extract_strided_slice %204 {offsets = [0, 15], sizes = [32, 241], strides = [1, 1]} : vector<32x256xbf16> to vector<32x241xbf16>
    %cst_79 = arith.constant 0.000000e+00 : bf16
    %241 = vector.broadcast %cst_79 : bf16 to vector<32x15xbf16>
    %242 = tpu.concatenate %240, %241 in 1 : vector<32x241xbf16>, vector<32x15xbf16> -> vector<32x256xbf16>
    %cst_80 = arith.constant 0.000000e+00 : bf16
    %243 = vector.broadcast %cst_80 : bf16 to vector<32x256xbf16>
    %244 = vector.shape_cast %206 : vector<1x256xi1> to vector<1x256xi1>
    %245 = vector.broadcast %244 : vector<1x256xi1> to vector<32x256xi1>
    %246 = arith.select %245, %242, %243 : vector<32x256xi1>, vector<32x256xbf16>
    %247 = vector.extract_strided_slice %204 {offsets = [0, 16], sizes = [32, 240], strides = [1, 1]} : vector<32x256xbf16> to vector<32x240xbf16>
    %cst_81 = arith.constant 0.000000e+00 : bf16
    %248 = vector.broadcast %cst_81 : bf16 to vector<32x16xbf16>
    %249 = tpu.concatenate %247, %248 in 1 : vector<32x240xbf16>, vector<32x16xbf16> -> vector<32x256xbf16>
    %250 = vector.extract_strided_slice %204 {offsets = [0, 17], sizes = [32, 239], strides = [1, 1]} : vector<32x256xbf16> to vector<32x239xbf16>
    %cst_82 = arith.constant 0.000000e+00 : bf16
    %251 = vector.broadcast %cst_82 : bf16 to vector<32x17xbf16>
    %252 = tpu.concatenate %250, %251 in 1 : vector<32x239xbf16>, vector<32x17xbf16> -> vector<32x256xbf16>
    %cst_83 = arith.constant 0.000000e+00 : bf16
    %253 = vector.broadcast %cst_83 : bf16 to vector<32x256xbf16>
    %254 = vector.shape_cast %208 : vector<1x256xi1> to vector<1x256xi1>
    %255 = vector.broadcast %254 : vector<1x256xi1> to vector<32x256xi1>
    %256 = arith.select %255, %252, %253 : vector<32x256xi1>, vector<32x256xbf16>
    %257 = tpu.concatenate %215, %218, %225, %232, %204, %239, %246, %249, %256 in 0 : vector<32x256xbf16>, vector<32x256xbf16>, vector<32x256xbf16>, vector<32x256xbf16>, vector<32x256xbf16>, vector<32x256xbf16>, vector<32x256xbf16>, vector<32x256xbf16>, vector<32x256xbf16> -> vector<288x256xbf16>
    %c0_84 = arith.constant 0 : index
    %c0_85 = arith.constant 0 : index
    %258 = vector.load %arg7[%c0_84, %c0_85] : memref<3x288xbf16, #tpu.memory_space<vmem>>, vector<3x288xbf16>
    %cst_86 = arith.constant dense<0.000000e+00> : vector<3x256xf32>
    %259 = tpu.matmul %258, %257, %cst_86 {dimension_numbers = #tpu.dot_dimension_numbers<[1], [0], [0], [1], [0, 0, 1, 1], [], []>} : vector<3x288xbf16>, vector<288x256xbf16>, vector<3x256xf32> -> vector<3x256xf32>
    %c0_87 = arith.constant 0 : index
    %c0_88 = arith.constant 0 : index
    %260 = vector.load %arg8[%c0_87, %c0_88] : memref<3x1xf32, #tpu.memory_space<vmem>>, vector<3x1xf32>
    %261 = vector.broadcast %260 : vector<3x1xf32> to vector<3x256xf32>
    %262 = arith.addf %259, %261 : vector<3x256xf32>
    %cst_89 = arith.constant 5.000000e-01 : f32
    %263 = vector.broadcast %cst_89 : f32 to vector<3x256xf32>
    %264 = arith.mulf %262, %263 : vector<3x256xf32>
    %cst_90 = arith.constant 5.000000e-01 : f32
    %265 = vector.broadcast %cst_90 : f32 to vector<3x256xf32>
    %266 = arith.addf %264, %265 : vector<3x256xf32>
    %267 = vector.shape_cast %266 : vector<3x256xf32> to vector<1x3x256xf32>
    %c0_91 = arith.constant 0 : index
    %c0_92 = arith.constant 0 : index
    %c0_93 = arith.constant 0 : index
    %268 = vector.load %arg9[%c0_91, %c0_92, %c0_93] : memref<1x3x256xf32, #tpu.memory_space<vmem>>, vector<1x3x256xf32>
    tpu.vector_store %arg9[%c0_91, %c0_92, %c0_93], %267 {strides = array<i32>} : memref<1x3x256xf32, #tpu.memory_space<vmem>>, vector<1x3x256xf32>,
    return
  }
  func.func @transform_0(%arg0: i32) -> (i32, i32, i32) {
    %c0_i32 = arith.constant 0 : i32
    %c0_i32_0 = arith.constant 0 : i32
    %c0_i32_1 = arith.constant 0 : i32
    return %arg0, %c0_i32, %c0_i32_0 : i32, i32, i32
  }
  func.func @transform_1(%arg0: i32) -> (i32, i32, i32) {
    %c0_i32 = arith.constant 0 : i32
    %c0_i32_0 = arith.constant 0 : i32
    %c0_i32_1 = arith.constant 0 : i32
    return %arg0, %c0_i32, %c0_i32_0 : i32, i32, i32
  }
  func.func @transform_2(%arg0: i32) -> (i32, i32) {
    %c0_i32 = arith.constant 0 : i32
    %c0_i32_0 = arith.constant 0 : i32
    %c0_i32_1 = arith.constant 0 : i32
    return %c0_i32, %c0_i32_0 : i32, i32
  }
  func.func @transform_3(%arg0: i32) -> (i32, i32) {
    %c0_i32 = arith.constant 0 : i32
    %c0_i32_0 = arith.constant 0 : i32
    %c0_i32_1 = arith.constant 0 : i32
    return %c0_i32, %c0_i32_0 : i32, i32
  }
  func.func @transform_4(%arg0: i32) -> (i32, i32) {
    %c0_i32 = arith.constant 0 : i32
    %c0_i32_0 = arith.constant 0 : i32
    %c0_i32_1 = arith.constant 0 : i32
    return %c0_i32, %c0_i32_0 : i32, i32
  }
  func.func @transform_5(%arg0: i32) -> (i32, i32) {
    %c0_i32 = arith.constant 0 : i32
    %c0_i32_0 = arith.constant 0 : i32
    %c0_i32_1 = arith.constant 0 : i32
    return %c0_i32, %c0_i32_0 : i32, i32
  }
  func.func @transform_6(%arg0: i32) -> (i32, i32) {
    %c0_i32 = arith.constant 0 : i32
    %c0_i32_0 = arith.constant 0 : i32
    %c0_i32_1 = arith.constant 0 : i32
    return %c0_i32, %c0_i32_0 : i32, i32
  }
  func.func @transform_7(%arg0: i32) -> (i32, i32) {
    %c0_i32 = arith.constant 0 : i32
    %c0_i32_0 = arith.constant 0 : i32
    %c0_i32_1 = arith.constant 0 : i32
    return %c0_i32, %c0_i32_0 : i32, i32
  }
  func.func @transform_8(%arg0: i32) -> (i32, i32, i32) {
    %c0_i32 = arith.constant 0 : i32
    %c0_i32_0 = arith.constant 0 : i32
    %c0_i32_1 = arith.constant 0 : i32
    return %arg0, %c0_i32, %c0_i32_0 : i32, i32, i32
  }
}

</mosaic_0001>

<bundles_post_ra>
// kernel: autoencoder_forward.7
= control target key start
LH: loop header
LB: loop body
LE: loop exit
PB: predicated region body
PF: predicated region fallthrough
CT: control target
= control target key end

     0   :  { %s570_s12 = smov 0   ;;  %s643_s0 = inlined_call_operand.vmem [shape: f32[2,16,256], index: 0, kind: input, shape index: {}]   ;;  %s644_s1 = inlined_call_operand.vmem [shape: bf16[16,144], index: 1, kind: input, shape index: {}]   ;;  %s645_s2 = inlined_call_operand.vmem [shape: f32[16,1], index: 2, kind: input, shape index: {}]   ;;  %s646_s3 = inlined_call_operand.vmem [shape: f32[2,16,256], index: 3, kind: output, shape index: {}]  }
   0x1 LB: > { %s486_s13 = sadd.s32 4294967295, %s539_s12   ;;  %p490_p0 = scmp.ge.s32.totalorder %s539_s12, 1  ;;  %s539_s12 = sphi %s570_s12, %s13_s12  }
   0x2   : > { %p137_p1 = scmp.lt.s32.totalorder %s539_s12, 3 }
   0x4   : > { %p138_p2 = pnand %p490_p0, %p137_p1 }
   0x5   : > { %p161_p3 = scmp.lt.s32.totalorder (!%p138_p2), %s486_s13, 1  ;;  %s542_s18 = smov (!%p138_p2), 113  }
   0x6   : > { %141 = sbr.rel (%p138_p2) target bundleno = 377 (0x179), region = 32  ;;  %s543_s19 = smov (!%p138_p2), 112  }
   0x7   : > { %s544_s20 = smov (!%p138_p2), 127   ;;  %s545_s21 = smov (!%p138_p2), 1  }
   0x8   : > { %s546_s22 = smov (!%p138_p2), 15   ;;  %s547_s23 = smov (!%p138_p2), 16  }
   0x9   : > { %s548_s24 = smov (!%p138_p2), 17   ;;  %s549_s27 = smov (!%p138_p2), 111  }
   0xb   : > { %v541_v0 = vmov 0   ;;  %s648_s13 = smov (!%p161_p3, %s486_s13), 1  ;;  %v532_v7 = vld [vmem:[%s644_s1 + $0x4] ss:$8 sps:$4 sm:$0xff]   ;;  %vm247_vm0 = vcmask 130048   ;;  %v180_v10 = vlaneseq  ;;  %vm326_vm7 = vcmask 916480  }
   0xc   : > { %528 = vset.pattern.permute.xlu0 %v541_v0  ;;  %529 = vset.pattern.permute.xlu1 %v541_v0  ;;  %s509_s14 = sshll.u32 %s648_s13, 5  ;;  %v348_v8 = vld [vmem:[%s645_s2] sm:$0xff]  ;;  %v349_v9 = vld [vmem:[%s645_s2 + $0x8] sm:$0xff]  ;;  %vm313_vm8 = vcmask 924672   ;;  %vm300_vm11 = vcmask 1039360   ;;  %vm287_vm14 = vcmask 7168  }
   0xd   : > { %s165_s17 = scalar_lea.vmem %s643_s0, %s509_s14  ;;  %506 = vmatprep.mubr.msk.bf16.mxu0 %vm247_vm0, %v532_v7  ;;  %v181_v11 = vand.u32 127, %v180_v10  ;;  %v232_v15 = vshrl.u32 %v180_v10, 7  ;;  %vm258_vm15 = vcmask 121856   ;;  %v530_v60 = vld [vmem:[%s644_s1] ss:$8 sps:$4 sm:$0xff]   ;;  %s170_s9 = scalar_lea.vmem %s646_s3, %s509_s14 }
   0xe   : > { %v174_v1 = vld [vmem:[%s165_s17] sm:$0xff]  ;;  %v176_v2 = vld [vmem:[%s165_s17 + $0x10] sm:$0xff]  ;;  %v175_v3 = vld [vmem:[%s165_s17 + $0x8] sm:$0xff] }
   0xf   : > { %v586_v4 = vpack.c.bf16 %v176_v2, %v174_v1  ;;  %v177_v5 = vld [vmem:[%s165_s17 + $0x18] sm:$0xff]  ;;  %v182_v12 = vadd.s32 128, %v181_v11  ;;  %v187_v13 = vand.u32 15, %v181_v11  ;;  %v237_v16 = vsub.s32 4, %v232_v15 }
  0x10   : > { %v590_v6 = vpack.c.bf16 %v177_v5, %v175_v3  ;;  %v233_v17 = vsub.s32 0, %v232_v15 }
  0x11   : > { %309 = vrot.lane.b32.xlu1 %v586_v4, %s542_s18  ;;  %322 = vrot.lane.b32.xlu0 %v586_v4, %s543_s19  ;;  %v194_v14 = vand.u32 15, %v182_v12  ;;  %vm207_vm1 = vcmp.ge.s32.totalorder %v187_v13, 1  ;;  %vm209_vm3 = vcmp.le.s32.totalorder %v187_v13, 14 }
  0x13   : > { %vm208_vm2 = vcmp.ge.s32.totalorder %v194_v14, 1  ;;  %vm210_vm4 = vcmp.le.s32.totalorder %v194_v14, 14 }
  0x14   : > { %vm229_vm5 = vmpackc.low %vm208_vm2, %vm207_vm1  ;;  %vm217_vm1 = vcmask 138240  }
  0x15   : > { %311 = vrot.lane.b32.xlu1 %v590_v6, %s542_s18  ;;  %324 = vrot.lane.b32.xlu0 %v590_v6, %s543_s19  ;;  %vm269_vm6 = vmpackc.low %vm210_vm4, %vm209_vm3  ;;  %v230_v18 = vsel %vm229_vm5, 65537, %v541_v0  ;;  %vm337_vm3 = vcmask 908288  }
  0x16   : > { %v238_v21 = vrot.slane %v230_v18, %v237_v16  ;;  %v270_v22 = vsel %vm269_vm6, 65537, %v541_v0  ;;  %v234_v23 = vrot.slane %v230_v18, %v233_v17  ;;  %vm502_vm2 = vmneg %vm247_vm0 }
  0x17   : > { %v278_v26 = vrot.slane %v270_v22, %v237_v16  ;;  %v274_v27 = vrot.slane %v270_v22, %v233_v17 }
  0x18   : > { %vm240_vm9 = vcmp.ne.s16.totalorder %v238_v21, 0  ;;  %vm239_vm10 = vcmp.ne.s16.totalorder %v234_v23, 0 }
  0x19   : > { %298 = vrot.lane.b32.xlu1 %v590_v6, %s544_s20  ;;  %296 = vrot.lane.b32.xlu0 %v586_v4, %s544_s20  ;;  %vm280_vm12 = vcmp.ne.s16.totalorder %v278_v26, 0  ;;  %vm279_vm13 = vcmp.ne.s16.totalorder %v274_v27, 0 }
  0x1d   : > { %285 = vrot.lane.b32.xlu1 %v590_v6, %s545_s21  ;;  %283 = vrot.lane.b32.xlu0 %v586_v4, %s545_s21 }
  0x21   : > { %256 = vrot.lane.b32.xlu1 %v590_v6, %s546_s22  ;;  %254 = vrot.lane.b32.xlu0 %v586_v4, %s546_s22 }
  0x25   : > { %245 = vrot.lane.b32.xlu1 %v590_v6, %s547_s23  ;;  %243 = vrot.lane.b32.xlu0 %v586_v4, %s547_s23 }
  0x29   : > { %215 = vrot.lane.b32.xlu1 %v590_v6, %s548_s24  ;;  %213 = vrot.lane.b32.xlu0 %v586_v4, %s548_s24 }
  0x2d   : > { %335 = vrot.lane.b32.xlu1 %v590_v6, %s549_s27  ;;  %333 = vrot.lane.b32.xlu0 %v586_v4, %s549_s27 }
  0x31   : > { %352 = vperm.xlu0 %528, %v348_v8   ;;  %357 = vperm.xlu1 %529, %v349_v9  }
  0x83   : > { %v310_v19 = vpop.permute.xlu1 %309  ;;  %v323_v20 = vpop.permute.xlu0 %322 }
  0x87   : > { %v312_v24 = vpop.permute.xlu1 %311  ;;  %v325_v25 = vpop.permute.xlu0 %324 }
  0x88   : > { %v318_v28 = vsel %vm313_vm8, %v312_v24, 0  ;;  %497 = vmatprep.subr.msk.bf16.mxu0 %vm326_vm7, %v325_v25  ;;  %v327_v29 = vsel %vm326_vm7, %v323_v20, %v325_v25  ;;  %v314_v30 = vsel %vm313_vm8, %v310_v19, %v312_v24 }
  0x89   : > { %373 = vmatpush1.bf16.msra.mxu0 %v327_v29  ;;  %v320_v33 = vsel %vm239_vm10, %v314_v30, 0 }
  0x8a   : > { %498 = vmatprep.subr.msk.bf16.mxu0 %vm240_vm9, %v318_v28 }
  0x8b   : > { %v299_v31 = vpop.permute.xlu1 %298  ;;  %v297_v32 = vpop.permute.xlu0 %296 }
  0x8c   : > { %v305_v34 = vsel %vm300_vm11, %v299_v31, 0  ;;  %v301_v35 = vsel %vm300_vm11, %v297_v32, %v299_v31 }
  0x8d   : > { %375 = vmatpush1.bf16.msra.mxu0 %v320_v33  ;;  %v307_v36 = vsel %vm279_vm13, %v301_v35, 0 }
  0x8e   : > { %499 = vmatprep.subr.msk.bf16.mxu0 %vm280_vm12, %v305_v34 }
  0x8f   : > { %v286_v37 = vpop.permute.xlu1 %285  ;;  %v284_v38 = vpop.permute.xlu0 %283 }
  0x90   : > { %v288_v39 = vsel %vm287_vm14, %v284_v38, %v286_v37  ;;  %v292_v40 = vsel %vm287_vm14, 0, %v284_v38 }
  0x91   : > { %377 = vmatpush1.bf16.msra.mxu0 %v307_v36  ;;  %v294_v43 = vsel %vm239_vm10, %v292_v40, 0 }
  0x92   : > { %378 = vmatprep.subr.bf16.mxu0 %v590_v6 }
  0x93   : > { %v257_v41 = vpop.permute.xlu1 %256  ;;  %v255_v42 = vpop.permute.xlu0 %254 }
  0x94   : > { %v259_v44 = vsel %vm258_vm15, %v255_v42, %v257_v41  ;;  %v263_v45 = vsel %vm258_vm15, 0, %v255_v42 }
  0x95   : > { %379 = vmatpush1.bf16.msra.mxu0 %v586_v4  ;;  %v281_v48 = vsel %vm279_vm13, %v263_v45, 0 }
  0x96   : > { %500 = vmatprep.subr.msk.bf16.mxu0 %vm240_vm9, %v288_v39 }
  0x97   : > { %v246_v46 = vpop.permute.xlu1 %245  ;;  %v244_v47 = vpop.permute.xlu0 %243 }
  0x98   : > { %v248_v49 = vsel %vm247_vm0, %v244_v47, %v246_v46 }
  0x99   : > { %381 = vmatpush1.bf16.msra.mxu0 %v294_v43 }
  0x9a   : > { %501 = vmatprep.subr.msk.bf16.mxu0 %vm280_vm12, %v259_v44 }
  0x9b   : > { %v216_v50 = vpop.permute.xlu1 %215  ;;  %v214_v51 = vpop.permute.xlu0 %213 }
  0x9c   : > { %v218_v52 = vsel %vm217_vm1, %v214_v51, %v216_v50  ;;  %v223_v53 = vsel %vm217_vm1, 0, %v214_v51 }
  0x9d   : > { %383 = vmatpush1.bf16.msra.mxu0 %v281_v48  ;;  %v241_v56 = vsel %vm239_vm10, %v223_v53, 0 }
  0x9e   : > { %384 = vmatprep.subr.bf16.mxu0 %v248_v49 }
  0x9f   : > { %v336_v54 = vpop.permute.xlu1 %335  ;;  %v334_v55 = vpop.permute.xlu0 %333 }
  0xa0   : > { %v342_v57 = vsel %vm337_vm3, %v336_v54, 0  ;;  %v338_v58 = vsel %vm337_vm3, %v334_v55, %v336_v54 }
  0xa1   : > { %503 = vmatpush1.bf16.msk.msra.mxu0 %vm502_vm2, %v244_v47  ;;  %v344_v59 = vsel %vm279_vm13, %v338_v58, 0 }
  0xa2   : > { %504 = vmatprep.subr.msk.bf16.mxu0 %vm240_vm9, %v218_v52 }
  0xa5   : > { %387 = vmatpush1.bf16.msra.mxu0 %v241_v56 }
  0xa6   : > { %505 = vmatprep.subr.msk.bf16.mxu0 %vm280_vm12, %v342_v57 }
  0xa9   : > { %403 = vmatpush2.bf16.msra.mxu0 %v344_v59 }
  0xac   : > { %405 = vmatmul.mubr.bf16.vlgmr.msra.gmra.mxu0 %v530_v60  ;;  %v353_v61 = vpop.permute.xlu0 %352  ;;  %v358_v1 = vpop.permute.xlu1 %357 }
 0x16c   : > { %v406_v62 = vpop.f32.mrf.mxu0 }
 0x16d   : > { %v407_v63 = vadd.f32 %v406_v62, %v353_v61 }
 0x16e   : > { %v408_v0 = vpop.f32.mrf.mxu0 }
 0x16f   : > { %vm415_vm0 = vcmp.ge.f32.partialorder %v407_v63, 0.0  ;;  %v419_v2 = vmul.f32 0.1, %v407_v63  ;;  %v409_v3 = vadd.f32 %v408_v0, %v353_v61 }
 0x170   : > { %v410_v4 = vpop.f32.mrf.mxu0 }
 0x171   : > { %v423_v5 = vsel %vm415_vm0, %v407_v63, %v419_v2  ;;  %vm416_vm4 = vcmp.ge.f32.partialorder %v409_v3, 0.0  ;;  %v420_v6 = vmul.f32 0.1, %v409_v3  ;;  %v411_v7 = vadd.f32 %v410_v4, %v358_v1 }
 0x172   : > { %427 = vst [vmem:[%s170_s9] sm:$0xff] %v423_v5  ;;  %v412_v8 = vpop.f32.mrf.mxu0 }
 0x173   : > { %v424_v9 = vsel %vm416_vm4, %v409_v3, %v420_v6  ;;  %vm417_vm5 = vcmp.ge.f32.partialorder %v411_v7, 0.0  ;;  %v421_v10 = vmul.f32 0.1, %v411_v7  ;;  %v413_v11 = vadd.f32 %v412_v8, %v358_v1 }
 0x174   : > { %428 = vst [vmem:[%s170_s9 + $0x8] sm:$0xff] %v424_v9 }
 0x175   : > { %v425_v12 = vsel %vm417_vm5, %v411_v7, %v421_v10  ;;  %vm418_vm6 = vcmp.ge.f32.partialorder %v413_v11, 0.0  ;;  %v422_v13 = vmul.f32 0.1, %v413_v11 }
 0x176   : > { %429 = vst [vmem:[%s170_s9 + $0x10] sm:$0xff] %v425_v12 }
 0x177   : > { %v426_v14 = vsel %vm418_vm6, %v413_v11, %v422_v13 }
 0x178   : > { %430 = vst [vmem:[%s170_s9 + $0x18] sm:$0xff] %v426_v14 }
 0x179 PF: > { %s13_s12 = sadd.s32 1, %s539_s12  }
 0x17a   : > { %p10_p4 = scmp.ge.s32.totalorder %s13_s12, 4  }
 0x17c   :  { %12 = sbr.rel (!%p10_p4) target bundleno = 1 (0x1), region = 62 }

// kernel: autoencoder_forward.8
= control target key start
LH: loop header
LB: loop body
LE: loop exit
PB: predicated region body
PF: predicated region fallthrough
CT: control target
= control target key end

     0   :  { %s476_s12 = smov 0   ;;  %s531_s0 = inlined_call_operand.vmem [shape: f32[2,16,64], index: 0, kind: input, shape index: {}]   ;;  %s532_s1 = inlined_call_operand.vmem [shape: bf16[16,144], index: 1, kind: input, shape index: {}]   ;;  %s533_s2 = inlined_call_operand.vmem [shape: f32[16,1], index: 2, kind: input, shape index: {}]   ;;  %s534_s3 = inlined_call_operand.vmem [shape: f32[2,16,64], index: 3, kind: output, shape index: {}]  }
   0x1 LB: > { %s399_s13 = sadd.s32 4294967295, %s445_s12   ;;  %p403_p0 = scmp.ge.s32.totalorder %s445_s12, 1  ;;  %s445_s12 = sphi %s476_s12, %s13_s12  }
   0x2   : > { %p137_p1 = scmp.lt.s32.totalorder %s445_s12, 3 }
   0x4   : > { %p138_p2 = pnand %p403_p0, %p137_p1 }
   0x5   : > { %p161_p3 = scmp.lt.s32.totalorder (!%p138_p2), %s399_s13, 1  ;;  %s448_s18 = smov (!%p138_p2), 120  }
   0x6   : > { %141 = sbr.rel (%p138_p2) target bundleno = 372 (0x174), region = 32  ;;  %s449_s19 = smov (!%p138_p2), 127  }
   0x7   : > { %s450_s20 = smov (!%p138_p2), 121   ;;  %s451_s21 = smov (!%p138_p2), 1  }
   0x8   : > { %s452_s22 = smov (!%p138_p2), 7   ;;  %s453_s23 = smov (!%p138_p2), 8  }
   0x9   : > { %s454_s24 = smov (!%p138_p2), 9   ;;  %s455_s25 = smov (!%p138_p2), 119  }
   0xb   : > { %v447_v0 = vmov 0   ;;  %s536_s13 = smov (!%p161_p3, %s399_s13), 1  ;;  %v438_v4 = vld [vmem:[%s532_s1 + $0x4] ss:$8 sps:$4 sm:$0xff]   ;;  %vm290_vm0 = vcmask 130048   ;;  %v177_v7 = vlaneseq  ;;  %vm256_vm5 = vcmask 457728  }
   0xc   : > { %294 = vmatprep.subr.bf16.mxu0 %v447_v0  ;;  %434 = vset.pattern.permute.xlu0 %v447_v0  ;;  %s415_s14 = sshll.u32 %s536_s13, 4  ;;  %v269_v5 = vld [vmem:[%s533_s2] sm:$0xff]  ;;  %v270_v6 = vld [vmem:[%s533_s2 + $0x8] sm:$0xff]  ;;  %vm249_vm6 = vcmask 465920   ;;  %vm242_vm7 = vcmask 515072   ;;  %vm235_vm10 = vcmask 7168  }
   0xd   : > { %435 = vset.pattern.permute.xlu1 %v447_v0  ;;  %s165_s17 = scalar_lea.vmem %s531_s0, %s415_s14  ;;  %412 = vmatprep.mubr.msk.bf16.mxu0 %vm290_vm0, %v438_v4  ;;  %v178_v8 = vand.u32 127, %v177_v7  ;;  %v206_v10 = vshrl.u32 %v177_v7, 7  ;;  %vm219_vm11 = vcmask 56320   ;;  %vm213_vm12 = vcmask 64512   ;;  %v436_v37 = vld [vmem:[%s532_s1] ss:$8 sps:$4 sm:$0xff]   ;;  %s170_s9 = scalar_lea.vmem %s534_s3, %s415_s14 }
   0xe   : > { %v174_v1 = vld [vmem:[%s165_s17] sm:$0xff]  ;;  %v175_v2 = vld [vmem:[%s165_s17 + $0x8] sm:$0xff]  ;;  %vm196_vm13 = vcmask 72704   ;;  %vm410_vm14 = vmneg %vm213_vm12  ;;  %vm262_vm15 = vcmask 449536   ;;  %vm341_vm0 = vcmask 523264  }
   0xf   : > { %v176_v3 = vpack.c.bf16 %v175_v2, %v174_v1  ;;  %v183_v9 = vand.u32 7, %v178_v8  ;;  %v207_v11 = vsub.s32 0, %v206_v10 }
  0x11   : > { %254 = vrot.lane.b32.xlu0 %v176_v3, %s448_s18  ;;  %240 = vrot.lane.b32.xlu1 %v176_v3, %s449_s19  ;;  %vm191_vm1 = vcmp.ge.s32.totalorder %v183_v9, 1  ;;  %vm192_vm2 = vcmp.le.s32.totalorder %v183_v9, 6 }
  0x12   : > { %vm203_vm3 = vmpackc.low %vm191_vm1, %vm191_vm1 }
  0x13   : > { %vm225_vm4 = vmpackc.low %vm192_vm2, %vm192_vm2  ;;  %v204_v12 = vsel %vm203_vm3, 65537, %v447_v0 }
  0x14   : > { %v226_v13 = vsel %vm225_vm4, 65537, %v447_v0  ;;  %v208_v14 = vrot.slane %v204_v12, %v207_v11 }
  0x15   : > { %247 = vrot.lane.b32.xlu0 %v176_v3, %s450_s20  ;;  %233 = vrot.lane.b32.xlu1 %v176_v3, %s451_s21  ;;  %v230_v17 = vrot.slane %v226_v13, %v207_v11 }
  0x16   : > { %vm209_vm8 = vcmp.ne.s16.totalorder %v208_v14, 0 }
  0x17   : > { %vm231_vm9 = vcmp.ne.s16.totalorder %v230_v17, 0 }
  0x19   : > { %217 = vrot.lane.b32.xlu0 %v176_v3, %s452_s22  ;;  %211 = vrot.lane.b32.xlu1 %v176_v3, %s453_s23 }
  0x1d   : > { %194 = vrot.lane.b32.xlu0 %v176_v3, %s454_s24  ;;  %260 = vrot.lane.b32.xlu1 %v176_v3, %s455_s25 }
  0x21   : > { %273 = vperm.xlu0 %434, %v269_v5   ;;  %278 = vperm.xlu1 %435, %v270_v6  }
  0x83   : > { %v255_v15 = vpop.permute.xlu0 %254  ;;  %v241_v18 = vpop.permute.xlu1 %240 }
  0x84   : > { %v258_v16 = vsel %vm256_vm5, %v255_v15, 0  ;;  %v244_v21 = vsel %vm242_vm7, %v241_v18, 0 }
  0x85   : > { %295 = vmatpush1.bf16.msra.mxu0 %v258_v16  ;;  %v246_v23 = vsel %vm231_vm9, %v244_v21, 0 }
  0x86   : > { %296 = vmatprep.subr.bf16.mxu0 %v447_v0 }
  0x87   : > { %v248_v19 = vpop.permute.xlu0 %247  ;;  %v234_v24 = vpop.permute.xlu1 %233 }
  0x88   : > { %v251_v20 = vsel %vm249_vm6, %v248_v19, 0  ;;  %v237_v25 = vsel %vm235_vm10, 0, %v234_v24 }
  0x89   : > { %v253_v22 = vsel %vm209_vm8, %v251_v20, 0  ;;  %v239_v27 = vsel %vm209_vm8, %v237_v25, 0 }
  0x8a   : > { %297 = vmatpush1.bf16.msra.mxu0 %v253_v22 }
  0x8b   : > { %298 = vmatprep.subr.bf16.mxu0 %v447_v0  ;;  %v218_v26 = vpop.permute.xlu0 %217  ;;  %v212_v30 = vpop.permute.xlu1 %211 }
  0x8c   : > { %v221_v28 = vsel %vm219_vm11, 0, %v218_v26 }
  0x8d   : > { %v232_v29 = vsel %vm231_vm9, %v221_v28, 0 }
  0x8e   : > { %299 = vmatpush1.bf16.msra.mxu0 %v246_v23 }
  0x8f   : > { %300 = vmatprep.subr.bf16.mxu0 %v447_v0  ;;  %v195_v31 = vpop.permute.xlu0 %194  ;;  %v261_v33 = vpop.permute.xlu1 %260 }
  0x90   : > { %v199_v32 = vsel %vm196_vm13, 0, %v195_v31  ;;  %v264_v35 = vsel %vm262_vm15, %v261_v33, 0 }
  0x91   : > { %v210_v34 = vsel %vm209_vm8, %v199_v32, 0  ;;  %v266_v36 = vsel %vm231_vm9, %v264_v35, 0 }
  0x92   : > { %301 = vmatpush1.bf16.msra.mxu0 %v176_v3 }
  0x93   : > { %302 = vmatprep.subr.bf16.mxu0 %v447_v0 }
  0x96   : > { %303 = vmatpush1.bf16.msra.mxu0 %v239_v27 }
  0x97   : > { %304 = vmatprep.subr.bf16.mxu0 %v447_v0 }
  0x9a   : > { %305 = vmatpush1.bf16.msra.mxu0 %v232_v29 }
  0x9b   : > { %306 = vmatprep.subr.bf16.mxu0 %v447_v0 }
  0x9c   : > { %v274_v38 = vpop.permute.xlu0 %273  ;;  %v279_v42 = vpop.permute.xlu1 %278 }
  0x9e   : > { %411 = vmatpush1.bf16.msk.msra.mxu0 %vm410_vm14, %v212_v30 }
  0x9f   : > { %308 = vmatprep.subr.bf16.mxu0 %v447_v0 }
  0xa2   : > { %309 = vmatpush1.bf16.msra.mxu0 %v210_v34 }
  0xa3   : > { %324 = vmatprep.subr.bf16.mxu0 %v447_v0 }
  0xa6   : > { %325 = vmatpush2.bf16.msra.mxu0 %v266_v36 }
  0xa9   : > { %327 = vmatmul.mubr.bf16.vlgmr.msra.gmra.mxu0 %v436_v37 }
 0x169   : > { %v328_v39 = vpop.f32.mrf.mxu0 }
 0x16a   : > { %v329_v40 = vadd.f32 %v328_v39, %v274_v38 }
 0x16b   : > { %v330_v41 = vpop.f32.mrf.mxu0 }
 0x16c   : > { %vm335_vm1 = vcmp.ge.f32.partialorder %v329_v40, 0.0  ;;  %v337_v43 = vmul.f32 0.1, %v329_v40 }
 0x16d   : > { %v331_v44 = vpop.f32.mrf.mxu0 }
 0x16e   : > { %v339_v45 = vsel %vm335_vm1, %v329_v40, %v337_v43  ;;  %v332_v46 = vadd.f32 %v331_v44, %v279_v42 }
 0x16f   : > { %342 = vst.msk [vmem:[%s170_s9] sm:$0xff] %vm341_vm0, %v339_v45  ;;  %v333_v47 = vpop.f32.mrf.mxu0 }
 0x170   : > { %vm336_vm2 = vcmp.ge.f32.partialorder %v332_v46, 0.0  ;;  %v338_v48 = vmul.f32 0.1, %v332_v46 }
 0x172   : > { %v340_v49 = vsel %vm336_vm2, %v332_v46, %v338_v48 }
 0x173   : > { %343 = vst.msk [vmem:[%s170_s9 + $0x8] sm:$0xff] %vm341_vm0, %v340_v49 }
 0x174 PF: > { %s13_s12 = sadd.s32 1, %s445_s12  }
 0x175   : > { %p10_p4 = scmp.ge.s32.totalorder %s13_s12, 4  }
 0x177   :  { %12 = sbr.rel (!%p10_p4) target bundleno = 1 (0x1), region = 62 }

// kernel: autoencoder_forward.6
= control target key start
LH: loop header
LB: loop body
LE: loop exit
PB: predicated region body
PF: predicated region fallthrough
CT: control target
= control target key end

     0   :  { %s606_s12 = smov 0   ;;  %s713_s0 = inlined_call_operand.vmem [shape: f32[2,4,256], index: 0, kind: input, shape index: {}]   ;;  %s714_s1 = inlined_call_operand.vmem [shape: bf16[16,36], index: 1, kind: input, shape index: {}]   ;;  %s715_s2 = inlined_call_operand.vmem [shape: f32[16,1], index: 2, kind: input, shape index: {}]   ;;  %s716_s3 = inlined_call_operand.vmem [shape: f32[2,16,256], index: 3, kind: output, shape index: {}]  }
   0x1 LB: > { %s532_s13 = sadd.s32 4294967295, %s575_s12   ;;  %p536_p0 = scmp.ge.s32.totalorder %s575_s12, 1  ;;  %s575_s12 = sphi %s606_s12, %s13_s12  }
   0x2   : > { %p137_p1 = scmp.lt.s32.totalorder %s575_s12, 3 }
   0x4   : > { %p138_p2 = pnand %p536_p0, %p137_p1 }
   0x5   : > { %p161_p3 = scmp.lt.s32.totalorder (!%p138_p2), %s532_s13, 1  ;;  %s578_s18 = smov (!%p138_p2), 111  }
   0x6   : > { %141 = sbr.rel (%p138_p2) target bundleno = 375 (0x177), region = 32  ;;  %s579_s19 = smov (!%p138_p2), 127  }
   0x7   : > { %s580_s20 = smov (!%p138_p2), 113   ;;  %s581_s21 = smov (!%p138_p2), 112  }
   0x8   : > { %s582_s22 = smov (!%p138_p2), 16   ;;  %s583_s23 = smov (!%p138_p2), 15  }
   0x9   : > { %s584_s24 = smov (!%p138_p2), 17   ;;  %s585_s25 = smov (!%p138_p2), 1  }
   0xb   : > { %v577_v0 = vmov 0   ;;  %s718_s13 = smov (!%p161_p3, %s532_s13), 1  ;;  %v403_v7 = vld [vmem:[%s715_s2] sm:$0xff]  ;;  %v404_v8 = vld [vmem:[%s715_s2 + $0x8] sm:$0xff]  ;;  %v182_v9 = vlaneseq  ;;  %vm300_vm6 = vcmask 1039360   ;;  %vm335_vm7 = vcmask 908288  }
   0xc   : > { %462 = vmatprep.mubr.bf16.mxu0 %v577_v0  ;;  %566 = vset.pattern.permute.xlu0 %v577_v0  ;;  %s547_s14 = sshll.u32 %s718_s13, 3  ;;  %vm366_vm10 = vcmask 1041408   ;;  %vm313_vm11 = vcmask 924672   ;;  %vm326_vm12 = vcmask 916480   ;;  %vm373_vm15 = vcmask 1043456   ;;  %s548_s5 = sshll.u32 %s718_s13, 5 }
   0xd   : > { %567 = vset.pattern.permute.xlu1 %v577_v0  ;;  %s165_s17 = scalar_lea.vmem %s713_s0, %s547_s14  ;;  %v183_v10 = vand.u32 127, %v182_v9  ;;  %v234_v14 = vshrl.u32 %v182_v9, 7  ;;  %s170_s8 = scalar_lea.vmem %s716_s3, %s548_s5 }
   0xe   : > { %v174_v1 = vld [vmem:[%s165_s17] sm:$0xff] }
   0xf   : > { %v175_v2 = vmul.f32 2.0, %v174_v1  ;;  %v184_v11 = vadd.s32 128, %v183_v10  ;;  %v189_v12 = vand.u32 15, %v183_v10  ;;  %v235_v15 = vsub.s32 0, %v234_v14 }
  0x10   : > { %v239_v16 = vsub.s32 4, %v234_v14 }
  0x11   : > { %v541_v3 = vadd.f32 -1.0, %v175_v2  ;;  %v196_v13 = vand.u32 15, %v184_v11  ;;  %vm211_vm0 = vcmp.le.s32.totalorder %v189_v12, 14  ;;  %vm209_vm3 = vcmp.ge.s32.totalorder %v189_v12, 1 }
  0x13   : > { %v623_v4 = vpack.c.bf16 %v541_v3, %v541_v3  ;;  %v178_v5 = vcombine.high %v541_v3, %v541_v3  ;;  %vm212_vm1 = vcmp.le.s32.totalorder %v196_v13, 14  ;;  %vm210_vm4 = vcmp.ge.s32.totalorder %v196_v13, 1 }
  0x14   : > { %vm269_vm2 = vmpackc.low %vm212_vm1, %vm211_vm0  ;;  %vm378_vm0 = vcmask 1045504   ;;  %vm249_vm1 = vcmask 130048  }
  0x15   : > { %331 = vrot.lane.b32.xlu1 %v623_v4, %s578_s18  ;;  %296 = vrot.lane.b32.xlu0 %v623_v4, %s579_s19  ;;  %v627_v6 = vpack.c.bf16 %v178_v5, %v178_v5  ;;  %v270_v17 = vsel %vm269_vm2, 65537, %v577_v0  ;;  %vm231_vm5 = vmpackc.low %vm210_vm4, %vm209_vm3  ;;  %vm258_vm2 = vcmask 121856   ;;  %vm219_vm3 = vcmask 138240  }
  0x16   : > { %v650_v20 = vrot.slane %v270_v17, %v235_v15  ;;  %v652_v21 = vrot.slane %v270_v17, %v239_v16  ;;  %v232_v24 = vsel %vm231_vm5, 65537, %v577_v0  ;;  %vm287_vm4 = vcmask 7168  }
  0x17   : > { %v657_v27 = vrot.slane %v232_v24, %v235_v15  ;;  %v659_v28 = vrot.slane %v232_v24, %v239_v16  ;;  %vm420_vm5 = vcmask 293888  }
  0x18   : > { %vm279_vm8 = vcmp.ne.s16.totalorder %v650_v20, 0  ;;  %vm280_vm9 = vcmp.ne.s16.totalorder %v652_v21, 0 }
  0x19   : > { %309 = vrot.lane.b32.xlu1 %v623_v4, %s580_s20  ;;  %298 = vrot.lane.b32.xlu0 %v627_v6, %s579_s19  ;;  %vm241_vm13 = vcmp.ne.s16.totalorder %v657_v27, 0  ;;  %vm242_vm14 = vcmp.ne.s16.totalorder %v659_v28, 0 }
  0x1d   : > { %322 = vrot.lane.b32.xlu1 %v623_v4, %s581_s21  ;;  %333 = vrot.lane.b32.xlu0 %v627_v6, %s578_s18 }
  0x21   : > { %311 = vrot.lane.b32.xlu1 %v627_v6, %s580_s20  ;;  %324 = vrot.lane.b32.xlu0 %v627_v6, %s581_s21 }
  0x25   : > { %247 = vrot.lane.b32.xlu1 %v627_v6, %s582_s22  ;;  %245 = vrot.lane.b32.xlu0 %v623_v4, %s582_s22 }
  0x29   : > { %256 = vrot.lane.b32.xlu1 %v627_v6, %s583_s23  ;;  %254 = vrot.lane.b32.xlu0 %v623_v4, %s583_s23 }
  0x2d   : > { %217 = vrot.lane.b32.xlu1 %v627_v6, %s584_s24  ;;  %215 = vrot.lane.b32.xlu0 %v623_v4, %s584_s24 }
  0x31   : > { %285 = vrot.lane.b32.xlu1 %v627_v6, %s585_s25  ;;  %283 = vrot.lane.b32.xlu0 %v623_v4, %s585_s25 }
  0x35   : > { %407 = vperm.xlu0 %566, %v403_v7   ;;  %412 = vperm.xlu1 %567, %v404_v8  }
  0x87   : > { %v332_v18 = vpop.permute.xlu1 %331  ;;  %v297_v19 = vpop.permute.xlu0 %296 }
  0x8b   : > { %v310_v22 = vpop.permute.xlu1 %309  ;;  %v299_v23 = vpop.permute.xlu0 %298 }
  0x8c   : > { %v301_v25 = vsel %vm300_vm6, %v297_v19, %v299_v23  ;;  %v305_v26 = vsel %vm300_vm6, %v299_v23, 0 }
  0x8d   : > { %v307_v31 = vsel %vm279_vm8, %v301_v25, 0  ;;  %v308_v32 = vsel %vm280_vm9, %v305_v26, 0 }
  0x8e   : > { %v357_v38 = vrot.slane %v307_v31, 6  ;;  %v358_v39 = vrot.slane %v308_v32, 6 }
  0x8f   : > { %v323_v29 = vpop.permute.xlu1 %322  ;;  %v334_v30 = vpop.permute.xlu0 %333 }
  0x90   : > { %v336_v33 = vsel %vm335_vm7, %v332_v18, %v334_v30  ;;  %v340_v34 = vsel %vm335_vm7, %v334_v30, 0  ;;  %v390_v54 = vsel %vm366_vm10, %v627_v6, %v358_v39  ;;  %v387_v55 = vsel %vm366_vm10, %v623_v4, %v357_v38  ;;  %v568_v30 = vld [vmem:[%s714_s1] sm:$0xff]  }
  0x91   : > { %v343_v35 = vsel %vm280_vm9, %v340_v34, 0  ;;  %v342_v36 = vsel %vm279_vm8, %v336_v33, 0 }
  0x92   : > { %543 = vmatprep.subr.msk.bf16.mxu0 %vm366_vm10, %v343_v35  ;;  %v425_v37 = vsel %vm366_vm10, %v342_v36, 0 }
  0x93   : > { %v312_v40 = vpop.permute.xlu1 %311  ;;  %441 = vmatpush1.bf16.msra.mxu0 %v425_v37  ;;  %v325_v41 = vpop.permute.xlu0 %324 }
  0x94   : > { %v314_v42 = vsel %vm313_vm11, %v310_v22, %v312_v40  ;;  %v318_v43 = vsel %vm313_vm11, %v312_v40, 0  ;;  %v327_v44 = vsel %vm326_vm12, %v323_v29, %v325_v41  ;;  %v330_v45 = vsel %vm326_vm12, %v325_v41, 0 }
  0x95   : > { %v320_v46 = vsel %vm241_vm13, %v314_v42, 0  ;;  %v321_v47 = vsel %vm242_vm14, %v318_v43, 0  ;;  %v364_v50 = vrot.slane %v327_v44, 2  ;;  %v365_v51 = vrot.slane %v330_v45, 2 }
  0x96   : > { %v361_v48 = vrot.slane %v320_v46, 4  ;;  %v362_v49 = vrot.slane %v321_v47, 4 }
  0x97   : > { %v248_v52 = vpop.permute.xlu1 %247  ;;  %v246_v53 = vpop.permute.xlu0 %245 }
  0x98   : > { %v394_v56 = vsel %vm373_vm15, %v390_v54, %v362_v49  ;;  %v392_v57 = vsel %vm373_vm15, %v387_v55, %v361_v48  ;;  %v250_v62 = vsel %vm249_vm1, %v246_v53, %v248_v52  ;;  %v253_v63 = vsel %vm249_vm1, 0, %v246_v53 }
  0x99   : > { %v399_v58 = vsel %vm378_vm0, %v394_v56, %v365_v51  ;;  %v396_v59 = vsel %vm378_vm0, %v392_v57, %v364_v50  ;;  %v345_v8 = vrot.slane %v253_v63, 6  ;;  %v346_v9 = vrot.slane %v250_v62, 6 }
  0x9a   : > { %442 = vmatprep.subr.bf16.mxu0 %v399_v58 }
  0x9b   : > { %v257_v60 = vpop.permute.xlu1 %256  ;;  %443 = vmatpush1.bf16.msra.mxu0 %v396_v59  ;;  %v255_v61 = vpop.permute.xlu0 %254 }
  0x9c   : > { %v259_v0 = vsel %vm258_vm2, %v255_v61, %v257_v60  ;;  %v263_v1 = vsel %vm258_vm2, 0, %v255_v61 }
  0x9d   : > { %v281_v10 = vsel %vm279_vm8, %v263_v1, 0  ;;  %v282_v11 = vsel %vm280_vm9, %v259_v0, 0 }
  0x9e   : > { %v349_v18 = vrot.slane %v281_v10, 4  ;;  %v350_v19 = vrot.slane %v282_v11, 4 }
  0x9f   : > { %v218_v2 = vpop.permute.xlu1 %217  ;;  %v216_v3 = vpop.permute.xlu0 %215 }
  0xa0   : > { %v220_v4 = vsel %vm219_vm3, %v216_v3, %v218_v2  ;;  %v225_v5 = vsel %vm219_vm3, 0, %v216_v3 }
  0xa1   : > { %v243_v6 = vsel %vm241_vm13, %v225_v5, 0  ;;  %v244_v7 = vsel %vm242_vm14, %v220_v4, 0 }
  0xa2   : > { %v369_v14 = vsel %vm366_vm10, %v243_v6, %v345_v8  ;;  %v372_v15 = vsel %vm366_vm10, %v244_v7, %v346_v9 }
  0xa3   : > { %v286_v12 = vpop.permute.xlu1 %285  ;;  %v284_v13 = vpop.permute.xlu0 %283  ;;  %v377_v24 = vsel %vm373_vm15, %v372_v15, %v350_v19  ;;  %v375_v25 = vsel %vm373_vm15, %v369_v14, %v349_v18 }
  0xa4   : > { %v288_v16 = vsel %vm287_vm4, %v284_v13, %v286_v12  ;;  %v292_v17 = vsel %vm287_vm4, 0, %v284_v13 }
  0xa5   : > { %v294_v22 = vsel %vm241_vm13, %v292_v17, 0  ;;  %v295_v20 = vsel %vm242_vm14, %v288_v16, 0 }
  0xa6   : > { %v353_v23 = vrot.slane %v294_v22, 2  ;;  %v354_v21 = vrot.slane %v295_v20, 2 }
  0xa8   : > { %v383_v26 = vsel %vm378_vm0, %v377_v24, %v354_v21  ;;  %v380_v29 = vsel %vm378_vm0, %v375_v25, %v353_v23 }
  0xa9   : > { %444 = vmatprep.subr.bf16.mxu0 %v383_v26 }
  0xaa   : > { %445 = vmatpush1.bf16.msra.mxu0 %v380_v29 }
  0xad   : > { %544 = vmatmul.mubr.msk.bf16.vlgmr.msra.gmra.mxu0 %vm420_vm5, %v568_v30 }
  0xb0   : > { %v408_v27 = vpop.permute.xlu0 %407  ;;  %v413_v33 = vpop.permute.xlu1 %412 }
 0x16d   : > { %v464_v28 = vpop.f32.mrf.mxu0 }
 0x16e   : > { %v465_v31 = vadd.f32 %v464_v28, %v408_v27 }
 0x16f   : > { %v466_v32 = vpop.f32.mrf.mxu0 }
 0x170   : > { %473 = vst [vmem:[%s170_s8] sm:$0xff] %v465_v31  ;;  %v467_v34 = vadd.f32 %v466_v32, %v408_v27 }
 0x171   : > { %v468_v35 = vpop.f32.mrf.mxu0 }
 0x172   : > { %474 = vst [vmem:[%s170_s8 + $0x8] sm:$0xff] %v467_v34  ;;  %v469_v36 = vadd.f32 %v468_v35, %v413_v33 }
 0x173   : > { %v470_v37 = vpop.f32.mrf.mxu0 }
 0x174   : > { %475 = vst [vmem:[%s170_s8 + $0x10] sm:$0xff] %v469_v36  ;;  %v471_v38 = vadd.f32 %v470_v37, %v413_v33 }
 0x176   : > { %476 = vst [vmem:[%s170_s8 + $0x18] sm:$0xff] %v471_v38 }
 0x177 PF: > { %s13_s12 = sadd.s32 1, %s575_s12  }
 0x178   : > { %p10_p4 = scmp.ge.s32.totalorder %s13_s12, 4  }
 0x17a   :  { %12 = sbr.rel (!%p10_p4) target bundleno = 1 (0x1), region = 62 }

// kernel: autoencoder_forward.9
= control target key start
LH: loop header
LB: loop body
LE: loop exit
PB: predicated region body
PF: predicated region fallthrough
CT: control target
= control target key end

     0   :  { %s469_s12 = smov 0   ;;  %s527_s0 = inlined_call_operand.vmem [shape: f32[2,16,16], index: 0, kind: input, shape index: {}]   ;;  %s528_s1 = inlined_call_operand.vmem [shape: bf16[16,144], index: 1, kind: input, shape index: {}]   ;;  %s529_s2 = inlined_call_operand.vmem [shape: f32[16,1], index: 2, kind: input, shape index: {}]   ;;  %s530_s3 = inlined_call_operand.vmem [shape: f32[2,16,16], index: 3, kind: output, shape index: {}]  }
   0x1 LB: > { %s392_s13 = sadd.s32 4294967295, %s438_s12   ;;  %p396_p0 = scmp.ge.s32.totalorder %s438_s12, 1  ;;  %s438_s12 = sphi %s469_s12, %s13_s12  }
   0x2   : > { %p137_p1 = scmp.lt.s32.totalorder %s438_s12, 3 }
   0x4   : > { %p138_p2 = pnand %p396_p0, %p137_p1 }
   0x5   : > { %p161_p3 = scmp.lt.s32.totalorder (!%p138_p2), %s392_s13, 1  ;;  %s441_s18 = smov (!%p138_p2), 124  }
   0x6   : > { %141 = sbr.rel (%p138_p2) target bundleno = 369 (0x171), region = 32  ;;  %s442_s19 = smov (!%p138_p2), 127  }
   0x7   : > { %s443_s20 = smov (!%p138_p2), 125   ;;  %s444_s21 = smov (!%p138_p2), 1  }
   0x8   : > { %s445_s22 = smov (!%p138_p2), 3   ;;  %s446_s23 = smov (!%p138_p2), 4  }
   0x9   : > { %s447_s24 = smov (!%p138_p2), 5   ;;  %s448_s25 = smov (!%p138_p2), 123  }
   0xb   : > { %v440_v0 = vmov 0   ;;  %s532_s13 = smov (!%p161_p3, %s392_s13), 1  ;;  %v431_v4 = vld [vmem:[%s528_s1 + $0x4] ss:$8 sps:$4 sm:$0xff]   ;;  %vm290_vm0 = vcmask 130048   ;;  %v177_v7 = vlaneseq  ;;  %vm256_vm5 = vcmask 97280  }
   0xc   : > { %294 = vmatprep.subr.bf16.mxu0 %v440_v0  ;;  %427 = vset.pattern.permute.xlu0 %v440_v0  ;;  %s408_s14 = sshll.u32 %s532_s13, 4  ;;  %v269_v5 = vld [vmem:[%s529_s2] sm:$0xff]  ;;  %v270_v6 = vld [vmem:[%s529_s2 + $0x8] sm:$0xff]  ;;  %vm249_vm6 = vcmask 105472   ;;  %vm242_vm7 = vcmask 121856   ;;  %vm235_vm10 = vcmask 7168  }
   0xd   : > { %428 = vset.pattern.permute.xlu1 %v440_v0  ;;  %s165_s17 = scalar_lea.vmem %s527_s0, %s408_s14  ;;  %405 = vmatprep.mubr.msk.bf16.mxu0 %vm290_vm0, %v431_v4  ;;  %v178_v8 = vand.u32 127, %v177_v7  ;;  %v206_v10 = vshrl.u32 %v177_v7, 7  ;;  %vm219_vm11 = vcmask 23552   ;;  %vm213_vm12 = vcmask 31744   ;;  %v429_v37 = vld [vmem:[%s528_s1] ss:$8 sps:$4 sm:$0xff]   ;;  %s170_s9 = scalar_lea.vmem %s530_s3, %s408_s14 }
   0xe   : > { %v174_v1 = vld [vmem:[%s165_s17] sm:$0xff]  ;;  %v175_v2 = vld [vmem:[%s165_s17 + $0x8] sm:$0xff]  ;;  %vm196_vm13 = vcmask 39936   ;;  %vm403_vm14 = vmneg %vm213_vm12  ;;  %vm262_vm15 = vcmask 89088  }
   0xf   : > { %v176_v3 = vpack.c.bf16 %v175_v2, %v174_v1  ;;  %v183_v9 = vand.u32 3, %v178_v8  ;;  %v207_v11 = vsub.s32 0, %v206_v10 }
  0x11   : > { %254 = vrot.lane.b32.xlu0 %v176_v3, %s441_s18  ;;  %240 = vrot.lane.b32.xlu1 %v176_v3, %s442_s19  ;;  %vm191_vm1 = vcmp.ge.s32.totalorder %v183_v9, 1  ;;  %vm192_vm2 = vcmp.le.s32.totalorder %v183_v9, 2 }
  0x12   : > { %vm203_vm3 = vmpackc.low %vm191_vm1, %vm191_vm1 }
  0x13   : > { %vm225_vm4 = vmpackc.low %vm192_vm2, %vm192_vm2  ;;  %v204_v12 = vsel %vm203_vm3, 65537, %v440_v0 }
  0x14   : > { %v226_v13 = vsel %vm225_vm4, 65537, %v440_v0  ;;  %v208_v14 = vrot.slane %v204_v12, %v207_v11 }
  0x15   : > { %247 = vrot.lane.b32.xlu0 %v176_v3, %s443_s20  ;;  %233 = vrot.lane.b32.xlu1 %v176_v3, %s444_s21  ;;  %v230_v17 = vrot.slane %v226_v13, %v207_v11 }
  0x16   : > { %vm209_vm8 = vcmp.ne.s16.totalorder %v208_v14, 0 }
  0x17   : > { %vm231_vm9 = vcmp.ne.s16.totalorder %v230_v17, 0 }
  0x19   : > { %217 = vrot.lane.b32.xlu0 %v176_v3, %s445_s22  ;;  %211 = vrot.lane.b32.xlu1 %v176_v3, %s446_s23 }
  0x1d   : > { %194 = vrot.lane.b32.xlu0 %v176_v3, %s447_s24  ;;  %260 = vrot.lane.b32.xlu1 %v176_v3, %s448_s25 }
  0x21   : > { %273 = vperm.xlu0 %427, %v269_v5   ;;  %278 = vperm.xlu1 %428, %v270_v6  }
  0x83   : > { %v255_v15 = vpop.permute.xlu0 %254  ;;  %v241_v18 = vpop.permute.xlu1 %240 }
  0x84   : > { %v258_v16 = vsel %vm256_vm5, %v255_v15, 0  ;;  %v244_v21 = vsel %vm242_vm7, %v241_v18, 0 }
  0x85   : > { %295 = vmatpush1.bf16.msra.mxu0 %v258_v16  ;;  %v246_v23 = vsel %vm231_vm9, %v244_v21, 0 }
  0x86   : > { %296 = vmatprep.subr.bf16.mxu0 %v440_v0 }
  0x87   : > { %v248_v19 = vpop.permute.xlu0 %247  ;;  %v234_v24 = vpop.permute.xlu1 %233 }
  0x88   : > { %v251_v20 = vsel %vm249_vm6, %v248_v19, 0  ;;  %v237_v25 = vsel %vm235_vm10, 0, %v234_v24 }
  0x89   : > { %v253_v22 = vsel %vm209_vm8, %v251_v20, 0  ;;  %v239_v27 = vsel %vm209_vm8, %v237_v25, 0 }
  0x8a   : > { %297 = vmatpush1.bf16.msra.mxu0 %v253_v22 }
  0x8b   : > { %298 = vmatprep.subr.bf16.mxu0 %v440_v0  ;;  %v218_v26 = vpop.permute.xlu0 %217  ;;  %v212_v30 = vpop.permute.xlu1 %211 }
  0x8c   : > { %v221_v28 = vsel %vm219_vm11, 0, %v218_v26 }
  0x8d   : > { %v232_v29 = vsel %vm231_vm9, %v221_v28, 0 }
  0x8e   : > { %299 = vmatpush1.bf16.msra.mxu0 %v246_v23 }
  0x8f   : > { %300 = vmatprep.subr.bf16.mxu0 %v440_v0  ;;  %v195_v31 = vpop.permute.xlu0 %194  ;;  %v261_v33 = vpop.permute.xlu1 %260 }
  0x90   : > { %v199_v32 = vsel %vm196_vm13, 0, %v195_v31  ;;  %v264_v35 = vsel %vm262_vm15, %v261_v33, 0 }
  0x91   : > { %v210_v34 = vsel %vm209_vm8, %v199_v32, 0  ;;  %v266_v36 = vsel %vm231_vm9, %v264_v35, 0 }
  0x92   : > { %301 = vmatpush1.bf16.msra.mxu0 %v176_v3 }
  0x93   : > { %302 = vmatprep.subr.bf16.mxu0 %v440_v0 }
  0x96   : > { %303 = vmatpush1.bf16.msra.mxu0 %v239_v27 }
  0x97   : > { %304 = vmatprep.subr.bf16.mxu0 %v440_v0 }
  0x9a   : > { %305 = vmatpush1.bf16.msra.mxu0 %v232_v29 }
  0x9b   : > { %306 = vmatprep.subr.bf16.mxu0 %v440_v0 }
  0x9c   : > { %v274_v38 = vpop.permute.xlu0 %273  ;;  %v279_v42 = vpop.permute.xlu1 %278 }
  0x9e   : > { %404 = vmatpush1.bf16.msk.msra.mxu0 %vm403_vm14, %v212_v30 }
  0x9f   : > { %308 = vmatprep.subr.bf16.mxu0 %v440_v0 }
  0xa2   : > { %309 = vmatpush1.bf16.msra.mxu0 %v210_v34 }
  0xa3   : > { %324 = vmatprep.subr.bf16.mxu0 %v440_v0 }
  0xa6   : > { %325 = vmatpush2.bf16.msra.mxu0 %v266_v36 }
  0xa9   : > { %327 = vmatmul.mubr.bf16.vlgmr.msra.gmra.mxu0 %v429_v37 }
 0x169   : > { %v328_v39 = vpop.f32.mrf.mxu0 }
 0x16a   : > { %v329_v40 = vadd.f32 %v328_v39, %v274_v38 }
 0x16b   : > { %v330_v41 = vpop.f32.mrf.mxu0 }
 0x16c   : > { %335 = vst.msk [vmem:[%s170_s9] sm:$0xff] %vm290_vm0, %v329_v40 }
 0x16d   : > { %v331_v43 = vpop.f32.mrf.mxu0 }
 0x16e   : > { %v332_v44 = vadd.f32 %v331_v43, %v279_v42 }
 0x16f   : > { %v333_v45 = vpop.f32.mrf.mxu0 }
 0x170   : > { %336 = vst.msk [vmem:[%s170_s9 + $0x8] sm:$0xff] %vm290_vm0, %v332_v44 }
 0x171 PF: > { %s13_s12 = sadd.s32 1, %s438_s12  }
 0x172   : > { %p10_p4 = scmp.ge.s32.totalorder %s13_s12, 4  }
 0x174   :  { %12 = sbr.rel (!%p10_p4) target bundleno = 1 (0x1), region = 62 }

// kernel: autoencoder_forward.10
= control target key start
LH: loop header
LB: loop body
LE: loop exit
PB: predicated region body
PF: predicated region fallthrough
CT: control target
= control target key end

     0   :  { %s1166_s21 = smov 0   ;;  %s1441_s0 = inlined_call_operand.vmem [shape: f32[2,16,64], index: 0, kind: input, shape index: {}]   ;;  %s1442_s1 = inlined_call_operand.vmem [shape: f32[2,16,64], index: 1, kind: input, shape index: {}]   ;;  %s1443_s2 = inlined_call_operand.vmem [shape: bf16[32,288], index: 2, kind: input, shape index: {}]   ;;  %s1444_s3 = inlined_call_operand.vmem [shape: f32[32,1], index: 3, kind: input, shape index: {}]   ;;  %s1445_s4 = inlined_call_operand.vmem [shape: bf16[32,288], index: 4, kind: input, shape index: {}]   ;;  %s1446_s5 = inlined_call_operand.vmem [shape: f32[32,1], index: 5, kind: input, shape index: {}]   ;;  %s1447_s6 = inlined_call_operand.vmem [shape: f32[2,32,64], index: 6, kind: output, shape index: {}]  }
   0x1 LB: > { %s943_s22 = sadd.s32 4294967295, %s1120_s21   ;;  %p947_p0 = scmp.ge.s32.totalorder %s1120_s21, 1  ;;  %s1120_s21 = sphi %s1166_s21, %s16_s21  }
   0x2   : > { %p222_p1 = scmp.lt.s32.totalorder %s1120_s21, 3 }
   0x4   : > { %p223_p2 = pnand %p947_p0, %p222_p1 }
   0x5   : > { %p257_p3 = scmp.lt.s32.totalorder (!%p223_p2), %s943_s22, 1  ;;  %s1123_s30 = smov (!%p223_p2), 121  }
   0x6   : > { %226 = sbr.rel (%p223_p2) target bundleno = 751 (0x2ef), region = 44  ;;  %s1124_s7 = smov (!%p223_p2), 120  }
   0x7   : > { %s1125_s8 = smov (!%p223_p2), 127   ;;  %s1126_s9 = smov (!%p223_p2), 1  }
   0x8   : > { %s1127_s10 = smov (!%p223_p2), 7   ;;  %s1128_s11 = smov (!%p223_p2), 8  }
   0x9   : > { %s1129_s12 = smov (!%p223_p2), 9   ;;  %s1130_s17 = smov (!%p223_p2), 119  }
   0xb   : > { %v1122_v0 = vmov 0   ;;  %s1451_s22 = smov (!%p257_p3, %s943_s22), 1  ;;  %v1100_v7 = vld [vmem:[%s1443_s2 + $0x4] ss:$12 sps:$4 sm:$0xff]   ;;  %v1101_v8 = vld [vmem:[%s1443_s2 + $0x8] ss:$12 sps:$4 sm:$0xff]   ;;  %v275_v13 = vlaneseq }
   0xc   : > { %1097 = vset.pattern.permute.xlu1 %v1122_v0  ;;  %1096 = vset.pattern.permute.xlu0 %v1122_v0  ;;  %s980_s23 = sshll.u32 %s1451_s22, 4  ;;  %vm480_vm0 = vcmask 261120   ;;  %v429_v9 = vld [vmem:[%s1444_s3 + $0x18] sm:$0xff]  ;;  %v428_v10 = vld [vmem:[%s1444_s3 + $0x10] sm:$0xff]  ;;  %v427_v11 = vld [vmem:[%s1444_s3 + $0x8] sm:$0xff]  ;;  %vm353_vm5 = vcmask 465920  }
   0xd   : > { %s266_s26 = scalar_lea.vmem %s1442_s1, %s980_s23  ;;  %s261_s29 = scalar_lea.vmem %s1441_s0, %s980_s23  ;;  %519 = vmatprep.mubr.bf16.mxu0 %v1100_v7  ;;  %1051 = vmatprep.mubr.msk.bf16.mxu1 %vm480_vm0, %v1101_v8  ;;  %v426_v12 = vld [vmem:[%s1444_s3] sm:$0xff]  ;;  %v276_v14 = vand.u32 127, %v275_v13  ;;  %v310_v16 = vshrl.u32 %v275_v13, 7  ;;  %vm360_vm7 = vcmask 457728   ;;  %vm346_vm8 = vcmask 515072  }
   0xe   : > { %v292_v1 = vld [vmem:[%s266_s26] sm:$0xff]  ;;  %v293_v2 = vld [vmem:[%s266_s26 + $0x8] sm:$0xff]  ;;  %vm339_vm10 = vcmask 7168   ;;  %vm323_vm11 = vcmask 56320   ;;  %vm317_vm12 = vcmask 64512   ;;  %vm300_vm14 = vcmask 72704  }
   0xf   : > { %v289_v3 = vld [vmem:[%s261_s29] sm:$0xff]  ;;  %v1183_v4 = vpack.c.bf16 %v293_v2, %v292_v1  ;;  %v290_v5 = vld [vmem:[%s261_s29 + $0x8] sm:$0xff]  ;;  %v281_v15 = vand.u32 7, %v276_v14  ;;  %v311_v17 = vsub.s32 0, %v310_v16  ;;  %vm1269_vm13 = vmneg %vm317_vm12  ;;  %vm366_vm15 = vcmask 449536   ;;  %s982_s18 = sshll.u32 %s1451_s22, 5 }
  0x10   : > { %v1185_v6 = vpack.c.bf16 %v290_v5, %v289_v3  ;;  %v1098_v59 = vld [vmem:[%s1443_s2] ss:$12 sps:$4 sm:$0xff]   ;;  %v1103_v61 = vld [vmem:[%s1443_s2 + $0x1c] ss:$12 sps:$4 sm:$0xff]   ;;  %v1105_v62 = vld [vmem:[%s1443_s2 + $0x18] ss:$12 sps:$4 sm:$0xff]  }
  0x11   : > { %401 = vrot.lane.b32.xlu0 %v1183_v4, %s1123_s30  ;;  %vm295_vm1 = vcmp.ge.s32.totalorder %v281_v15, 1  ;;  %vm296_vm3 = vcmp.le.s32.totalorder %v281_v15, 6  ;;  %v1102_v60 = vld [vmem:[%s1443_s2 + $0x20] ss:$12 sps:$4 sm:$0xff]  }
  0x12   : > { %351 = vrot.lane.b32.xlu1 %v1185_v6, %s1123_s30  ;;  %vm307_vm2 = vmpackc.low %vm295_vm1, %vm295_vm1 }
  0x13   : > { %v308_v18 = vsel %vm307_vm2, 65537, %v1122_v0  ;;  %vm329_vm4 = vmpackc.low %vm296_vm3, %vm296_vm3 }
  0x14   : > { %v1238_v19 = vrot.slane %v308_v18, %v311_v17  ;;  %v330_v20 = vsel %vm329_vm4, 65537, %v1122_v0 }
  0x15   : > { %358 = vrot.lane.b32.xlu0 %v1185_v6, %s1124_s7  ;;  %v1241_v22 = vrot.slane %v330_v20, %v311_v17 }
  0x16   : > { %395 = vrot.lane.b32.xlu1 %v1183_v4, %s1125_s8  ;;  %vm313_vm6 = vcmp.ne.s16.totalorder %v1238_v19, 0 }
  0x17   : > { %vm335_vm9 = vcmp.ne.s16.totalorder %v1241_v22, 0 }
  0x19   : > { %344 = vrot.lane.b32.xlu0 %v1185_v6, %s1125_s8 }
  0x1a   : > { %389 = vrot.lane.b32.xlu1 %v1183_v4, %s1126_s9 }
  0x1d   : > { %337 = vrot.lane.b32.xlu0 %v1185_v6, %s1126_s9 }
  0x1e   : > { %383 = vrot.lane.b32.xlu1 %v1183_v4, %s1127_s10 }
  0x21   : > { %321 = vrot.lane.b32.xlu0 %v1185_v6, %s1127_s10 }
  0x22   : > { %378 = vrot.lane.b32.xlu1 %v1183_v4, %s1128_s11 }
  0x25   : > { %372 = vrot.lane.b32.xlu0 %v1183_v4, %s1129_s12 }
  0x26   : > { %315 = vrot.lane.b32.xlu1 %v1185_v6, %s1128_s11 }
  0x29   : > { %298 = vrot.lane.b32.xlu0 %v1185_v6, %s1129_s12 }
  0x2a   : > { %364 = vrot.lane.b32.xlu1 %v1185_v6, %s1130_s17 }
  0x2d   : > { %412 = vrot.lane.b32.xlu0 %v1183_v4, %s1130_s17 }
  0x2e   : > { %407 = vrot.lane.b32.xlu1 %v1183_v4, %s1124_s7 }
  0x31   : > { %442 = vperm.xlu0 %1096, %v428_v10  }
  0x32   : > { %447 = vperm.xlu1 %1097, %v429_v9  }
  0x35   : > { %437 = vperm.xlu0 %1096, %v427_v11  }
  0x36   : > { %432 = vperm.xlu1 %1097, %v426_v12  }
  0x83   : > { %v402_v21 = vpop.permute.xlu0 %401 }
  0x84   : > { %v404_v23 = vsel %vm353_vm5, %v402_v21, 0  ;;  %v352_v24 = vpop.permute.xlu1 %351 }
  0x85   : > { %1063 = vmatprep.subr.msk.bf16.mxu0 %vm313_vm6, %v404_v23  ;;  %v355_v28 = vsel %vm353_vm5, %v352_v24, 0 }
  0x86   : > { %v357_v31 = vsel %vm313_vm6, %v355_v28, 0 }
  0x87   : > { %v359_v25 = vpop.permute.xlu0 %358 }
  0x88   : > { %v362_v26 = vsel %vm360_vm7, %v359_v25, 0  ;;  %v396_v27 = vpop.permute.xlu1 %395 }
  0x89   : > { %984 = vmatpush3.bf16.msra.mxu0 %v362_v26  ;;  %v398_v29 = vsel %vm346_vm8, %v396_v27, 0 }
  0x8a   : > { %1064 = vmatprep.subr.msk.bf16.mxu0 %vm335_vm9, %v398_v29 }
  0x8b   : > { %v345_v30 = vpop.permute.xlu0 %344 }
  0x8c   : > { %v348_v32 = vsel %vm346_vm8, %v345_v30, 0  ;;  %v390_v33 = vpop.permute.xlu1 %389 }
  0x8d   : > { %986 = vmatpush3.bf16.msra.mxu0 %v357_v31  ;;  %v350_v34 = vsel %vm335_vm9, %v348_v32, 0  ;;  %v392_v35 = vsel %vm339_vm10, 0, %v390_v33 }
  0x8e   : > { %987 = vmatprep.subr.bf16.mxu0 %v1183_v4 }
  0x8f   : > { %v338_v36 = vpop.permute.xlu0 %337 }
  0x90   : > { %v384_v37 = vpop.permute.xlu1 %383  ;;  %v341_v38 = vsel %vm339_vm10, 0, %v338_v36 }
  0x91   : > { %988 = vmatpush3.bf16.msra.mxu0 %v350_v34  ;;  %v386_v39 = vsel %vm323_vm11, 0, %v384_v37  ;;  %v343_v42 = vsel %vm313_vm6, %v341_v38, 0 }
  0x92   : > { %1065 = vmatprep.subr.msk.bf16.mxu0 %vm313_vm6, %v392_v35 }
  0x93   : > { %v322_v40 = vpop.permute.xlu0 %321 }
  0x94   : > { %v379_v41 = vpop.permute.xlu1 %378  ;;  %v325_v43 = vsel %vm323_vm11, 0, %v322_v40  ;;  %v1109_v40 = vld [vmem:[%s1445_s4 + $0x8] ss:$12 sps:$4 sm:$0xff]  }
  0x95   : > { %990 = vmatpush3.bf16.msra.mxu0 %v1185_v6  ;;  %v336_v47 = vsel %vm335_vm9, %v325_v43, 0  ;;  %v704_v43 = vld [vmem:[%s1446_s5 + $0x18] sm:$0xff] }
  0x96   : > { %1066 = vmatprep.subr.msk.bf16.mxu0 %vm335_vm9, %v386_v39  ;;  %v1108_v39 = vld [vmem:[%s1445_s4 + $0x4] ss:$12 sps:$4 sm:$0xff]  }
  0x97   : > { %v373_v44 = vpop.permute.xlu0 %372 }
  0x98   : > { %v316_v46 = vpop.permute.xlu1 %315  ;;  %v375_v48 = vsel %vm300_vm14, 0, %v373_v44  ;;  %v703_v44 = vld [vmem:[%s1446_s5 + $0x10] sm:$0xff] }
  0x99   : > { %992 = vmatpush3.bf16.msra.mxu0 %v343_v42  ;;  %v701_v42 = vld [vmem:[%s1446_s5] sm:$0xff] }
  0x9a   : > { %993 = vmatprep.subr.msk.bf16.mxu0 %vm1269_vm13, %v379_v41  ;;  %v702_v41 = vld [vmem:[%s1446_s5 + $0x8] sm:$0xff] }
  0x9b   : > { %v299_v49 = vpop.permute.xlu0 %298 }
  0x9c   : > { %v365_v50 = vpop.permute.xlu1 %364  ;;  %v303_v51 = vsel %vm300_vm14, 0, %v299_v49 }
  0x9d   : > { %994 = vmatpush3.bf16.msra.mxu0 %v336_v47  ;;  %v368_v52 = vsel %vm366_vm15, %v365_v50, 0  ;;  %v314_v57 = vsel %vm313_vm6, %v303_v51, 0 }
  0x9e   : > { %1067 = vmatprep.subr.msk.bf16.mxu0 %vm313_vm6, %v375_v48 }
  0x9f   : > { %v413_v53 = vpop.permute.xlu0 %412 }
  0xa0   : > { %v415_v54 = vsel %vm366_vm15, %v413_v53, 0  ;;  %v408_v55 = vpop.permute.xlu1 %407 }
  0xa1   : > { %996 = vmatpush3.bf16.msk.msra.mxu0 %vm1269_vm13, %v316_v46  ;;  %1069 = vmatprep.subr.msk.bf16.mxu1 %vm335_vm9, %v415_v54  ;;  %v417_v56 = vsel %vm335_vm9, %v415_v54, 0  ;;  %v410_v58 = vsel %vm360_vm7, %v408_v55, 0 }
  0xa2   : > { %1068 = vmatprep.subr.msk.bf16.mxu0 %vm335_vm9, %v368_v52  ;;  %1048 = vmatpush3.bf16.msra.mxu1 %v417_v56 }
  0xa3   : > { %1070 = vmatprep.subr.msk.bf16.mxu1 %vm360_vm7, %v408_v55 }
  0xa5   : > { %998 = vmatpush3.bf16.msra.mxu0 %v314_v57 }
  0xa6   : > { %1050 = vmatpush3.bf16.msra.mxu1 %v410_v58 }
  0xa8   : > { %520 = vmatmul.mubr.bf16.vlgmr.msra.gmra.mxu0 %v1098_v59 }
  0xa9   : > { %1052 = vmatmul.mubr.msk.bf16.vlgmr.msra.gmra.mxu1 %vm480_vm0, %v1102_v60  ;;  %527 = vmatprep.mubr.bf16.mxu0 %v1103_v61 }
  0xaa   : > { %793 = vmatprep.mubr.bf16.mxu1 %v1108_v39 }
  0xac   : > { %v443_v2 = vpop.permute.xlu0 %442 }
  0xad   : > { %v448_v4 = vpop.permute.xlu1 %447 }
  0xb0   : > { %528 = vmatmul.mubr.bf16.gmra.mxu0 %v1105_v62  ;;  %v438_v9 = vpop.permute.xlu0 %437 }
  0xb1   : > { %v433_v14 = vpop.permute.xlu1 %432  ;;  %1059 = vmatprep.mubr.msk.bf16.mxu0 %vm480_vm0, %v1109_v40 }
 0x168   : > { %v999_v63 = vpop.f32.mrf.mxu0 }
 0x169   : > { %v1053_v1 = vpop.f32.mrf.mxu1 }
 0x16a   : > { %v1000_v0 = vpop.f32.mrf.mxu0 }
 0x16b   : > { %v570_v6 = vpop.f32.mrf.mxu1  ;;  %v1001_v12 = vadd.f32 %v1000_v0, %v999_v63 }
 0x16c   : > { %v1002_v3 = vpop.f32.mrf.mxu0 }
 0x16d   : > { %v1054_v10 = vpop.f32.mrf.mxu1  ;;  %v522_v21 = vadd.f32 %v1001_v12, %v433_v14 }
 0x16e   : > { %v1003_v5 = vpop.f32.mrf.mxu0 }
 0x16f   : > { %v1004_v8 = vadd.f32 %v1003_v5, %v1002_v3  ;;  %v573_v18 = vpop.f32.mrf.mxu1  ;;  %v571_v27 = vadd.f32 %v570_v6, %v522_v21 }
 0x170   : > { %v1005_v7 = vpop.f32.mrf.mxu0 }
 0x171   : > { %v525_v16 = vadd.f32 %v1004_v8, %v438_v9  ;;  %v589_v32 = vmul.f32 0.1, %v571_v27  ;;  %vm585_vm4 = vcmp.ge.f32.partialorder %v571_v27, 0.0 }
 0x172   : > { %v1006_v11 = vpop.f32.mrf.mxu0 }
 0x173   : > { %v1007_v13 = vadd.f32 %v1006_v11, %v1005_v7  ;;  %v574_v25 = vadd.f32 %v573_v18, %v525_v16  ;;  %v593_v37 = vsel %vm585_vm4, %v571_v27, %v589_v32  ;;  %v1110_v18 = vld [vmem:[%s1445_s4 + $0x20] ss:$12 sps:$4 sm:$0xff]  }
 0x174   : > { %v1008_v15 = vpop.f32.mrf.mxu0 }
 0x175   : > { %v530_v17 = vadd.f32 %v1007_v13, %v443_v2  ;;  %v590_v30 = vmul.f32 0.1, %v574_v25  ;;  %vm586_vm3 = vcmp.ge.f32.partialorder %v574_v25, 0.0 }
 0x176   : > { %v1009_v20 = vpop.f32.mrf.mxu0 }
 0x177   : > { %v579_v23 = vadd.f32 %v1053_v1, %v530_v17  ;;  %v1010_v24 = vadd.f32 %v1009_v20, %v1008_v15  ;;  %v594_v36 = vsel %vm586_vm3, %v574_v25, %v590_v30  ;;  %v1106_v15 = vld [vmem:[%s1445_s4] ss:$12 sps:$4 sm:$0xff]   ;;  %v1111_v17 = vld [vmem:[%s1445_s4 + $0x1c] ss:$12 sps:$4 sm:$0xff]   ;;  %v1113_v20 = vld [vmem:[%s1445_s4 + $0x18] ss:$12 sps:$4 sm:$0xff]  }
 0x178   : > { %v1314_v38 = vpack.c.bf16 %v594_v36, %v593_v37 }
 0x179   : > { %v533_v26 = vadd.f32 %v1010_v24, %v448_v4  ;;  %v591_v28 = vmul.f32 0.1, %v579_v23  ;;  %vm587_vm1 = vcmp.ge.f32.partialorder %v579_v23, 0.0 }
 0x17b   : > { %v582_v29 = vadd.f32 %v1054_v10, %v533_v26  ;;  %v595_v33 = vsel %vm587_vm1, %v579_v23, %v591_v28 }
 0x17d   : > { %vm588_vm2 = vcmp.ge.f32.partialorder %v582_v29, 0.0  ;;  %v592_v31 = vmul.f32 0.1, %v582_v29 }
 0x17f   : > { %v596_v34 = vsel %vm588_vm2, %v582_v29, %v592_v31 }
 0x180   : > { %v1308_v35 = vpack.c.bf16 %v596_v34, %v595_v33 }
 0x182   : > { %673 = vrot.lane.b32.xlu0 %v1308_v35, %s1124_s7  ;;  %637 = vrot.lane.b32.xlu1 %v1308_v35, %s1126_s9 }
 0x186   : > { %671 = vrot.lane.b32.xlu0 %v1314_v38, %s1124_s7  ;;  %635 = vrot.lane.b32.xlu1 %v1314_v38, %s1126_s9  ;;  %s1428_s9 = scalar_lea.vmem %s1447_s6, %s982_s18 }
 0x18a   : > { %661 = vrot.lane.b32.xlu0 %v1308_v35, %s1123_s30  ;;  %625 = vrot.lane.b32.xlu1 %v1308_v35, %s1127_s10 }
 0x18e   : > { %659 = vrot.lane.b32.xlu0 %v1314_v38, %s1123_s30  ;;  %623 = vrot.lane.b32.xlu1 %v1314_v38, %s1127_s10 }
 0x192   : > { %615 = vrot.lane.b32.xlu0 %v1308_v35, %s1128_s11  ;;  %649 = vrot.lane.b32.xlu1 %v1308_v35, %s1125_s8 }
 0x196   : > { %613 = vrot.lane.b32.xlu0 %v1314_v38, %s1128_s11  ;;  %647 = vrot.lane.b32.xlu1 %v1314_v38, %s1125_s8 }
 0x19a   : > { %601 = vrot.lane.b32.xlu0 %v1314_v38, %s1129_s12  ;;  %603 = vrot.lane.b32.xlu1 %v1308_v35, %s1129_s12 }
 0x19e   : > { %681 = vrot.lane.b32.xlu0 %v1314_v38, %s1130_s17  ;;  %683 = vrot.lane.b32.xlu1 %v1308_v35, %s1130_s17 }
 0x1a2   : > { %712 = vperm.xlu0 %1096, %v702_v41   ;;  %707 = vperm.xlu1 %1097, %v701_v42  }
 0x1a6   : > { %722 = vperm.xlu0 %1096, %v704_v43   ;;  %717 = vperm.xlu1 %1097, %v703_v44  }
 0x1f4   : > { %v638_v46 = vpop.permute.xlu1 %637  ;;  %v674_v47 = vpop.permute.xlu0 %673 }
 0x1f5   : > { %v643_v48 = vsel %vm339_vm10, 0, %v638_v46  ;;  %1071 = vmatprep.subr.msk.bf16.mxu1 %vm360_vm7, %v674_v47 }
 0x1f6   : > { %v646_v49 = vsel %vm313_vm6, %v643_v48, 0 }
 0x1f7   : > { %1016 = vmatpush3.bf16.msra.mxu1 %v646_v49 }
 0x1f8   : > { %v636_v50 = vpop.permute.xlu1 %635  ;;  %v672_v51 = vpop.permute.xlu0 %671 }
 0x1f9   : > { %v640_v52 = vsel %vm339_vm10, 0, %v636_v50  ;;  %1072 = vmatprep.subr.msk.bf16.mxu1 %vm360_vm7, %v672_v51 }
 0x1fa   : > { %v645_v53 = vsel %vm313_vm6, %v640_v52, 0 }
 0x1fb   : > { %1018 = vmatpush3.bf16.msra.mxu1 %v645_v53 }
 0x1fc   : > { %v626_v54 = vpop.permute.xlu1 %625  ;;  %v662_v55 = vpop.permute.xlu0 %661 }
 0x1fd   : > { %v631_v56 = vsel %vm323_vm11, 0, %v626_v54  ;;  %v667_v57 = vsel %vm353_vm5, %v662_v55, 0 }
 0x1fe   : > { %v634_v58 = vsel %vm335_vm9, %v631_v56, 0  ;;  %1073 = vmatprep.subr.msk.bf16.mxu1 %vm313_vm6, %v667_v57 }
 0x1ff   : > { %1020 = vmatpush3.bf16.msra.mxu1 %v634_v58 }
 0x200   : > { %v624_v59 = vpop.permute.xlu1 %623  ;;  %v660_v60 = vpop.permute.xlu0 %659 }
 0x201   : > { %v628_v61 = vsel %vm323_vm11, 0, %v624_v59  ;;  %v664_v62 = vsel %vm353_vm5, %v660_v60, 0  ;;  %vm871_vm5 = vcmask 523264  }
 0x202   : > { %v633_v63 = vsel %vm335_vm9, %v628_v61, 0  ;;  %1074 = vmatprep.subr.msk.bf16.mxu1 %vm313_vm6, %v664_v62 }
 0x203   : > { %1022 = vmatpush3.bf16.msra.mxu1 %v633_v63 }
 0x204   : > { %v650_v0 = vpop.permute.xlu1 %649  ;;  %v616_v1 = vpop.permute.xlu0 %615 }
 0x205   : > { %v655_v2 = vsel %vm346_vm8, %v650_v0, 0 }
 0x206   : > { %1075 = vmatprep.subr.msk.bf16.mxu1 %vm335_vm9, %v655_v2 }
 0x207   : > { %1024 = vmatpush3.bf16.msk.msra.mxu1 %vm1269_vm13, %v616_v1 }
 0x208   : > { %v648_v3 = vpop.permute.xlu1 %647  ;;  %v614_v4 = vpop.permute.xlu0 %613 }
 0x209   : > { %v652_v5 = vsel %vm346_vm8, %v648_v3, 0 }
 0x20a   : > { %1076 = vmatprep.subr.msk.bf16.mxu1 %vm335_vm9, %v652_v5 }
 0x20b   : > { %1026 = vmatpush3.bf16.msk.msra.mxu1 %vm1269_vm13, %v614_v4 }
 0x20c   : > { %v604_v6 = vpop.permute.xlu1 %603  ;;  %1027 = vmatprep.subr.bf16.mxu1 %v1308_v35  ;;  %v602_v7 = vpop.permute.xlu0 %601 }
 0x20d   : > { %v609_v8 = vsel %vm300_vm14, 0, %v604_v6  ;;  %v606_v10 = vsel %vm300_vm14, 0, %v602_v7 }
 0x20e   : > { %v612_v9 = vsel %vm313_vm6, %v609_v8, 0  ;;  %v611_v45 = vsel %vm313_vm6, %v606_v10, 0 }
 0x20f   : > { %1028 = vmatpush3.bf16.msra.mxu1 %v612_v9 }
 0x210   : > { %v684_v11 = vpop.permute.xlu1 %683  ;;  %1029 = vmatprep.subr.bf16.mxu1 %v1314_v38  ;;  %v682_v12 = vpop.permute.xlu0 %681 }
 0x211   : > { %v689_v13 = vsel %vm366_vm15, %v684_v11, 0  ;;  %v686_v16 = vsel %vm366_vm15, %v682_v12, 0 }
 0x212   : > { %v692_v14 = vsel %vm335_vm9, %v689_v13, 0  ;;  %1077 = vmatprep.subr.msk.bf16.mxu0 %vm335_vm9, %v689_v13  ;;  %v691_v19 = vsel %vm335_vm9, %v686_v16, 0 }
 0x213   : > { %1030 = vmatpush3.bf16.msra.mxu1 %v611_v45  ;;  %1056 = vmatpush3.bf16.msra.mxu0 %v692_v14 }
 0x214   : > { %1078 = vmatprep.subr.msk.bf16.mxu0 %vm335_vm9, %v686_v16 }
 0x216   : > { %794 = vmatmul.mubr.bf16.vlgmr.msra.gmra.mxu1 %v1106_v15 }
 0x217   : > { %1058 = vmatpush3.bf16.msra.mxu0 %v691_v19  ;;  %801 = vmatprep.mubr.bf16.mxu1 %v1111_v17 }
 0x21a   : > { %1060 = vmatmul.mubr.msk.bf16.vlgmr.msra.gmra.mxu0 %vm480_vm0, %v1110_v18 }
 0x21d   : > { %v708_v24 = vpop.permute.xlu1 %707  ;;  %v713_v30 = vpop.permute.xlu0 %712 }
 0x21e   : > { %802 = vmatmul.mubr.bf16.gmra.mxu1 %v1113_v20 }
 0x221   : > { %v718_v42 = vpop.permute.xlu1 %717  ;;  %v723_v51 = vpop.permute.xlu0 %722 }
 0x2d6   : > { %v1031_v21 = vpop.f32.mrf.mxu1 }
 0x2d8   : > { %v1032_v23 = vpop.f32.mrf.mxu1 }
 0x2d9   : > { %v1033_v22 = vadd.f32 %v1032_v23, %v1031_v21 }
 0x2da   : > { %v1034_v25 = vpop.f32.mrf.mxu1  ;;  %v1061_v26 = vpop.f32.mrf.mxu0 }
 0x2db   : > { %v796_v27 = vadd.f32 %v1033_v22, %v708_v24 }
 0x2dc   : > { %v1035_v28 = vpop.f32.mrf.mxu1  ;;  %v844_v29 = vpop.f32.mrf.mxu0 }
 0x2dd   : > { %v1036_v31 = vadd.f32 %v1035_v28, %v1034_v25  ;;  %v845_v32 = vadd.f32 %v844_v29, %v796_v27 }
 0x2de   : > { %v1037_v33 = vpop.f32.mrf.mxu1  ;;  %v1062_v34 = vpop.f32.mrf.mxu0 }
 0x2df   : > { %vm859_vm0 = vcmp.ge.f32.partialorder %v845_v32, 0.0  ;;  %v863_v35 = vmul.f32 0.1, %v845_v32  ;;  %v799_v36 = vadd.f32 %v1036_v31, %v713_v30 }
 0x2e0   : > { %v1038_v37 = vpop.f32.mrf.mxu1  ;;  %v847_v38 = vpop.f32.mrf.mxu0 }
 0x2e1   : > { %v867_v39 = vsel %vm859_vm0, %v845_v32, %v863_v35  ;;  %v1039_v40 = vadd.f32 %v1038_v37, %v1037_v33  ;;  %v848_v41 = vadd.f32 %v847_v38, %v799_v36 }
 0x2e2   : > { %872 = vst.msk [vmem:[%s1428_s9] sm:$0xff] %vm871_vm5, %v867_v39  ;;  %v1040_v43 = vpop.f32.mrf.mxu1 }
 0x2e3   : > { %v804_v44 = vadd.f32 %v1039_v40, %v718_v42  ;;  %vm860_vm6 = vcmp.ge.f32.partialorder %v848_v41, 0.0  ;;  %v864_v46 = vmul.f32 0.1, %v848_v41 }
 0x2e4   : > { %v1041_v47 = vpop.f32.mrf.mxu1 }
 0x2e5   : > { %v853_v48 = vadd.f32 %v1061_v26, %v804_v44  ;;  %v868_v49 = vsel %vm860_vm6, %v848_v41, %v864_v46  ;;  %v1042_v50 = vadd.f32 %v1041_v47, %v1040_v43 }
 0x2e6   : > { %873 = vst.msk [vmem:[%s1428_s9 + $0x8] sm:$0xff] %vm871_vm5, %v868_v49 }
 0x2e7   : > { %vm861_vm7 = vcmp.ge.f32.partialorder %v853_v48, 0.0  ;;  %v865_v52 = vmul.f32 0.1, %v853_v48  ;;  %v807_v53 = vadd.f32 %v1042_v50, %v723_v51 }
 0x2e9   : > { %v869_v54 = vsel %vm861_vm7, %v853_v48, %v865_v52  ;;  %v856_v55 = vadd.f32 %v1062_v34, %v807_v53 }
 0x2ea   : > { %874 = vst.msk [vmem:[%s1428_s9 + $0x10] sm:$0xff] %vm871_vm5, %v869_v54 }
 0x2eb   : > { %vm862_vm8 = vcmp.ge.f32.partialorder %v856_v55, 0.0  ;;  %v866_v56 = vmul.f32 0.1, %v856_v55 }
 0x2ed   : > { %v870_v57 = vsel %vm862_vm8, %v856_v55, %v866_v56 }
 0x2ee   : > { %875 = vst.msk [vmem:[%s1428_s9 + $0x18] sm:$0xff] %vm871_vm5, %v870_v57 }
 0x2ef PF: > { %s16_s21 = sadd.s32 1, %s1120_s21  }
 0x2f0   : > { %p13_p4 = scmp.ge.s32.totalorder %s16_s21, 4  }
 0x2f2   :  { %15 = sbr.rel (!%p13_p4) target bundleno = 1 (0x1), region = 77 }

// kernel: autoencoder_forward.11
= control target key start
LH: loop header
LB: loop body
LE: loop exit
PB: predicated region body
PF: predicated region fallthrough
CT: control target
= control target key end

     0   :  { %s1832_s27 = smov 0   ;;  %s2524_s0 = inlined_call_operand.vmem [shape: f32[2,32,256], index: 0, kind: input, shape index: {}]   ;;  %s2525_s1 = inlined_call_operand.vmem [shape: f32[2,16,256], index: 1, kind: input, shape index: {}]   ;;  %s2526_s2 = inlined_call_operand.vmem [shape: bf16[32,432], index: 2, kind: input, shape index: {}]   ;;  %s2527_s3 = inlined_call_operand.vmem [shape: f32[32,1], index: 3, kind: input, shape index: {}]   ;;  %s2528_s4 = inlined_call_operand.vmem [shape: bf16[32,288], index: 4, kind: input, shape index: {}]   ;;  %s2529_s5 = inlined_call_operand.vmem [shape: f32[32,1], index: 5, kind: input, shape index: {}]   ;;  %s2530_s6 = inlined_call_operand.vmem [shape: bf16[3,288], index: 6, kind: input, shape index: {}]   ;;  %s2531_s7 = inlined_call_operand.vmem [shape: f32[3,1], index: 7, kind: input, shape index: {}]   ;;  %s2532_s8 = inlined_call_operand.vmem [shape: f32[2,3,256], index: 8, kind: output, shape index: {}]  }
   0x1 LB: > { %s1630_s28 = sadd.s32 4294967295, %s1775_s27   ;;  %p1634_p0 = scmp.ge.s32.totalorder %s1775_s27, 1  ;;  %s1775_s27 = sphi %s1832_s27, %s18_s27  }
   0x2   : > { %p272_p1 = scmp.lt.s32.totalorder %s1775_s27, 3 }
   0x4   : > { %p273_p2 = pnand %p1634_p0, %p272_p1 }
   0x5   : > { %p311_p3 = scmp.lt.s32.totalorder (!%p273_p2), %s1630_s28, 1  ;;  %s1778_s11 = smov (!%p273_p2), 1  }
   0x6   : > { %276 = sbr.rel (%p273_p2) target bundleno = 1246 (0x4de), region = 52  ;;  %s1779_s12 = smov (!%p273_p2), 15  }
   0x7   : > { %s1780_s17 = smov (!%p273_p2), 16   ;;  %s1781_s18 = smov (!%p273_p2), 127  }
   0x8   : > { %s1782_s19 = smov (!%p273_p2), 17   ;;  %s1783_s20 = smov (!%p273_p2), 112  }
   0x9   : > { %s1784_s21 = smov (!%p273_p2), 113   ;;  %s1785_s22 = smov (!%p273_p2), 111  }
   0xb   : > { %v1777_v0 = vmov 0   ;;  %s2583_s28 = smov (!%p311_p3, %s1630_s28), 1  ;;  %v1750_v19 = vld [vmem:[%s2526_s2 + $0x4] ss:$16 sps:$4 sm:$0xff]   ;;  %v1753_v20 = vld [vmem:[%s2526_s2 + $0xc] ss:$16 sps:$4 sm:$0xff]   ;;  %v329_v21 = vlaneseq }
   0xc   : > { %1747 = vset.pattern.permute.xlu1 %v1777_v0  ;;  %1746 = vset.pattern.permute.xlu0 %v1777_v0  ;;  %s1725_s29 = sshll.u32 %s2583_s28, 6  ;;  %s1726_s13 = sshll.u32 %s2583_s28, 5  ;;  %vm755_vm0 = vcmask 392192   ;;  %v695_v23 = vld [vmem:[%s2527_s3 + $0x10] sm:$0xff]  ;;  %v696_v24 = vld [vmem:[%s2527_s3 + $0x18] sm:$0xff]  ;;  %v694_v26 = vld [vmem:[%s2527_s3 + $0x8] sm:$0xff] }
   0xd   : > { %s315_s10 = scalar_lea.vmem %s2524_s0, %s1725_s29  ;;  %s320_s16 = scalar_lea.vmem %s2525_s1, %s1726_s13  ;;  %794 = vmatprep.mubr.bf16.mxu0 %v1750_v19  ;;  %1676 = vmatprep.mubr.msk.bf16.mxu1 %vm755_vm0, %v1753_v20  ;;  %v330_v22 = vand.u32 127, %v329_v21  ;;  %v693_v27 = vld [vmem:[%s2527_s3] sm:$0xff]  ;;  %v1979_v30 = vshrl.u32 %v329_v21, 7  ;;  %vm491_vm6 = vcmask 7168   ;;  %vm451_vm10 = vcmask 121856  }
   0xe   : > { %v360_v1 = vld [vmem:[%s315_s10 + $0x20] sm:$0xff]  ;;  %v362_v2 = vld [vmem:[%s315_s10 + $0x30] sm:$0xff]  ;;  %v361_v6 = vld [vmem:[%s315_s10 + $0x28] sm:$0xff]  ;;  %vm431_vm13 = vcmask 130048   ;;  %vm2534_vm15 = vcmask 1039360  }
   0xf   : > { %v356_v3 = vld [vmem:[%s315_s10] sm:$0xff]  ;;  %v1848_v4 = vpack.c.bf16 %v362_v2, %v360_v1  ;;  %v358_v5 = vld [vmem:[%s315_s10 + $0x10] sm:$0xff]  ;;  %v363_v7 = vld [vmem:[%s315_s10 + $0x38] sm:$0xff]  ;;  %v331_v25 = vadd.s32 128, %v330_v22  ;;  %v336_v28 = vand.u32 15, %v330_v22  ;;  %v415_v31 = vsub.s32 4, %v1979_v30 }
  0x10   : > { %v1850_v8 = vpack.c.bf16 %v358_v5, %v356_v3  ;;  %v357_v9 = vld [vmem:[%s315_s10 + $0x8] sm:$0xff]  ;;  %v359_v10 = vld [vmem:[%s315_s10 + $0x18] sm:$0xff]  ;;  %v1854_v11 = vpack.c.bf16 %v363_v7, %v361_v6  ;;  %v368_v13 = vld [vmem:[%s320_s16] sm:$0xff]  ;;  %v411_v32 = vsub.s32 0, %v1979_v30 }
  0x11   : > { %487 = vrot.lane.b32.xlu0 %v1848_v4, %s1778_s11  ;;  %v1858_v12 = vpack.c.bf16 %v359_v10, %v357_v9  ;;  %v370_v14 = vld [vmem:[%s320_s16 + $0x10] sm:$0xff]  ;;  %v369_v15 = vld [vmem:[%s320_s16 + $0x8] sm:$0xff]  ;;  %v371_v16 = vld [vmem:[%s320_s16 + $0x18] sm:$0xff]  ;;  %v343_v29 = vand.u32 15, %v331_v25  ;;  %vm374_vm1 = vcmp.ge.s32.totalorder %v336_v28, 1  ;;  %vm376_vm4 = vcmp.le.s32.totalorder %v336_v28, 14 }
  0x12   : > { %483 = vrot.lane.b32.xlu1 %v1850_v8, %s1778_s11  ;;  %v1882_v17 = vpack.c.bf16 %v370_v14, %v368_v13  ;;  %v1886_v18 = vpack.c.bf16 %v371_v16, %v369_v15  ;;  %vm2023_vm14 = vmneg %vm431_vm13 }
  0x13   : > { %vm375_vm2 = vcmp.ge.s32.totalorder %v343_v29, 1  ;;  %vm377_vm5 = vcmp.le.s32.totalorder %v343_v29, 14 }
  0x14   : > { %vm407_vm3 = vmpackc.low %vm375_vm2, %vm374_vm1  ;;  %vm2537_vm1 = vcmask 138240   ;;  %vm2536_vm2 = vcmask 916480  }
  0x15   : > { %489 = vrot.lane.b32.xlu0 %v1854_v11, %s1778_s11  ;;  %v408_v33 = vsel %vm407_vm3, 65537, %v1777_v0  ;;  %vm467_vm7 = vmpackc.low %vm377_vm5, %vm376_vm4  ;;  %vm2535_vm3 = vcmask 924672   ;;  %vm2533_vm4 = vcmask 908288  }
  0x16   : > { %485 = vrot.lane.b32.xlu1 %v1858_v12, %s1778_s11  ;;  %v1984_v34 = vrot.slane %v408_v33, %v415_v31  ;;  %v1986_v35 = vrot.slane %v408_v33, %v411_v32  ;;  %v468_v40 = vsel %vm467_vm7, 65537, %v1777_v0 }
  0x17   : > { %v1993_v43 = vrot.slane %v468_v40, %v415_v31  ;;  %v2001_v47 = vrot.slane %v468_v40, %v411_v32 }
  0x18   : > { %vm418_vm8 = vcmp.ne.s16.totalorder %v1984_v34, 0  ;;  %vm417_vm9 = vcmp.ne.s16.totalorder %v1986_v35, 0 }
  0x19   : > { %447 = vrot.lane.b32.xlu0 %v1848_v4, %s1779_s12  ;;  %vm478_vm11 = vcmp.ne.s16.totalorder %v1993_v43, 0  ;;  %vm477_vm12 = vcmp.ne.s16.totalorder %v2001_v47, 0 }
  0x1a   : > { %449 = vrot.lane.b32.xlu1 %v1854_v11, %s1779_s12 }
  0x1d   : > { %443 = vrot.lane.b32.xlu0 %v1850_v8, %s1779_s12 }
  0x1e   : > { %445 = vrot.lane.b32.xlu1 %v1858_v12, %s1779_s12 }
  0x21   : > { %427 = vrot.lane.b32.xlu0 %v1848_v4, %s1780_s17 }
  0x22   : > { %429 = vrot.lane.b32.xlu1 %v1854_v11, %s1780_s17 }
  0x25   : > { %423 = vrot.lane.b32.xlu0 %v1850_v8, %s1780_s17 }
  0x26   : > { %425 = vrot.lane.b32.xlu1 %v1858_v12, %s1780_s17 }
  0x29   : > { %643 = vrot.lane.b32.xlu0 %v1882_v17, %s1781_s18 }
  0x2a   : > { %645 = vrot.lane.b32.xlu1 %v1886_v18, %s1781_s18 }
  0x2d   : > { %386 = vrot.lane.b32.xlu0 %v1848_v4, %s1782_s19 }
  0x2e   : > { %388 = vrot.lane.b32.xlu1 %v1854_v11, %s1782_s19 }
  0x31   : > { %382 = vrot.lane.b32.xlu0 %v1850_v8, %s1782_s19 }
  0x32   : > { %384 = vrot.lane.b32.xlu1 %v1858_v12, %s1782_s19 }
  0x35   : > { %632 = vrot.lane.b32.xlu0 %v1882_v17, %s1778_s11 }
  0x36   : > { %634 = vrot.lane.b32.xlu1 %v1886_v18, %s1778_s11 }
  0x39   : > { %559 = vrot.lane.b32.xlu0 %v1848_v4, %s1783_s20 }
  0x3a   : > { %561 = vrot.lane.b32.xlu1 %v1854_v11, %s1783_s20 }
  0x3d   : > { %621 = vrot.lane.b32.xlu0 %v1882_v17, %s1779_s12 }
  0x3e   : > { %623 = vrot.lane.b32.xlu1 %v1886_v18, %s1779_s12 }
  0x41   : > { %555 = vrot.lane.b32.xlu0 %v1850_v8, %s1783_s20 }
  0x42   : > { %557 = vrot.lane.b32.xlu1 %v1858_v12, %s1783_s20 }
  0x45   : > { %612 = vrot.lane.b32.xlu0 %v1882_v17, %s1780_s17 }
  0x46   : > { %614 = vrot.lane.b32.xlu1 %v1886_v18, %s1780_s17 }
  0x49   : > { %535 = vrot.lane.b32.xlu0 %v1848_v4, %s1784_s21 }
  0x4a   : > { %537 = vrot.lane.b32.xlu1 %v1854_v11, %s1784_s21 }
  0x4d   : > { %601 = vrot.lane.b32.xlu0 %v1882_v17, %s1782_s19 }
  0x4e   : > { %603 = vrot.lane.b32.xlu1 %v1886_v18, %s1782_s19 }
  0x51   : > { %531 = vrot.lane.b32.xlu0 %v1850_v8, %s1784_s21 }
  0x52   : > { %533 = vrot.lane.b32.xlu1 %v1858_v12, %s1784_s21 }
  0x55   : > { %579 = vrot.lane.b32.xlu0 %v1848_v4, %s1785_s22 }
  0x56   : > { %581 = vrot.lane.b32.xlu1 %v1854_v11, %s1785_s22 }
  0x59   : > { %511 = vrot.lane.b32.xlu0 %v1848_v4, %s1781_s18 }
  0x5a   : > { %513 = vrot.lane.b32.xlu1 %v1854_v11, %s1781_s18 }
  0x5d   : > { %575 = vrot.lane.b32.xlu0 %v1850_v8, %s1785_s22 }
  0x5e   : > { %577 = vrot.lane.b32.xlu1 %v1858_v12, %s1785_s22 }
  0x61   : > { %507 = vrot.lane.b32.xlu0 %v1850_v8, %s1781_s18 }
  0x62   : > { %509 = vrot.lane.b32.xlu1 %v1858_v12, %s1781_s18 }
  0x65   : > { %674 = vrot.lane.b32.xlu0 %v1882_v17, %s1785_s22 }
  0x66   : > { %676 = vrot.lane.b32.xlu1 %v1886_v18, %s1785_s22 }
  0x69   : > { %665 = vrot.lane.b32.xlu0 %v1882_v17, %s1783_s20 }
  0x6a   : > { %667 = vrot.lane.b32.xlu1 %v1886_v18, %s1783_s20 }
  0x6d   : > { %654 = vrot.lane.b32.xlu0 %v1882_v17, %s1784_s21 }
  0x6e   : > { %656 = vrot.lane.b32.xlu1 %v1886_v18, %s1784_s21 }
  0x71   : > { %709 = vperm.xlu0 %1746, %v695_v23  }
  0x72   : > { %714 = vperm.xlu1 %1747, %v696_v24  }
  0x75   : > { %704 = vperm.xlu0 %1746, %v694_v26  }
  0x76   : > { %699 = vperm.xlu1 %1747, %v693_v27  }
  0x83   : > { %v488_v36 = vpop.permute.xlu0 %487 }
  0x84   : > { %v484_v37 = vpop.permute.xlu1 %483  ;;  %v501_v38 = vsel %vm491_vm6, 0, %v488_v36 }
  0x85   : > { %v505_v44 = vsel %vm417_vm9, %v501_v38, 0  ;;  %v498_v46 = vsel %vm491_vm6, 0, %v484_v37 }
  0x86   : > { %v503_v50 = vsel %vm417_vm9, %v498_v46, 0 }
  0x87   : > { %v490_v39 = vpop.permute.xlu0 %489 }
  0x88   : > { %v486_v41 = vpop.permute.xlu1 %485  ;;  %v493_v42 = vsel %vm491_vm6, %v488_v36, %v490_v39 }
  0x89   : > { %1649 = vmatprep.subr.msk.bf16.mxu0 %vm418_vm8, %v493_v42  ;;  %v492_v45 = vsel %vm491_vm6, %v484_v37, %v486_v41 }
  0x8a   : > { %763 = vmatpush1.bf16.msra.mxu0 %v505_v44 }
  0x8b   : > { %v448_v48 = vpop.permute.xlu0 %447  ;;  %1650 = vmatprep.subr.msk.bf16.mxu0 %vm418_vm8, %v492_v45 }
  0x8c   : > { %v450_v49 = vpop.permute.xlu1 %449  ;;  %v461_v52 = vsel %vm451_vm10, 0, %v448_v48 }
  0x8d   : > { %v453_v51 = vsel %vm451_vm10, %v448_v48, %v450_v49  ;;  %v481_v55 = vsel %vm477_vm12, %v461_v52, 0 }
  0x8e   : > { %765 = vmatpush1.bf16.msra.mxu0 %v503_v50 }
  0x8f   : > { %v444_v53 = vpop.permute.xlu0 %443  ;;  %1651 = vmatprep.subr.msk.bf16.mxu0 %vm478_vm11, %v453_v51 }
  0x90   : > { %v446_v54 = vpop.permute.xlu1 %445  ;;  %v458_v57 = vsel %vm451_vm10, 0, %v444_v53 }
  0x91   : > { %v452_v56 = vsel %vm451_vm10, %v444_v53, %v446_v54  ;;  %v479_v60 = vsel %vm477_vm12, %v458_v57, 0 }
  0x92   : > { %767 = vmatpush1.bf16.msra.mxu0 %v481_v55 }
  0x93   : > { %v428_v58 = vpop.permute.xlu0 %427  ;;  %1652 = vmatprep.subr.msk.bf16.mxu0 %vm478_vm11, %v452_v56 }
  0x94   : > { %v430_v59 = vpop.permute.xlu1 %429 }
  0x95   : > { %v433_v61 = vsel %vm431_vm13, %v428_v58, %v430_v59 }
  0x96   : > { %769 = vmatpush1.bf16.msra.mxu0 %v479_v60 }
  0x97   : > { %v424_v62 = vpop.permute.xlu0 %423  ;;  %770 = vmatprep.subr.bf16.mxu0 %v433_v61 }
  0x98   : > { %v426_v1 = vpop.permute.xlu1 %425 }
  0x99   : > { %v432_v2 = vsel %vm431_vm13, %v424_v62, %v426_v1 }
  0x9a   : > { %1654 = vmatpush1.bf16.msk.msra.mxu0 %vm2023_vm14, %v428_v58 }
  0x9b   : > { %v644_v3 = vpop.permute.xlu0 %643  ;;  %772 = vmatprep.subr.bf16.mxu0 %v432_v2 }
  0x9c   : > { %v646_v5 = vpop.permute.xlu1 %645 }
  0x9d   : > { %v650_v6 = vsel %vm2534_vm15, %v646_v5, 0  ;;  %v647_v7 = vsel %vm2534_vm15, %v644_v3, %v646_v5 }
  0x9e   : > { %1665 = vmatprep.subr.msk.bf16.mxu1 %vm478_vm11, %v650_v6  ;;  %1656 = vmatpush1.bf16.msk.msra.mxu0 %vm2023_vm14, %v424_v62  ;;  %v652_v9 = vsel %vm477_vm12, %v647_v7, 0 }
  0x9f   : > { %816 = vmatpush1.bf16.msra.mxu1 %v652_v9  ;;  %v387_v10 = vpop.permute.xlu0 %386 }
  0xa0   : > { %v389_v13 = vpop.permute.xlu1 %388  ;;  %v401_v14 = vsel %vm2537_vm1, 0, %v387_v10  ;;  %817 = vmatprep.subr.bf16.mxu1 %v1886_v18 }
  0xa1   : > { %v392_v15 = vsel %vm2537_vm1, %v387_v10, %v389_v13  ;;  %v421_v16 = vsel %vm417_vm9, %v401_v14, 0 }
  0xa2   : > { %1657 = vmatprep.subr.msk.bf16.mxu0 %vm418_vm8, %v392_v15 }
  0xa3   : > { %775 = vmatpush1.bf16.msra.mxu0 %v421_v16  ;;  %v383_v19 = vpop.permute.xlu0 %382  ;;  %818 = vmatpush1.bf16.msra.mxu1 %v1882_v17 }
  0xa4   : > { %v385_v20 = vpop.permute.xlu1 %384  ;;  %v398_v21 = vsel %vm2537_vm1, 0, %v383_v19 }
  0xa5   : > { %v391_v22 = vsel %vm2537_vm1, %v383_v19, %v385_v20  ;;  %v419_v18 = vsel %vm417_vm9, %v398_v21, 0 }
  0xa6   : > { %1658 = vmatprep.subr.msk.bf16.mxu0 %vm418_vm8, %v391_v22 }
  0xa7   : > { %777 = vmatpush1.bf16.msra.mxu0 %v419_v18  ;;  %v633_v23 = vpop.permute.xlu0 %632 }
  0xa8   : > { %v635_v24 = vpop.permute.xlu1 %634  ;;  %v639_v25 = vsel %vm491_vm6, 0, %v633_v23 }
  0xa9   : > { %v636_v26 = vsel %vm491_vm6, %v633_v23, %v635_v24  ;;  %v641_v17 = vsel %vm417_vm9, %v639_v25, 0 }
  0xaa   : > { %1666 = vmatprep.subr.msk.bf16.mxu1 %vm418_vm8, %v636_v26 }
  0xab   : > { %820 = vmatpush1.bf16.msra.mxu1 %v641_v17  ;;  %v560_v27 = vpop.permute.xlu0 %559 }
  0xac   : > { %v562_v28 = vpop.permute.xlu1 %561 }
  0xad   : > { %1659 = vmatprep.subr.msk.bf16.mxu0 %vm2536_vm2, %v562_v28  ;;  %v565_v29 = vsel %vm2536_vm2, %v560_v27, %v562_v28 }
  0xae   : > { %779 = vmatpush2.bf16.msra.mxu0 %v565_v29 }
  0xaf   : > { %v622_v31 = vpop.permute.xlu0 %621 }
  0xb0   : > { %v628_v32 = vsel %vm451_vm10, 0, %v622_v31  ;;  %v624_v33 = vpop.permute.xlu1 %623 }
  0xb1   : > { %v625_v36 = vsel %vm451_vm10, %v622_v31, %v624_v33  ;;  %v630_v37 = vsel %vm477_vm12, %v628_v32, 0  ;;  %v1748_v31 = vld [vmem:[%s2526_s2] ss:$16 sps:$4 sm:$0xff]  }
  0xb2   : > { %1667 = vmatprep.subr.msk.bf16.mxu1 %vm478_vm11, %v625_v36 }
  0xb3   : > { %822 = vmatpush1.bf16.msra.mxu1 %v630_v37  ;;  %v556_v38 = vpop.permute.xlu0 %555 }
  0xb4   : > { %v558_v39 = vpop.permute.xlu1 %557 }
  0xb5   : > { %1660 = vmatprep.subr.msk.bf16.mxu0 %vm2536_vm2, %v558_v39  ;;  %v564_v40 = vsel %vm2536_vm2, %v556_v38, %v558_v39  ;;  %v1757_v38 = vld [vmem:[%s2526_s2 + $0x2c] ss:$16 sps:$4 sm:$0xff]   ;;  %v1756_v39 = vld [vmem:[%s2526_s2 + $0x20] ss:$16 sps:$4 sm:$0xff]  }
  0xb6   : > { %781 = vmatpush2.bf16.msra.mxu0 %v564_v40  ;;  %v1759_v40 = vld [vmem:[%s2526_s2 + $0x28] ss:$16 sps:$4 sm:$0xff]  }
  0xb7   : > { %v613_v41 = vpop.permute.xlu0 %612 }
  0xb8   : > { %v615_v42 = vpop.permute.xlu1 %614 }
  0xb9   : > { %v616_v44 = vsel %vm431_vm13, %v613_v41, %v615_v42 }
  0xba   : > { %823 = vmatprep.subr.bf16.mxu1 %v616_v44 }
  0xbb   : > { %1669 = vmatpush1.bf16.msk.msra.mxu1 %vm2023_vm14, %v613_v41  ;;  %v536_v45 = vpop.permute.xlu0 %535 }
  0xbc   : > { %v538_v46 = vpop.permute.xlu1 %537 }
  0xbd   : > { %v541_v48 = vsel %vm2535_vm3, %v536_v45, %v538_v46  ;;  %v549_v49 = vsel %vm2535_vm3, %v538_v46, 0 }
  0xbe   : > { %1661 = vmatprep.subr.msk.bf16.mxu0 %vm418_vm8, %v549_v49  ;;  %v553_v50 = vsel %vm417_vm9, %v541_v48, 0 }
  0xbf   : > { %783 = vmatpush2.bf16.msra.mxu0 %v553_v50  ;;  %v602_v51 = vpop.permute.xlu0 %601 }
  0xc0   : > { %v608_v52 = vsel %vm2537_vm1, 0, %v602_v51  ;;  %v604_v53 = vpop.permute.xlu1 %603 }
  0xc1   : > { %v605_v54 = vsel %vm2537_vm1, %v602_v51, %v604_v53  ;;  %v610_v55 = vsel %vm417_vm9, %v608_v52, 0 }
  0xc2   : > { %1670 = vmatprep.subr.msk.bf16.mxu1 %vm418_vm8, %v605_v54 }
  0xc3   : > { %826 = vmatpush1.bf16.msra.mxu1 %v610_v55  ;;  %v532_v56 = vpop.permute.xlu0 %531 }
  0xc4   : > { %v534_v57 = vpop.permute.xlu1 %533 }
  0xc5   : > { %v540_v58 = vsel %vm2535_vm3, %v532_v56, %v534_v57  ;;  %v546_v59 = vsel %vm2535_vm3, %v534_v57, 0 }
  0xc6   : > { %1662 = vmatprep.subr.msk.bf16.mxu0 %vm418_vm8, %v546_v59  ;;  %v551_v60 = vsel %vm417_vm9, %v540_v58, 0 }
  0xc7   : > { %785 = vmatpush2.bf16.msra.mxu0 %v551_v60  ;;  %v580_v61 = vpop.permute.xlu0 %579 }
  0xc8   : > { %v582_v62 = vpop.permute.xlu1 %581 }
  0xc9   : > { %v585_v1 = vsel %vm2533_vm4, %v580_v61, %v582_v62  ;;  %v593_v2 = vsel %vm2533_vm4, %v582_v62, 0 }
  0xca   : > { %1671 = vmatprep.subr.msk.bf16.mxu1 %vm478_vm11, %v593_v2  ;;  %v597_v3 = vsel %vm477_vm12, %v585_v1, 0 }
  0xcb   : > { %828 = vmatpush1.bf16.msra.mxu1 %v597_v3  ;;  %v512_v5 = vpop.permute.xlu0 %511 }
  0xcc   : > { %v514_v6 = vpop.permute.xlu1 %513 }
  0xcd   : > { %v517_v7 = vsel %vm2534_vm15, %v512_v5, %v514_v6  ;;  %v525_v9 = vsel %vm2534_vm15, %v514_v6, 0 }
  0xce   : > { %1663 = vmatprep.subr.msk.bf16.mxu0 %vm478_vm11, %v525_v9  ;;  %v529_v10 = vsel %vm477_vm12, %v517_v7, 0 }
  0xcf   : > { %787 = vmatpush2.bf16.msra.mxu0 %v529_v10  ;;  %v576_v13 = vpop.permute.xlu0 %575 }
  0xd0   : > { %v578_v14 = vpop.permute.xlu1 %577 }
  0xd1   : > { %v584_v15 = vsel %vm2533_vm4, %v576_v13, %v578_v14  ;;  %v590_v16 = vsel %vm2533_vm4, %v578_v14, 0 }
  0xd2   : > { %1672 = vmatprep.subr.msk.bf16.mxu1 %vm478_vm11, %v590_v16  ;;  %v595_v19 = vsel %vm477_vm12, %v584_v15, 0 }
  0xd3   : > { %830 = vmatpush1.bf16.msra.mxu1 %v595_v19  ;;  %v508_v20 = vpop.permute.xlu0 %507 }
  0xd4   : > { %v510_v21 = vpop.permute.xlu1 %509 }
  0xd5   : > { %v516_v22 = vsel %vm2534_vm15, %v508_v20, %v510_v21  ;;  %v522_v18 = vsel %vm2534_vm15, %v510_v21, 0 }
  0xd6   : > { %1664 = vmatprep.subr.msk.bf16.mxu0 %vm478_vm11, %v522_v18  ;;  %v527_v23 = vsel %vm477_vm12, %v516_v22, 0 }
  0xd7   : > { %789 = vmatpush2.bf16.msra.mxu0 %v527_v23  ;;  %v675_v24 = vpop.permute.xlu0 %674 }
  0xd8   : > { %v677_v25 = vpop.permute.xlu1 %676  ;;  %790 = vmatprep.subr.bf16.mxu0 %v1854_v11 }
  0xd9   : > { %v678_v26 = vsel %vm2533_vm4, %v675_v24, %v677_v25  ;;  %v681_v17 = vsel %vm2533_vm4, %v677_v25, 0 }
  0xda   : > { %1673 = vmatprep.subr.msk.bf16.mxu1 %vm478_vm11, %v681_v17  ;;  %v683_v27 = vsel %vm477_vm12, %v678_v26, 0 }
  0xdb   : > { %791 = vmatpush2.bf16.msra.mxu0 %v1848_v4  ;;  %842 = vmatpush2.bf16.msra.mxu1 %v683_v27  ;;  %v666_v28 = vpop.permute.xlu0 %665  ;;  %v1754_v4 = vld [vmem:[%s2526_s2 + $0x24] ss:$16 sps:$4 sm:$0xff]  }
  0xdc   : > { %v668_v29 = vpop.permute.xlu1 %667  ;;  %792 = vmatprep.subr.bf16.mxu0 %v1858_v12 }
  0xdd   : > { %1674 = vmatprep.subr.msk.bf16.mxu1 %vm2536_vm2, %v668_v29  ;;  %v669_v11 = vsel %vm2536_vm2, %v666_v28, %v668_v29 }
  0xdf   : > { %793 = vmatpush2.bf16.msra.mxu0 %v1850_v8  ;;  %844 = vmatpush2.bf16.msra.mxu1 %v669_v11  ;;  %v655_v32 = vpop.permute.xlu0 %654  ;;  %v1751_v8 = vld [vmem:[%s2526_s2 + $0x8] ss:$16 sps:$4 sm:$0xff]  }
  0xe0   : > { %v657_v33 = vpop.permute.xlu1 %656 }
  0xe1   : > { %v658_v36 = vsel %vm2535_vm3, %v655_v32, %v657_v33  ;;  %v661_v12 = vsel %vm2535_vm3, %v657_v33, 0 }
  0xe2   : > { %795 = vmatmul.mubr.bf16.vlgmr.msra.gmra.mxu0 %v1748_v31  ;;  %1675 = vmatprep.subr.msk.bf16.mxu1 %vm418_vm8, %v661_v12  ;;  %v663_v37 = vsel %vm417_vm9, %v658_v36, 0 }
  0xe3   : > { %846 = vmatpush2.bf16.msra.mxu1 %v663_v37  ;;  %804 = vmatprep.mubr.bf16.mxu0 %v1754_v4 }
  0xe6   : > { %848 = vmatmul.mubr.bf16.vlgmr.msra.gmra.mxu1 %v1751_v8 }
  0xe7   : > { %1677 = vmatprep.mubr.msk.bf16.mxu1 %vm755_vm0, %v1757_v38 }
  0xea   : > { %805 = vmatmul.mubr.bf16.gmra.mxu0 %v1756_v39 }
  0xec   : > { %v710_v45 = vpop.permute.xlu0 %709 }
  0xed   : > { %v715_v44 = vpop.permute.xlu1 %714 }
  0xee   : > { %858 = vmatmul.mubr.bf16.gmra.mxu1 %v1759_v40  ;;  %v1762_v40 = vld [vmem:[%s2528_s4 + $0x4] ss:$12 sps:$4 sm:$0xff]  }
  0xef   : > { %1169 = vmatprep.mubr.bf16.mxu1 %v1762_v40 }
  0xf0   : > { %v705_v54 = vpop.permute.xlu0 %704 }
  0xf1   : > { %v700_v53 = vpop.permute.xlu1 %699 }
 0x1a2   : > { %v796_v41 = vpop.f32.mrf.mxu0 }
 0x1a3   : > { %v797_v58 = vadd.f32 %v796_v41, %v700_v53  ;;  %v1078_v41 = vld [vmem:[%s2529_s5 + $0x10] sm:$0xff] }
 0x1a4   : > { %v798_v42 = vpop.f32.mrf.mxu0 }
 0x1a5   : > { %v799_v9 = vadd.f32 %v798_v42, %v700_v53  ;;  %v1079_v42 = vld [vmem:[%s2529_s5 + $0x18] sm:$0xff] }
 0x1a6   : > { %v800_v46 = vpop.f32.mrf.mxu0  ;;  %v849_v48 = vpop.f32.mrf.mxu1 }
 0x1a7   : > { %v801_v59 = vadd.f32 %v800_v46, %v705_v54  ;;  %v850_v10 = vadd.f32 %v849_v48, %v797_v58 }
 0x1a8   : > { %v802_v49 = vpop.f32.mrf.mxu0  ;;  %v851_v50 = vpop.f32.mrf.mxu1 }
 0x1a9   : > { %v803_v1 = vadd.f32 %v802_v49, %v705_v54  ;;  %v852_v21 = vadd.f32 %v851_v50, %v799_v9  ;;  %v876_v26 = vmul.f32 0.1, %v850_v10  ;;  %vm868_vm3 = vcmp.ge.f32.partialorder %v850_v10, 0.0 }
 0x1aa   : > { %v806_v51 = vpop.f32.mrf.mxu0  ;;  %v853_v52 = vpop.f32.mrf.mxu1 }
 0x1ab   : > { %v807_v55 = vadd.f32 %v806_v51, %v710_v45  ;;  %v854_v2 = vadd.f32 %v853_v52, %v801_v59  ;;  %v877_v31 = vmul.f32 0.1, %v852_v21  ;;  %vm869_vm1 = vcmp.ge.f32.partialorder %v852_v21, 0.0 }
 0x1ac   : > { %v808_v56 = vpop.f32.mrf.mxu0  ;;  %v855_v57 = vpop.f32.mrf.mxu1  ;;  %v884_v12 = vsel %vm868_vm3, %v850_v10, %v876_v26 }
 0x1ad   : > { %v809_v3 = vadd.f32 %v808_v56, %v710_v45  ;;  %v856_v13 = vadd.f32 %v855_v57, %v803_v1  ;;  %v878_v22 = vmul.f32 0.1, %v854_v2  ;;  %vm870_vm7 = vcmp.ge.f32.partialorder %v854_v2, 0.0  ;;  %v1077_v45 = vld [vmem:[%s2529_s5 + $0x8] sm:$0xff] }
 0x1ae   : > { %v810_v60 = vpop.f32.mrf.mxu0  ;;  %v859_v61 = vpop.f32.mrf.mxu1  ;;  %v885_v38 = vsel %vm869_vm1, %v852_v21, %v877_v31 }
 0x1af   : > { %v860_v62 = vadd.f32 %v859_v61, %v807_v55  ;;  %v811_v7 = vadd.f32 %v810_v60, %v715_v44  ;;  %v879_v17 = vmul.f32 0.1, %v856_v13  ;;  %vm871_vm2 = vcmp.ge.f32.partialorder %v856_v13, 0.0 }
 0x1b0   : > { %v812_v5 = vpop.f32.mrf.mxu0  ;;  %v861_v6 = vpop.f32.mrf.mxu1  ;;  %v886_v32 = vsel %vm870_vm7, %v854_v2, %v878_v22 }
 0x1b1   : > { %v862_v14 = vadd.f32 %v861_v6, %v809_v3  ;;  %v880_v16 = vmul.f32 0.1, %v860_v62  ;;  %v813_v19 = vadd.f32 %v812_v5, %v715_v44  ;;  %vm872_vm0 = vcmp.ge.f32.partialorder %v860_v62, 0.0  ;;  %v1076_v44 = vld [vmem:[%s2529_s5] sm:$0xff] }
 0x1b2   : > { %v863_v15 = vpop.f32.mrf.mxu1  ;;  %v887_v37 = vsel %vm871_vm2, %v856_v13, %v879_v17  ;;  %v2156_v8 = vpack.c.bf16 %v886_v32, %v884_v12 }
 0x1b3   : > { %v864_v20 = vadd.f32 %v863_v15, %v811_v7  ;;  %v881_v23 = vmul.f32 0.1, %v862_v14  ;;  %vm873_vm4 = vcmp.ge.f32.partialorder %v862_v14, 0.0  ;;  %v888_v27 = vsel %vm872_vm0, %v860_v62, %v880_v16 }
 0x1b4   : > { %v865_v18 = vpop.f32.mrf.mxu1  ;;  %v2160_v39 = vpack.c.bf16 %v887_v37, %v885_v38 }
 0x1b5   : > { %vm874_vm5 = vcmp.ge.f32.partialorder %v864_v20, 0.0  ;;  %v882_v24 = vmul.f32 0.1, %v864_v20  ;;  %v866_v25 = vadd.f32 %v865_v18, %v813_v19  ;;  %v889_v4 = vsel %vm873_vm4, %v862_v14, %v881_v23 }
 0x1b6   : > { %vm2545_vm4 = vcmask 916480  }
 0x1b7   : > { %v890_v28 = vsel %vm874_vm5, %v864_v20, %v882_v24  ;;  %vm875_vm15 = vcmp.ge.f32.partialorder %v866_v25, 0.0  ;;  %v883_v29 = vmul.f32 0.1, %v866_v25  ;;  %vm2546_vm0 = vmmov %vm2545_vm4 }
 0x1b8   : > { %v2150_v11 = vpack.c.bf16 %v890_v28, %v888_v27  ;;  %vm2547_vm5 = vmmov %vm2546_vm0 }
 0x1b9   : > { %v891_v33 = vsel %vm875_vm15, %v866_v25, %v883_v29  ;;  %vm2541_vm15 = vcmask 138240   ;;  %vm2548_vm7 = vmmov %vm2546_vm0 }
 0x1ba   : > { %v2152_v36 = vpack.c.bf16 %v891_v33, %v889_v4  ;;  %966 = vrot.lane.b32.xlu1 %v2150_v11, %s1778_s11  ;;  %vm2542_vm1 = vmmov %vm2541_vm15 }
 0x1bb   : > { %vm2543_vm2 = vmmov %vm2542_vm1 }
 0x1bc   : > { %968 = vrot.lane.b32.xlu0 %v2152_v36, %s1778_s11  ;;  %vm2544_vm3 = vmmov %vm2542_vm1 }
 0x1be   : > { %962 = vrot.lane.b32.xlu1 %v2156_v8, %s1778_s11 }
 0x1c0   : > { %964 = vrot.lane.b32.xlu0 %v2160_v39, %s1778_s11 }
 0x1c2   : > { %944 = vrot.lane.b32.xlu1 %v2150_v11, %s1779_s12 }
 0x1c4   : > { %946 = vrot.lane.b32.xlu0 %v2152_v36, %s1779_s12 }
 0x1c6   : > { %940 = vrot.lane.b32.xlu1 %v2156_v8, %s1779_s12 }
 0x1c8   : > { %942 = vrot.lane.b32.xlu0 %v2160_v39, %s1779_s12 }
 0x1ca   : > { %926 = vrot.lane.b32.xlu1 %v2150_v11, %s1780_s17 }
 0x1cc   : > { %928 = vrot.lane.b32.xlu0 %v2152_v36, %s1780_s17 }
 0x1ce   : > { %922 = vrot.lane.b32.xlu1 %v2156_v8, %s1780_s17 }
 0x1d0   : > { %924 = vrot.lane.b32.xlu0 %v2160_v39, %s1780_s17 }
 0x1d2   : > { %904 = vrot.lane.b32.xlu1 %v2150_v11, %s1782_s19 }
 0x1d4   : > { %906 = vrot.lane.b32.xlu0 %v2152_v36, %s1782_s19 }
 0x1d6   : > { %900 = vrot.lane.b32.xlu1 %v2156_v8, %s1782_s19 }
 0x1d8   : > { %902 = vrot.lane.b32.xlu0 %v2160_v39, %s1782_s19 }
 0x1da   : > { %1032 = vrot.lane.b32.xlu1 %v2150_v11, %s1783_s20 }
 0x1dc   : > { %1034 = vrot.lane.b32.xlu0 %v2152_v36, %s1783_s20 }
 0x1de   : > { %1028 = vrot.lane.b32.xlu1 %v2156_v8, %s1783_s20 }
 0x1e0   : > { %1030 = vrot.lane.b32.xlu0 %v2160_v39, %s1783_s20 }
 0x1e2   : > { %1010 = vrot.lane.b32.xlu1 %v2150_v11, %s1784_s21 }
 0x1e4   : > { %1012 = vrot.lane.b32.xlu0 %v2152_v36, %s1784_s21 }
 0x1e6   : > { %1006 = vrot.lane.b32.xlu1 %v2156_v8, %s1784_s21 }
 0x1e8   : > { %1008 = vrot.lane.b32.xlu0 %v2160_v39, %s1784_s21 }
 0x1ea   : > { %988 = vrot.lane.b32.xlu1 %v2150_v11, %s1781_s18 }
 0x1ec   : > { %990 = vrot.lane.b32.xlu0 %v2152_v36, %s1781_s18 }
 0x1ee   : > { %984 = vrot.lane.b32.xlu1 %v2156_v8, %s1781_s18 }
 0x1f0   : > { %986 = vrot.lane.b32.xlu0 %v2160_v39, %s1781_s18 }
 0x1f2   : > { %1050 = vrot.lane.b32.xlu1 %v2150_v11, %s1785_s22 }
 0x1f4   : > { %1052 = vrot.lane.b32.xlu0 %v2152_v36, %s1785_s22 }
 0x1f6   : > { %1046 = vrot.lane.b32.xlu1 %v2156_v8, %s1785_s22 }
 0x1f8   : > { %1048 = vrot.lane.b32.xlu0 %v2160_v39, %s1785_s22 }
 0x1fa   : > { %1092 = vperm.xlu1 %1747, %v1078_v41  }
 0x1fc   : > { %1097 = vperm.xlu0 %1746, %v1079_v42  }
 0x1fe   : > { %1082 = vperm.xlu1 %1747, %v1076_v44  }
 0x200   : > { %1087 = vperm.xlu0 %1746, %v1077_v45  }
 0x22c   : > { %v967_v46 = vpop.permute.xlu1 %966 }
 0x22d   : > { %v978_v48 = vsel %vm491_vm6, 0, %v967_v46 }
 0x22e   : > { %v969_v49 = vpop.permute.xlu0 %968  ;;  %v982_v51 = vsel %vm417_vm9, %v978_v48, 0 }
 0x22f   : > { %v971_v50 = vsel %vm491_vm6, %v967_v46, %v969_v49 }
 0x230   : > { %1684 = vmatprep.subr.msk.bf16.mxu1 %vm418_vm8, %v971_v50  ;;  %v963_v52 = vpop.permute.xlu1 %962 }
 0x231   : > { %v975_v53 = vsel %vm491_vm6, 0, %v963_v52  ;;  %1138 = vmatpush1.bf16.msra.mxu1 %v982_v51 }
 0x232   : > { %v965_v54 = vpop.permute.xlu0 %964  ;;  %v980_v56 = vsel %vm417_vm9, %v975_v53, 0 }
 0x233   : > { %v970_v55 = vsel %vm491_vm6, %v963_v52, %v965_v54 }
 0x234   : > { %1685 = vmatprep.subr.msk.bf16.mxu1 %vm418_vm8, %v970_v55  ;;  %v945_v57 = vpop.permute.xlu1 %944 }
 0x235   : > { %v956_v58 = vsel %vm451_vm10, 0, %v945_v57  ;;  %1140 = vmatpush1.bf16.msra.mxu1 %v980_v56 }
 0x236   : > { %v947_v59 = vpop.permute.xlu0 %946  ;;  %v960_v61 = vsel %vm477_vm12, %v956_v58, 0  ;;  %v1760_v58 = vld [vmem:[%s2528_s4] ss:$12 sps:$4 sm:$0xff]  }
 0x237   : > { %v949_v60 = vsel %vm451_vm10, %v945_v57, %v947_v59 }
 0x238   : > { %1686 = vmatprep.subr.msk.bf16.mxu1 %vm478_vm11, %v949_v60  ;;  %v941_v62 = vpop.permute.xlu1 %940 }
 0x239   : > { %v953_v1 = vsel %vm451_vm10, 0, %v941_v62  ;;  %1142 = vmatpush1.bf16.msra.mxu1 %v960_v61 }
 0x23a   : > { %v943_v2 = vpop.permute.xlu0 %942  ;;  %v958_v5 = vsel %vm477_vm12, %v953_v1, 0 }
 0x23b   : > { %v948_v3 = vsel %vm451_vm10, %v941_v62, %v943_v2  ;;  %v1765_v2 = vld [vmem:[%s2528_s4 + $0x18] ss:$12 sps:$4 sm:$0xff]  }
 0x23c   : > { %1687 = vmatprep.subr.msk.bf16.mxu1 %vm478_vm11, %v948_v3  ;;  %v927_v6 = vpop.permute.xlu1 %926  ;;  %v1766_v3 = vld [vmem:[%s2528_s4 + $0x8] ss:$12 sps:$4 sm:$0xff]  }
 0x23d   : > { %1144 = vmatpush1.bf16.msra.mxu1 %v958_v5  ;;  %v1767_v5 = vld [vmem:[%s2528_s4 + $0x20] ss:$12 sps:$4 sm:$0xff]  }
 0x23e   : > { %v929_v7 = vpop.permute.xlu0 %928 }
 0x23f   : > { %v931_v9 = vsel %vm431_vm13, %v927_v6, %v929_v7 }
 0x240   : > { %1145 = vmatprep.subr.bf16.mxu1 %v931_v9  ;;  %v923_v10 = vpop.permute.xlu1 %922 }
 0x241   : > { %1689 = vmatpush1.bf16.msk.msra.mxu1 %vm2023_vm14, %v927_v6 }
 0x242   : > { %v925_v13 = vpop.permute.xlu0 %924 }
 0x243   : > { %v930_v14 = vsel %vm431_vm13, %v923_v10, %v925_v13 }
 0x244   : > { %1147 = vmatprep.subr.bf16.mxu1 %v930_v14  ;;  %v905_v15 = vpop.permute.xlu1 %904 }
 0x245   : > { %v916_v16 = vsel %vm2541_vm15, 0, %v905_v15  ;;  %1691 = vmatpush1.bf16.msk.msra.mxu1 %vm2023_vm14, %v923_v10  ;;  %vm2549_vm15 = vcmask 924672  }
 0x246   : > { %v907_v19 = vpop.permute.xlu0 %906  ;;  %v920_v21 = vsel %vm417_vm9, %v916_v16, 0 }
 0x247   : > { %v909_v20 = vsel %vm2542_vm1, %v905_v15, %v907_v19  ;;  %vm2550_vm1 = vmmov %vm2549_vm15 }
 0x248   : > { %1692 = vmatprep.subr.msk.bf16.mxu1 %vm418_vm8, %v909_v20  ;;  %v901_v22 = vpop.permute.xlu1 %900 }
 0x249   : > { %v913_v18 = vsel %vm2543_vm2, 0, %v901_v22  ;;  %1150 = vmatpush1.bf16.msra.mxu1 %v920_v21  ;;  %vm2551_vm2 = vmmov %vm2550_vm1 }
 0x24a   : > { %v903_v23 = vpop.permute.xlu0 %902  ;;  %v918_v25 = vsel %vm417_vm9, %v913_v18, 0 }
 0x24b   : > { %v908_v24 = vsel %vm2544_vm3, %v901_v22, %v903_v23  ;;  %vm2552_vm3 = vmmov %vm2550_vm1 }
 0x24c   : > { %1693 = vmatprep.subr.msk.bf16.mxu1 %vm418_vm8, %v908_v24  ;;  %v1033_v26 = vpop.permute.xlu1 %1032 }
 0x24d   : > { %1152 = vmatpush1.bf16.msra.mxu1 %v918_v25 }
 0x24e   : > { %v1035_v17 = vpop.permute.xlu0 %1034 }
 0x24f   : > { %v1037_v27 = vsel %vm2545_vm4, %v1033_v26, %v1035_v17  ;;  %1694 = vmatprep.subr.msk.bf16.mxu1 %vm2546_vm0, %v1035_v17  ;;  %vm2553_vm4 = vcmask 1039360  }
 0x250   : > { %v1029_v28 = vpop.permute.xlu1 %1028  ;;  %vm2554_vm0 = vmmov %vm2553_vm4 }
 0x251   : > { %1154 = vmatpush2.bf16.msra.mxu1 %v1037_v27 }
 0x252   : > { %v1031_v29 = vpop.permute.xlu0 %1030 }
 0x253   : > { %v1036_v31 = vsel %vm2547_vm5, %v1029_v28, %v1031_v29  ;;  %1695 = vmatprep.subr.msk.bf16.mxu1 %vm2548_vm7, %v1031_v29  ;;  %vm2555_vm5 = vmmov %vm2554_vm0 }
 0x254   : > { %v1011_v32 = vpop.permute.xlu1 %1010  ;;  %vm2556_vm7 = vmmov %vm2554_vm0 }
 0x255   : > { %1156 = vmatpush2.bf16.msra.mxu1 %v1036_v31 }
 0x256   : > { %v1013_v4 = vpop.permute.xlu0 %1012 }
 0x257   : > { %v1015_v33 = vsel %vm2549_vm15, %v1011_v32, %v1013_v4  ;;  %v1022_v12 = vsel %vm2550_vm1, %v1013_v4, 0  ;;  %vm2557_vm15 = vcmask 908288  }
 0x258   : > { %v1026_v37 = vsel %vm417_vm9, %v1015_v33, 0  ;;  %1696 = vmatprep.subr.msk.bf16.mxu1 %vm418_vm8, %v1022_v12  ;;  %v1007_v38 = vpop.permute.xlu1 %1006  ;;  %vm2558_vm1 = vmmov %vm2557_vm15 }
 0x259   : > { %1158 = vmatpush2.bf16.msra.mxu1 %v1026_v37 }
 0x25a   : > { %v1009_v40 = vpop.permute.xlu0 %1008 }
 0x25b   : > { %v1014_v41 = vsel %vm2551_vm2, %v1007_v38, %v1009_v40  ;;  %v1019_v42 = vsel %vm2552_vm3, %v1009_v40, 0  ;;  %vm2559_vm2 = vmmov %vm2558_vm1 }
 0x25c   : > { %v1024_v44 = vsel %vm417_vm9, %v1014_v41, 0  ;;  %1697 = vmatprep.subr.msk.bf16.mxu1 %vm418_vm8, %v1019_v42  ;;  %v989_v45 = vpop.permute.xlu1 %988  ;;  %vm2560_vm3 = vmmov %vm2558_vm1 }
 0x25d   : > { %1160 = vmatpush2.bf16.msra.mxu1 %v1024_v44 }
 0x25e   : > { %v991_v46 = vpop.permute.xlu0 %990 }
 0x25f   : > { %v993_v48 = vsel %vm2553_vm4, %v989_v45, %v991_v46  ;;  %v1000_v49 = vsel %vm2554_vm0, %v991_v46, 0  ;;  %vm2538_vm4 = vcmask 261120  }
 0x260   : > { %v1004_v50 = vsel %vm477_vm12, %v993_v48, 0  ;;  %1698 = vmatprep.subr.msk.bf16.mxu1 %vm478_vm11, %v1000_v49  ;;  %v985_v51 = vpop.permute.xlu1 %984 }
 0x261   : > { %1162 = vmatpush2.bf16.msra.mxu1 %v1004_v50 }
 0x262   : > { %v987_v52 = vpop.permute.xlu0 %986 }
 0x263   : > { %v992_v53 = vsel %vm2555_vm5, %v985_v51, %v987_v52  ;;  %v997_v54 = vsel %vm2556_vm7, %v987_v52, 0 }
 0x264   : > { %v1002_v55 = vsel %vm477_vm12, %v992_v53, 0  ;;  %1699 = vmatprep.subr.msk.bf16.mxu1 %vm478_vm11, %v997_v54  ;;  %v1051_v57 = vpop.permute.xlu1 %1050 }
 0x265   : > { %1164 = vmatpush2.bf16.msra.mxu1 %v1002_v55 }
 0x266   : > { %1165 = vmatprep.subr.bf16.mxu1 %v2152_v36  ;;  %v1053_v56 = vpop.permute.xlu0 %1052  ;;  %v1763_v36 = vld [vmem:[%s2528_s4 + $0x1c] ss:$12 sps:$4 sm:$0xff]  }
 0x267   : > { %v1055_v59 = vsel %vm2557_vm15, %v1051_v57, %v1053_v56  ;;  %v1062_v60 = vsel %vm2558_vm1, %v1053_v56, 0 }
 0x269   : > { %1166 = vmatpush2.bf16.msra.mxu1 %v2150_v11  ;;  %v1066_v11 = vsel %vm477_vm12, %v1055_v59, 0 }
 0x26a   : > { %1167 = vmatprep.subr.bf16.mxu1 %v2160_v39  ;;  %v1049_v61 = vpop.permute.xlu0 %1048  ;;  %v1047_v39 = vpop.permute.xlu1 %1046 }
 0x26b   : > { %v1054_v62 = vsel %vm2559_vm2, %v1047_v39, %v1049_v61  ;;  %v1059_v1 = vsel %vm2560_vm3, %v1049_v61, 0 }
 0x26d   : > { %1168 = vmatpush2.bf16.msra.mxu1 %v2156_v8  ;;  %v1064_v8 = vsel %vm477_vm12, %v1054_v62, 0 }
 0x26e   : > { %1700 = vmatprep.subr.msk.bf16.mxu1 %vm478_vm11, %v1062_v60 }
 0x270   : > { %1170 = vmatmul.mubr.bf16.vlgmr.msra.gmra.mxu1 %v1760_v58 }
 0x271   : > { %1203 = vmatpush1.bf16.msra.mxu1 %v1066_v11  ;;  %1179 = vmatprep.mubr.bf16.mxu1 %v1763_v36 }
 0x272   : > { %1701 = vmatprep.subr.msk.bf16.mxu1 %vm478_vm11, %v1059_v1 }
 0x275   : > { %1205 = vmatpush1.bf16.msra.mxu1 %v1064_v8  ;;  %v1093_v22 = vpop.permute.xlu1 %1092 }
 0x277   : > { %v1098_v20 = vpop.permute.xlu0 %1097 }
 0x278   : > { %1180 = vmatmul.mubr.bf16.gmra.mxu1 %v1765_v2 }
 0x279   : > { %1222 = vmatprep.mubr.bf16.mxu1 %v1777_v0  ;;  %v1083_v27 = vpop.permute.xlu1 %1082 }
 0x27b   : > { %v1088_v24 = vpop.permute.xlu0 %1087 }
 0x280   : > { %1702 = vmatmul.mubr.msk.bf16.vlgmr.msra.gmra.mxu1 %vm2538_vm4, %v1766_v3 }
 0x281   : > { %1232 = vmatprep.mubr.bf16.mxu1 %v1777_v0 }
 0x288   : > { %1703 = vmatmul.mubr.msk.bf16.gmra.mxu1 %vm2538_vm4, %v1767_v5  ;;  %v1786_v5 = vmov 1983009808  }
 0x330   : > { %v1171_v6 = vpop.f32.mrf.mxu1 }
 0x331   : > { %v1172_v31 = vadd.f32 %v1171_v6, %v1083_v27  ;;  %v1453_v6 = vunpack.c.l.s4 %v1786_v5 }
 0x332   : > { %v1173_v7 = vpop.f32.mrf.mxu1 }
 0x333   : > { %v1174_v38 = vadd.f32 %v1173_v7, %v1083_v27  ;;  %v1454_v7 = vunpack.c.0.s8 %v1453_v6 }
 0x334   : > { %v1175_v9 = vpop.f32.mrf.mxu1 }
 0x335   : > { %v1176_v26 = vadd.f32 %v1175_v9, %v1088_v24  ;;  %v1457_v9 = vsub.s32 %v1454_v7, %v1979_v30 }
 0x336   : > { %v1177_v10 = vpop.f32.mrf.mxu1 }
 0x337   : > { %v1178_v32 = vadd.f32 %v1177_v10, %v1088_v24  ;;  %v1443_v10 = vld [vmem:[%s2530_s6] sm:$0x3f] }
 0x338   : > { %v1181_v13 = vpop.f32.mrf.mxu1 }
 0x339   : > { %v1182_v25 = vadd.f32 %v1181_v13, %v1093_v22  ;;  %v2406_v13 = vrot.slane %v1443_v10, %v1457_v9 }
 0x33a   : > { %v1183_v14 = vpop.f32.mrf.mxu1 }
 0x33b   : > { %v1184_v28 = vadd.f32 %v1183_v14, %v1093_v22  ;;  %v1451_v14 = vcombine.high %v1443_v10, %v1443_v10 }
 0x33c   : > { %v1185_v15 = vpop.f32.mrf.mxu1 }
 0x33d   : > { %v1186_v12 = vadd.f32 %v1185_v15, %v1098_v20  ;;  %v1466_v15 = vcombine.high %v2406_v13, %v2406_v13  ;;  %v2414_v30 = vrot.slane %v1451_v14, %v1457_v9 }
 0x33e   : > { %v1187_v16 = vpop.f32.mrf.mxu1 }
 0x33f   : > { %v1188_v44 = vadd.f32 %v1187_v16, %v1098_v20  ;;  %1504 = vmatprep.mubr.bf16.mxu0 %v1466_v15  ;;  %v1444_v16 = vld [vmem:[%s2531_s7] sm:$0x7] }
 0x340   : > { %v1224_v19 = vpop.f32.mrf.mxu1 }
 0x341   : > { %v1225_v40 = vadd.f32 %v1224_v19, %v1172_v31 }
 0x342   : > { %v1226_v21 = vpop.f32.mrf.mxu1 }
 0x343   : > { %v1227_v48 = vadd.f32 %v1226_v21, %v1174_v38  ;;  %v1251_v54 = vmul.f32 0.1, %v1225_v40  ;;  %vm1243_vm2 = vcmp.ge.f32.partialorder %v1225_v40, 0.0 }
 0x344   : > { %v1228_v18 = vpop.f32.mrf.mxu1 }
 0x345   : > { %v1229_v4 = vadd.f32 %v1228_v18, %v1176_v26  ;;  %v1252_v60 = vmul.f32 0.1, %v1227_v48  ;;  %vm1244_vm4 = vcmp.ge.f32.partialorder %v1227_v48, 0.0  ;;  %v1259_v62 = vsel %vm1243_vm2, %v1225_v40, %v1251_v54 }
 0x346   : > { %v1230_v23 = vpop.f32.mrf.mxu1 }
 0x347   : > { %v1231_v41 = vadd.f32 %v1230_v23, %v1178_v32  ;;  %v1253_v49 = vmul.f32 0.1, %v1229_v4  ;;  %vm1245_vm7 = vcmp.ge.f32.partialorder %v1229_v4, 0.0  ;;  %v1260_v2 = vsel %vm1244_vm4, %v1227_v48, %v1252_v60 }
 0x348   : > { %v1234_v17 = vpop.f32.mrf.mxu1 }
 0x349   : > { %v1235_v29 = vadd.f32 %v1234_v17, %v1182_v25  ;;  %v1254_v55 = vmul.f32 0.1, %v1231_v41  ;;  %vm1246_vm3 = vcmp.ge.f32.partialorder %v1231_v41, 0.0  ;;  %v1261_v36 = vsel %vm1245_vm7, %v1229_v4, %v1253_v49 }
 0x34a   : > { %v1236_v33 = vpop.f32.mrf.mxu1  ;;  %v2348_v8 = vpack.c.bf16 %v1261_v36, %v1259_v62 }
 0x34b   : > { %v1237_v37 = vadd.f32 %v1236_v33, %v1184_v28  ;;  %v1255_v45 = vmul.f32 0.1, %v1235_v29  ;;  %vm1247_vm0 = vcmp.ge.f32.partialorder %v1235_v29, 0.0  ;;  %v1262_v1 = vsel %vm1246_vm3, %v1231_v41, %v1254_v55 }
 0x34c   : > { %v1238_v42 = vpop.f32.mrf.mxu1  ;;  %v2352_v3 = vpack.c.bf16 %v1262_v1, %v1260_v2 }
 0x34d   : > { %v1239_v46 = vadd.f32 %v1238_v42, %v1186_v12  ;;  %v1256_v51 = vmul.f32 0.1, %v1237_v37  ;;  %vm1248_vm15 = vcmp.ge.f32.partialorder %v1237_v37, 0.0  ;;  %v1263_v56 = vsel %vm1247_vm0, %v1235_v29, %v1255_v45 }
 0x34e   : > { %v1240_v50 = vpop.f32.mrf.mxu1 }
 0x34f   : > { %vm1249_vm5 = vcmp.ge.f32.partialorder %v1239_v46, 0.0  ;;  %v1257_v52 = vmul.f32 0.1, %v1239_v46  ;;  %v1241_v53 = vadd.f32 %v1240_v50, %v1188_v44  ;;  %v1264_v61 = vsel %vm1248_vm15, %v1237_v37, %v1256_v51 }
 0x350   : > { %vm2569_vm15 = vcmask 924672  }
 0x351   : > { %v1265_v57 = vsel %vm1249_vm5, %v1239_v46, %v1257_v52  ;;  %vm1250_vm1 = vcmp.ge.f32.partialorder %v1241_v53, 0.0  ;;  %v1258_v58 = vmul.f32 0.1, %v1241_v53 }
 0x352   : > { %v2342_v59 = vpack.c.bf16 %v1265_v57, %v1263_v56 }
 0x353   : > { %v1266_v11 = vsel %vm1250_vm1, %v1241_v53, %v1258_v58  ;;  %vm2570_vm1 = vmmov %vm2569_vm15 }
 0x354   : > { %v2344_v39 = vpack.c.bf16 %v1266_v11, %v1264_v61  ;;  %1341 = vrot.lane.b32.xlu1 %v2342_v59, %s1778_s11  ;;  %vm2571_vm2 = vmmov %vm2570_vm1 }
 0x355   : > { %vm2572_vm3 = vmmov %vm2570_vm1 }
 0x356   : > { %1343 = vrot.lane.b32.xlu0 %v2344_v39, %s1778_s11 }
 0x358   : > { %1337 = vrot.lane.b32.xlu1 %v2348_v8, %s1778_s11 }
 0x35a   : > { %1339 = vrot.lane.b32.xlu0 %v2352_v3, %s1778_s11 }
 0x35c   : > { %1319 = vrot.lane.b32.xlu1 %v2342_v59, %s1779_s12 }
 0x35e   : > { %1321 = vrot.lane.b32.xlu0 %v2344_v39, %s1779_s12 }
 0x360   : > { %1315 = vrot.lane.b32.xlu1 %v2348_v8, %s1779_s12 }
 0x362   : > { %1317 = vrot.lane.b32.xlu0 %v2352_v3, %s1779_s12 }
 0x364   : > { %1301 = vrot.lane.b32.xlu1 %v2342_v59, %s1780_s17 }
 0x366   : > { %1303 = vrot.lane.b32.xlu0 %v2344_v39, %s1780_s17 }
 0x368   : > { %1297 = vrot.lane.b32.xlu1 %v2348_v8, %s1780_s17 }
 0x36a   : > { %1299 = vrot.lane.b32.xlu0 %v2352_v3, %s1780_s17 }
 0x36c   : > { %1279 = vrot.lane.b32.xlu1 %v2342_v59, %s1782_s19 }
 0x36e   : > { %1281 = vrot.lane.b32.xlu0 %v2344_v39, %s1782_s19 }
 0x370   : > { %1275 = vrot.lane.b32.xlu1 %v2348_v8, %s1782_s19 }
 0x372   : > { %1277 = vrot.lane.b32.xlu0 %v2352_v3, %s1782_s19 }
 0x374   : > { %1407 = vrot.lane.b32.xlu1 %v2342_v59, %s1783_s20 }
 0x376   : > { %1409 = vrot.lane.b32.xlu0 %v2344_v39, %s1783_s20 }
 0x378   : > { %1403 = vrot.lane.b32.xlu1 %v2348_v8, %s1783_s20 }
 0x37a   : > { %1405 = vrot.lane.b32.xlu0 %v2352_v3, %s1783_s20 }
 0x37c   : > { %1385 = vrot.lane.b32.xlu1 %v2342_v59, %s1784_s21 }
 0x37e   : > { %1387 = vrot.lane.b32.xlu0 %v2344_v39, %s1784_s21 }
 0x380   : > { %1381 = vrot.lane.b32.xlu1 %v2348_v8, %s1784_s21 }
 0x382   : > { %1383 = vrot.lane.b32.xlu0 %v2352_v3, %s1784_s21 }
 0x384   : > { %1363 = vrot.lane.b32.xlu1 %v2342_v59, %s1781_s18 }
 0x386   : > { %1365 = vrot.lane.b32.xlu0 %v2344_v39, %s1781_s18 }
 0x388   : > { %1359 = vrot.lane.b32.xlu1 %v2348_v8, %s1781_s18 }
 0x38a   : > { %1361 = vrot.lane.b32.xlu0 %v2352_v3, %s1781_s18  ;;  %s1727_s18 = sshll.u32 %s2583_s28, 3 }
 0x38c   : > { %1425 = vrot.lane.b32.xlu1 %v2342_v59, %s1785_s22 }
 0x38e   : > { %1427 = vrot.lane.b32.xlu0 %v2344_v39, %s1785_s22 }
 0x390   : > { %1421 = vrot.lane.b32.xlu1 %v2348_v8, %s1785_s22 }
 0x392   : > { %1423 = vrot.lane.b32.xlu0 %v2352_v3, %s1785_s22  ;;  %s325_s22 = scalar_lea.vmem %s2532_s8, %s1727_s18 }
 0x394   : > { %1447 = vperm.xlu1 %1747, %v1444_v16  }
 0x3c6   : > { %v1342_v19 = vpop.permute.xlu1 %1341 }
 0x3c7   : > { %v1353_v20 = vsel %vm491_vm6, 0, %v1342_v19 }
 0x3c8   : > { %v1344_v21 = vpop.permute.xlu0 %1343  ;;  %v1357_v18 = vsel %vm417_vm9, %v1353_v20, 0 }
 0x3c9   : > { %v1346_v22 = vsel %vm491_vm6, %v1342_v19, %v1344_v21 }
 0x3ca   : > { %1704 = vmatprep.subr.msk.bf16.mxu0 %vm418_vm8, %v1346_v22  ;;  %v1338_v23 = vpop.permute.xlu1 %1337 }
 0x3cb   : > { %v1350_v24 = vsel %vm491_vm6, 0, %v1338_v23  ;;  %1473 = vmatpush1.bf16.msra.mxu0 %v1357_v18 }
 0x3cc   : > { %v1340_v25 = vpop.permute.xlu0 %1339  ;;  %v1355_v17 = vsel %vm417_vm9, %v1350_v24, 0 }
 0x3cd   : > { %v1345_v26 = vsel %vm491_vm6, %v1338_v23, %v1340_v25  ;;  %vm2561_vm6 = vcmask 138240  }
 0x3ce   : > { %1705 = vmatprep.subr.msk.bf16.mxu0 %vm418_vm8, %v1345_v26  ;;  %v1320_v27 = vpop.permute.xlu1 %1319  ;;  %vm2563_vm4 = vmmov %vm2561_vm6 }
 0x3cf   : > { %v1331_v28 = vsel %vm451_vm10, 0, %v1320_v27  ;;  %1475 = vmatpush1.bf16.msra.mxu0 %v1355_v17 }
 0x3d0   : > { %v1322_v29 = vpop.permute.xlu0 %1321  ;;  %v1335_v32 = vsel %vm477_vm12, %v1331_v28, 0 }
 0x3d1   : > { %v1324_v31 = vsel %vm451_vm10, %v1320_v27, %v1322_v29 }
 0x3d2   : > { %1706 = vmatprep.subr.msk.bf16.mxu0 %vm478_vm11, %v1324_v31  ;;  %v1316_v4 = vpop.permute.xlu1 %1315 }
 0x3d3   : > { %v1328_v33 = vsel %vm451_vm10, 0, %v1316_v4  ;;  %1477 = vmatpush1.bf16.msra.mxu0 %v1335_v32 }
 0x3d4   : > { %v1318_v12 = vpop.permute.xlu0 %1317  ;;  %v1333_v38 = vsel %vm477_vm12, %v1328_v33, 0 }
 0x3d5   : > { %v1323_v37 = vsel %vm451_vm10, %v1316_v4, %v1318_v12  ;;  %vm2562_vm10 = vmmov %vm2561_vm6 }
 0x3d6   : > { %1707 = vmatprep.subr.msk.bf16.mxu0 %vm478_vm11, %v1323_v37  ;;  %v1302_v40 = vpop.permute.xlu1 %1301 }
 0x3d7   : > { %1479 = vmatpush1.bf16.msra.mxu0 %v1333_v38 }
 0x3d8   : > { %v1304_v41 = vpop.permute.xlu0 %1303 }
 0x3d9   : > { %v1306_v42 = vsel %vm431_vm13, %v1302_v40, %v1304_v41 }
 0x3da   : > { %1480 = vmatprep.subr.bf16.mxu0 %v1306_v42  ;;  %v1298_v44 = vpop.permute.xlu1 %1297 }
 0x3db   : > { %1709 = vmatpush1.bf16.msk.msra.mxu0 %vm2023_vm14, %v1302_v40 }
 0x3dc   : > { %v1300_v45 = vpop.permute.xlu0 %1299 }
 0x3dd   : > { %v1305_v46 = vsel %vm431_vm13, %v1298_v44, %v1300_v45  ;;  %vm2564_vm13 = vmmov %vm2563_vm4 }
 0x3de   : > { %1482 = vmatprep.subr.bf16.mxu0 %v1305_v46  ;;  %v1280_v48 = vpop.permute.xlu1 %1279 }
 0x3df   : > { %v1291_v49 = vsel %vm2561_vm6, 0, %v1280_v48  ;;  %1711 = vmatpush1.bf16.msk.msra.mxu0 %vm2023_vm14, %v1298_v44  ;;  %vm2565_vm14 = vcmask 916480   ;;  %vm2573_vm6 = vcmask 1039360  }
 0x3e0   : > { %v1282_v50 = vpop.permute.xlu0 %1281  ;;  %v1295_v52 = vsel %vm417_vm9, %v1291_v49, 0  ;;  %vm2566_vm0 = vmmov %vm2565_vm14 }
 0x3e1   : > { %v1284_v51 = vsel %vm2562_vm10, %v1280_v48, %v1282_v50  ;;  %vm2567_vm5 = vmmov %vm2566_vm0 }
 0x3e2   : > { %1712 = vmatprep.subr.msk.bf16.mxu0 %vm418_vm8, %v1284_v51  ;;  %v1276_v53 = vpop.permute.xlu1 %1275  ;;  %vm2568_vm7 = vmmov %vm2566_vm0 }
 0x3e3   : > { %v1288_v54 = vsel %vm2563_vm4, 0, %v1276_v53  ;;  %1485 = vmatpush1.bf16.msra.mxu0 %v1295_v52  ;;  %vm2574_vm10 = vmmov %vm2573_vm6 }
 0x3e4   : > { %v1278_v55 = vpop.permute.xlu0 %1277  ;;  %v1293_v63 = vsel %vm417_vm9, %v1288_v54, 0  ;;  %vm2576_vm4 = vmmov %vm2573_vm6 }
 0x3e5   : > { %v1283_v56 = vsel %vm2564_vm13, %v1276_v53, %v1278_v55 }
 0x3e6   : > { %1713 = vmatprep.subr.msk.bf16.mxu0 %vm418_vm8, %v1283_v56  ;;  %v1408_v57 = vpop.permute.xlu1 %1407 }
 0x3e7   : > { %1487 = vmatpush1.bf16.msra.mxu0 %v1293_v63 }
 0x3e8   : > { %v1410_v58 = vpop.permute.xlu0 %1409 }
 0x3e9   : > { %v1412_v60 = vsel %vm2565_vm14, %v1408_v57, %v1410_v58  ;;  %1714 = vmatprep.subr.msk.bf16.mxu0 %vm2566_vm0, %v1410_v58 }
 0x3ea   : > { %v1404_v36 = vpop.permute.xlu1 %1403 }
 0x3eb   : > { %1489 = vmatpush2.bf16.msra.mxu0 %v1412_v60 }
 0x3ec   : > { %v1406_v61 = vpop.permute.xlu0 %1405 }
 0x3ed   : > { %v1411_v11 = vsel %vm2567_vm5, %v1404_v36, %v1406_v61  ;;  %1715 = vmatprep.subr.msk.bf16.mxu0 %vm2568_vm7, %v1406_v61  ;;  %vm2581_vm5 = vcmask 261120  }
 0x3ee   : > { %v1386_v62 = vpop.permute.xlu1 %1385 }
 0x3ef   : > { %1491 = vmatpush2.bf16.msra.mxu0 %v1411_v11 }
 0x3f0   : > { %v1388_v1 = vpop.permute.xlu0 %1387 }
 0x3f1   : > { %v1390_v2 = vsel %vm2569_vm15, %v1386_v62, %v1388_v1  ;;  %v1397_v5 = vsel %vm2570_vm1, %v1388_v1, 0 }
 0x3f2   : > { %v1401_v6 = vsel %vm417_vm9, %v1390_v2, 0  ;;  %1716 = vmatprep.subr.msk.bf16.mxu0 %vm418_vm8, %v1397_v5  ;;  %v1382_v7 = vpop.permute.xlu1 %1381 }
 0x3f3   : > { %1493 = vmatpush2.bf16.msra.mxu0 %v1401_v6 }
 0x3f4   : > { %v1384_v9 = vpop.permute.xlu0 %1383 }
 0x3f5   : > { %v1389_v10 = vsel %vm2571_vm2, %v1382_v7, %v1384_v9  ;;  %v1394_v14 = vsel %vm2572_vm3, %v1384_v9, 0 }
 0x3f6   : > { %v1399_v15 = vsel %vm417_vm9, %v1389_v10, 0  ;;  %1717 = vmatprep.subr.msk.bf16.mxu0 %vm418_vm8, %v1394_v14  ;;  %v1364_v16 = vpop.permute.xlu1 %1363  ;;  %vm2575_vm9 = vmmov %vm2573_vm6  ;;  %vm2577_vm8 = vcmask 908288  }
 0x3f7   : > { %1495 = vmatpush2.bf16.msra.mxu0 %v1399_v15  ;;  %vm2578_vm13 = vmmov %vm2577_vm8 }
 0x3f8   : > { %v1366_v19 = vpop.permute.xlu0 %1365  ;;  %vm2579_vm14 = vmmov %vm2577_vm8 }
 0x3f9   : > { %v1368_v20 = vsel %vm2573_vm6, %v1364_v16, %v1366_v19  ;;  %v1375_v21 = vsel %vm2574_vm10, %v1366_v19, 0  ;;  %vm2580_vm0 = vmmov %vm2577_vm8 }
 0x3fa   : > { %v1379_v22 = vsel %vm477_vm12, %v1368_v20, 0  ;;  %1718 = vmatprep.subr.msk.bf16.mxu0 %vm478_vm11, %v1375_v21  ;;  %v1360_v18 = vpop.permute.xlu1 %1359 }
 0x3fb   : > { %1497 = vmatpush2.bf16.msra.mxu0 %v1379_v22 }
 0x3fc   : > { %v1362_v35 = vpop.permute.xlu0 %1361 }
 0x3fd   : > { %v1367_v23 = vsel %vm2575_vm9, %v1360_v18, %v1362_v35  ;;  %v1372_v34 = vsel %vm2576_vm4, %v1362_v35, 0 }
 0x3fe   : > { %v1377_v24 = vsel %vm477_vm12, %v1367_v23, 0  ;;  %1719 = vmatprep.subr.msk.bf16.mxu0 %vm478_vm11, %v1372_v34  ;;  %v1426_v26 = vpop.permute.xlu1 %1425 }
 0x3ff   : > { %1499 = vmatpush2.bf16.msra.mxu0 %v1377_v24 }
 0x400   : > { %1500 = vmatprep.subr.bf16.mxu0 %v2344_v39  ;;  %v1428_v25 = vpop.permute.xlu0 %1427 }
 0x401   : > { %v1430_v17 = vsel %vm2577_vm8, %v1426_v26, %v1428_v25  ;;  %v1437_v27 = vsel %vm2578_vm13, %v1428_v25, 0 }
 0x402   : > { %v1441_v29 = vsel %vm477_vm12, %v1430_v17, 0  ;;  %v1422_v39 = vpop.permute.xlu1 %1421 }
 0x403   : > { %1501 = vmatpush2.bf16.msra.mxu0 %v2342_v59 }
 0x404   : > { %1502 = vmatprep.subr.bf16.mxu0 %v2352_v3  ;;  %v1424_v28 = vpop.permute.xlu0 %1423 }
 0x405   : > { %v1429_v59 = vsel %vm2579_vm14, %v1422_v39, %v1424_v28  ;;  %v1434_v3 = vsel %vm2580_vm0, %v1424_v28, 0 }
 0x407   : > { %1503 = vmatpush2.bf16.msra.mxu0 %v2348_v8  ;;  %v1439_v8 = vsel %vm477_vm12, %v1429_v59, 0 }
 0x408   : > { %1720 = vmatprep.subr.msk.bf16.mxu0 %vm478_vm11, %v1437_v27 }
 0x40a   : > { %1505 = vmatmul.mubr.bf16.vlgmr.msra.gmra.mxu0 %v2406_v13 }
 0x40b   : > { %1526 = vmatpush1.bf16.msra.mxu0 %v1441_v29  ;;  %1545 = vmatprep.mubr.bf16.mxu0 %v1777_v0 }
 0x40c   : > { %1721 = vmatprep.subr.msk.bf16.mxu0 %vm478_vm11, %v1434_v3 }
 0x40f   : > { %1528 = vmatpush1.bf16.msra.mxu0 %v1439_v8  ;;  %v1448_v4 = vpop.permute.xlu1 %1447 }
 0x412   : > { %1722 = vmatmul.mubr.msk.bf16.vlgmr.msra.gmra.mxu0 %vm2581_vm5, %v2414_v30 }
 0x4ca   : > { %v1506_v31 = vpop.f32.mrf.mxu0 }
 0x4cb   : > { %v1507_v12 = vadd.f32 %v1506_v31, %v1448_v4 }
 0x4cc   : > { %v1508_v13 = vpop.f32.mrf.mxu0 }
 0x4cd   : > { %v1509_v38 = vadd.f32 %v1508_v13, %v1448_v4 }
 0x4ce   : > { %v1510_v32 = vpop.f32.mrf.mxu0 }
 0x4d0   : > { %v1511_v33 = vpop.f32.mrf.mxu0 }
 0x4d2   : > { %v1547_v37 = vpop.f32.mrf.mxu0 }
 0x4d3   : > { %v1548_v0 = vadd.f32 %v1547_v37, %v1507_v12 }
 0x4d4   : > { %v1549_v40 = vpop.f32.mrf.mxu0 }
 0x4d5   : > { %v1554_v43 = vmul.f32 0.5, %v1548_v0  ;;  %v1550_v41 = vadd.f32 %v1549_v40, %v1509_v38 }
 0x4d6   : > { %v1551_v42 = vpop.f32.mrf.mxu0 }
 0x4d7   : > { %v1555_v47 = vmul.f32 0.5, %v1550_v41  ;;  %v1556_v45 = vadd.f32 0.5, %v1554_v43 }
 0x4d8   : > { %v1552_v44 = vpop.f32.mrf.mxu0 }
 0x4d9   : > { %v1557_v46 = vadd.f32 0.5, %v1555_v47 }
 0x4db   : > { %v1560_v30 = vcombine.low %v1556_v45, %v1557_v46 }
 0x4dd   : > { %1562 = vst [vmem:[%s325_s22] sm:$0x77] %v1560_v30 }
 0x4de PF: > { %s18_s27 = sadd.s32 1, %s1775_s27  }
 0x4df   : > { %p15_p4 = scmp.ge.s32.totalorder %s18_s27, 4  }
 0x4e1   :  { %17 = sbr.rel (!%p15_p4) target bundleno = 1 (0x1), region = 85 }

</bundles_post_ra>
